<compile_context>
chip_gen: v6e
topology: v6e:2x2x1
jax: 0.10.0
libtpu: 0.0.40
codegen_flags: <defaults>
</compile_context>

<pallas_src>
import functools

import jax
import jax.numpy as jnp
from jax import lax
from jax.experimental import pallas as pl
from jax.experimental.pallas import tpu as pltpu


# ---------------------------------------------------------------------------
# Kernel 1: fused QKV projection + RoPE (+ softmax scale folded into Q)
# ---------------------------------------------------------------------------
def _qkv_rope_kernel(x_ref, w_ref, cos_ref, sins_ref, q_ref, k_ref, v_ref, *,
                     scale):
    # x_ref:    (1, Tt, C)  one (batch, seq-tile) block (possibly bf16)
    # w_ref:    (C, 3H)     fused [Wq | Wk | Wv]        (possibly bf16)
    # cos_ref:  (Tt, H)     RoPE cos table (f32)
    # sins_ref: (Tt, H)     sign-folded sin table (first half negated, f32)
    H = cos_ref.shape[1]
    half = H // 2

    x = x_ref[0]                                       # (Tt, C)
    w = w_ref[...]                                     # (C, 3H)
    # Single lane-dense MXU matmul for all three projections; f32 accumulate.
    qkv = jnp.dot(x, w, preferred_element_type=jnp.float32)      # (Tt, 3H) f32

    q = qkv[:, :H]
    k = qkv[:, H:2 * H]
    v = qkv[:, 2 * H:]

    cos = cos_ref[...]
    sins = sins_ref[...]

    def rope(t):
        # rotate_half(t) == sign * roll(t, H//2); the sign is folded into `sins`.
        # (pltpu.roll needs a non-negative axis; t is 2-D (Tt, H) -> axis=1.)
        return t * cos + pltpu.roll(t, shift=half, axis=1) * sins

    # Fold the softmax scale into Q once here (removes a (Tq x Tk) f32 multiply
    # per KV tile from the flash inner loop, which is VALU-bound for H=128).
    q_ref[0] = (rope(q) * scale).astype(q_ref.dtype)
    k_ref[0] = rope(k).astype(k_ref.dtype)
    v_ref[0] = v.astype(v_ref.dtype)


def _qkv_rope_projection(x, w_qkv, cos, sin_signed, head_size, scale, block_t,
                         out_dtype, vmem_limit_bytes):
    B, T, C = x.shape
    grid = (B, T // block_t)
    qkv_shape = jax.ShapeDtypeStruct((B, T, head_size), out_dtype)
    kernel = functools.partial(_qkv_rope_kernel, scale=scale)
    return pl.pallas_call(
        kernel,
        out_shape=(qkv_shape, qkv_shape, qkv_shape),
        grid_spec=pltpu.PrefetchScalarGridSpec(
            num_scalar_prefetch=0,
            grid=grid,
            in_specs=[
                pl.BlockSpec((1, block_t, C), lambda b, t: (b, t, 0)),        # x
                pl.BlockSpec((C, 3 * head_size), lambda b, t: (0, 0)),        # fused W
                pl.BlockSpec((block_t, head_size), lambda b, t: (t, 0)),      # cos
                pl.BlockSpec((block_t, head_size), lambda b, t: (t, 0)),      # sin_signed
            ],
            out_specs=(
                pl.BlockSpec((1, block_t, head_size), lambda b, t: (b, t, 0)),
                pl.BlockSpec((1, block_t, head_size), lambda b, t: (b, t, 0)),
                pl.BlockSpec((1, block_t, head_size), lambda b, t: (b, t, 0)),
            ),
        ),
        compiler_params=pltpu.CompilerParams(
            dimension_semantics=("parallel", "parallel"),
            vmem_limit_bytes=vmem_limit_bytes,
        ),
    )(x, w_qkv, cos, sin_signed)


# ---------------------------------------------------------------------------
# Kernel 2: flash-style causal attention with online softmax
# ---------------------------------------------------------------------------
def _flash_attn_kernel(q_ref, k_ref, v_ref, o_ref, m_scr, l_scr, acc_scr):
    block_q = q_ref.shape[1]
    block_k = k_ref.shape[1]

    qi = pl.program_id(1)
    ki = pl.program_id(2)
    n_kv = pl.num_programs(2)

    q_start = qi * block_q
    k_start = ki * block_k
    q_last = q_start + (block_q - 1)
    k_last = k_start + (block_k - 1)

    @pl.when(ki == 0)
    def _init():
        m_scr[...] = jnp.full_like(m_scr, -jnp.inf)
        l_scr[...] = jnp.zeros_like(l_scr)
        acc_scr[...] = jnp.zeros_like(acc_scr)

    def update(apply_mask):
        q = q_ref[0]                                   # (Tq, H)  (scale pre-folded)
        k = k_ref[0]                                   # (Tk, H)
        v = v_ref[0]                                   # (Tk, H)
        # Contract last dims directly: no explicit k.T (avoids XLU transpose).
        s = lax.dot_general(q, k, (((1,), (1,)), ((), ())),
                            preferred_element_type=jnp.float32)   # (Tq, Tk) f32
        if apply_mask:
            # Causal: (i + q_start) >= (j + k_start)  <=>  i - j >= k_start - q_start.
            # Single iota difference vs one scalar offset (no per-tile int adds
            # of q_start / k_start to both full iotas).
            diff = (lax.broadcasted_iota(jnp.int32, (block_q, block_k), 0)
                    - lax.broadcasted_iota(jnp.int32, (block_q, block_k), 1))
            # -inf is safe: ki iterates from 0, so every query row has already
            # seen an unmasked column by/within its first processed KV tile.
            s = jnp.where(diff >= (k_start - q_start), s, -jnp.inf)

        m_prev = m_scr[...]
        m_new = jnp.maximum(m_prev, jnp.max(s, axis=-1, keepdims=True))
        alpha = jnp.exp(m_prev - m_new)
        p = jnp.exp(s - m_new)
        l_scr[...] = alpha * l_scr[...] + jnp.sum(p, axis=-1, keepdims=True)
        acc_scr[...] = alpha * acc_scr[...] + jnp.dot(
            p.astype(v.dtype), v, preferred_element_type=jnp.float32)
        m_scr[...] = m_new

    # Diagonal-crossing tile: needs the mask.
    @pl.when(jnp.logical_and(k_start <= q_last, k_last > q_start))
    def _masked():
        update(apply_mask=True)

    # Fully-below-diagonal tile: no mask work at all.
    @pl.when(k_last <= q_start)
    def _unmasked():
        update(apply_mask=False)

    # Tiles strictly above the diagonal (k_start > q_last) are skipped entirely;
    # their K/V index_map is clamped so they also issue no fresh DMA.

    @pl.when(ki == n_kv - 1)
    def _finalize():
        inv_l = pl.reciprocal(l_scr[...], approx=True)     # EUP vrcp (free slot)
        o_ref[0] = (acc_scr[...] * inv_l).astype(o_ref.dtype)


def _flash_attention(q, k, v, block_q, block_k, out_dtype, vmem_limit_bytes):
    B, T, H = q.shape
    grid = (B, T // block_q, T // block_k)

    def q_map(b, qi, ki):
        return (b, qi, 0)

    def kv_map(b, qi, ki):
        # Clamp to the last KV block a causal q-tile can ever need: skipped
        # above-diagonal grid steps then repeat the previous block index, so
        # no new K/V DMA is issued for them (≈2x less K/V HBM traffic).
        last_needed = (qi * block_q + (block_q - 1)) // block_k
        return (b, jnp.minimum(ki, last_needed), 0)

    return pl.pallas_call(
        _flash_attn_kernel,
        out_shape=jax.ShapeDtypeStruct((B, T, H), out_dtype),
        grid_spec=pltpu.PrefetchScalarGridSpec(
            num_scalar_prefetch=0,
            grid=grid,
            in_specs=[
                pl.BlockSpec((1, block_q, H), q_map),
                pl.BlockSpec((1, block_k, H), kv_map),
                pl.BlockSpec((1, block_k, H), kv_map),
            ],
            out_specs=pl.BlockSpec((1, block_q, H), q_map),
            scratch_shapes=[
                pltpu.VMEM((block_q, 1), jnp.float32),   # running max m
                pltpu.VMEM((block_q, 1), jnp.float32),   # running denom l
                pltpu.VMEM((block_q, H), jnp.float32),   # output accumulator
            ],
        ),
        compiler_params=pltpu.CompilerParams(
            # B and Q-tile axes parallel (keep B * n_q >= 2 so both v7x TCs get
            # work); KV axis carries the online-softmax accumulator -> arbitrary.
            dimension_semantics=("parallel", "parallel", "arbitrary"),
            vmem_limit_bytes=vmem_limit_bytes,
        ),
    )(q, k, v)


# ---------------------------------------------------------------------------
# Public wrapper
# ---------------------------------------------------------------------------
def fuse_qkv_weights(wq, wk, wv, compute_dtype=jnp.bfloat16):
    """Precompute the fused (C, 3H) weight once, outside the hot path."""
    return jnp.concatenate([wq, wk, wv], axis=1).astype(compute_dtype)


def attention_head(x, wq, wk, wv, cos, sin_signed, *,
                   w_qkv=None,
                   block_q=256, block_k=256, block_t=256,
                   compute_dtype=jnp.bfloat16,
                   vmem_limit_bytes=48 * 1024 * 1024):
    """Single-head causal self-attention with RoPE.

    x: (B, T, C); wq/wk/wv: (C, H) (pre-transposed nn.Linear weights);
    cos/sin_signed: (T, H) RoPE tables (sin_signed has the rotate_half sign
    folded in). w_qkv: optional precomputed fused (C, 3H) weight (see
    fuse_qkv_weights). compute_dtype: MXU operand dtype (bf16 fast path on all
    generations); accumulation, RoPE and softmax are always f32.
    Returns (B, T, H).
    """
    B, T, C = x.shape
    H = wq.shape[1]
    scale = float(C) ** -0.5     # NOTE: embed size, exactly as the PyTorch module.

    def pick(block):
        return block if (block <= T and T % block == 0) else T

    block_q, block_k, block_t = pick(block_q), pick(block_k), pick(block_t)

    if w_qkv is None:
        # Fuse the three projection weights -> one lane-dense (C, 3H) matmul / DMA.
        w_qkv = fuse_qkv_weights(wq, wk, wv, compute_dtype)
    else:
        w_qkv = w_qkv.astype(compute_dtype)
    xc = x.astype(compute_dtype)

    q, k, v = _qkv_rope_projection(xc, w_qkv, cos, sin_signed, H, scale,
                                   block_t, compute_dtype, vmem_limit_bytes)
    # TODO(synk): training-mode dropout on the attention weights would need
    # pltpu.prng_seed / pltpu.prng_random_bits inside _flash_attn_kernel.
    return _flash_attention(q, k, v, block_q, block_k, x.dtype,
                            vmem_limit_bytes)


# ---------------------------------------------------------------------------
# RoPE tables + pure-JAX reference
# ---------------------------------------------------------------------------
def make_rope_tables(T, H, base=10000.0, dtype=jnp.float32):
    """Returns (cos, sin, sin_signed), each (T, H), rotate_half convention."""
    half = H // 2
    inv_freq = 1.0 / (base ** (jnp.arange(0, half, dtype=jnp.float32) / half))
    pos = jnp.arange(T, dtype=jnp.float32)
    ang = pos[:, None] * inv_freq[None, :]               # (T, H/2)
    cos = jnp.concatenate([jnp.cos(ang), jnp.cos(ang)], axis=-1)
    sin = jnp.concatenate([jnp.sin(ang), jnp.sin(ang)], axis=-1)
    sin_signed = jnp.concatenate([-jnp.sin(ang), jnp.sin(ang)], axis=-1)
    return cos.astype(dtype), sin.astype(dtype), sin_signed.astype(dtype)


def reference(x, wq, wk, wv, cos, sin):
    """Pure-JAX f32 reference mirroring the PyTorch module (eval mode)."""
    B, T, C = x.shape
    H = wq.shape[1]
    q = x @ wq
    k = x @ wk
    v = x @ wv

    def rope(t):
        half = H // 2
        rot = jnp.concatenate([-t[..., half:], t[..., :half]], axis=-1)
        return t * cos + rot * sin

    q = rope(q)
    k = rope(k)
    s = jnp.einsum("btd,bsd->bts", q, k) * (C ** -0.5)
    mask = jnp.tril(jnp.ones((T, T), dtype=bool))
    s = jnp.where(mask, s, -jnp.inf)
    w = jax.nn.softmax(s, axis=-1)
    return jnp.einsum("bts,bsd->btd", w, v)


if __name__ == "__main__":
    # Shapes that exercise multiple 256-blocks (2 q-tiles x 2 kv-tiles per
    # batch), lane-dense H=128, and T <= embed_size as the module's tril implies.
    B, T, C, H = 2, 512, 512, 128

    key = jax.random.PRNGKey(0)
    kx, kq, kk, kv = jax.random.split(key, 4)

    x = jax.random.normal(kx, (B, T, C), dtype=jnp.float32)
    # nn.Linear(embed, head, bias=False): weight (H, C) applied as x @ W^T.
    # We store the transposed (C, H) matrices directly.
    std = 1.0 / jnp.sqrt(C)
    wq = jax.random.normal(kq, (C, H), dtype=jnp.float32) * std
    wk = jax.random.normal(kk, (C, H), dtype=jnp.float32) * std
    wv = jax.random.normal(kv, (C, H), dtype=jnp.float32) * std

    cos, sin, sin_signed = make_rope_tables(T, H)
    ref = reference(x, wq, wk, wv, cos, sin)

    # f32-operand path (tight check; approx reciprocal in the epilogue).
    out_f32 = jax.block_until_ready(
        attention_head(x, wq, wk, wv, cos, sin_signed,
                       compute_dtype=jnp.float32))
    assert out_f32.shape == (B, T, H)
    assert jnp.allclose(out_f32, ref, atol=5e-3, rtol=5e-3), "f32 path mismatch"

    # bf16 MXU-operand path (default; f32 accumulate/softmax/RoPE), with the
    # fused weight prepared once outside the call, as in a real model.
    w_qkv = fuse_qkv_weights(wq, wk, wv, jnp.bfloat16)
    out_bf16 = jax.block_until_ready(
        attention_head(x, wq, wk, wv, cos, sin_signed, w_qkv=w_qkv))
    assert out_bf16.shape == (B, T, H)
    assert jnp.allclose(out_bf16, ref, atol=1e-1, rtol=5e-2), "bf16 path mismatch"

    print("KERNEL_OK")
</pallas_src>

<mosaic_0001>
module attributes {stable_mosaic.version = 11 : i64} {
  func.func @_qkv_rope_kernel(%arg0: i32, %arg1: i32, %arg2: memref<1x256x512xf32, #tpu.memory_space<vmem>>, %arg3: memref<512x384xf32, #tpu.memory_space<vmem>>, %arg4: memref<256x128xf32, #tpu.memory_space<vmem>>, %arg5: memref<256x128xf32, #tpu.memory_space<vmem>>, %arg6: memref<1x256x128xf32, #tpu.memory_space<vmem>>, %arg7: memref<1x256x128xf32, #tpu.memory_space<vmem>>, %arg8: memref<1x256x128xf32, #tpu.memory_space<vmem>>) attributes {dimension_semantics = [#tpu.dimension_semantics<parallel>, #tpu.dimension_semantics<parallel>], iteration_bounds = array<i64: 2, 2>, scalar_prefetch = 0 : i64, scratch_operands = 0 : i64, tpu.core_type = #tpu.core_type<tc>, window_params = [{transform_indices = @transform_0, window_bounds = array<i64: 1, 256, 512>}, {pipeline_mode = #tpu.pipeline_mode<synchronous>, transform_indices = @transform_1, window_bounds = array<i64: 512, 384>}, {transform_indices = @transform_2, window_bounds = array<i64: 256, 128>}, {transform_indices = @transform_3, window_bounds = array<i64: 256, 128>}, {transform_indices = @transform_4, window_bounds = array<i64: 1, 256, 128>}, {transform_indices = @transform_5, window_bounds = array<i64: 1, 256, 128>}, {transform_indices = @transform_6, window_bounds = array<i64: 1, 256, 128>}]} {
    %c0 = arith.constant 0 : index
    %c0_0 = arith.constant 0 : index
    %c0_1 = arith.constant 0 : index
    %0 = vector.load %arg2[%c0, %c0_0, %c0_1] : memref<1x256x512xf32, #tpu.memory_space<vmem>>, vector<1x256x512xf32>
    %1 = vector.shape_cast %0 : vector<1x256x512xf32> to vector<256x512xf32>
    %c0_2 = arith.constant 0 : index
    %c0_3 = arith.constant 0 : index
    %2 = vector.load %arg3[%c0_2, %c0_3] : memref<512x384xf32, #tpu.memory_space<vmem>>, vector<512x384xf32>
    %cst = arith.constant dense<0.000000e+00> : vector<256x384xf32>
    %3 = tpu.matmul %1, %2, %cst {dimension_numbers = #tpu.dot_dimension_numbers<[1], [0], [0], [1], [0, 0, 1, 1], [], []>} : vector<256x512xf32>, vector<512x384xf32>, vector<256x384xf32> -> vector<256x384xf32>
    %4 = vector.extract_strided_slice %3 {offsets = [0, 0], sizes = [256, 128], strides = [1, 1]} : vector<256x384xf32> to vector<256x128xf32>
    %5 = vector.extract_strided_slice %3 {offsets = [0, 128], sizes = [256, 128], strides = [1, 1]} : vector<256x384xf32> to vector<256x128xf32>
    %6 = vector.extract_strided_slice %3 {offsets = [0, 256], sizes = [256, 128], strides = [1, 1]} : vector<256x384xf32> to vector<256x128xf32>
    %c0_4 = arith.constant 0 : index
    %c0_5 = arith.constant 0 : index
    %7 = vector.load %arg4[%c0_4, %c0_5] : memref<256x128xf32, #tpu.memory_space<vmem>>, vector<256x128xf32>
    %c0_6 = arith.constant 0 : index
    %c0_7 = arith.constant 0 : index
    %8 = vector.load %arg5[%c0_6, %c0_7] : memref<256x128xf32, #tpu.memory_space<vmem>>, vector<256x128xf32>
    %9 = arith.mulf %4, %7 : vector<256x128xf32>
    %c64_i32 = arith.constant 64 : i32
    %10 = tpu.dynamic_rotate %4 by %c64_i32 dim 1 : vector<256x128xf32>, i32 -> vector<256x128xf32>
    %11 = arith.mulf %10, %8 : vector<256x128xf32>
    %12 = arith.addf %9, %11 : vector<256x128xf32>
    %cst_8 = arith.constant 0.0441941731 : f32
    %13 = vector.broadcast %cst_8 : f32 to vector<256x128xf32>
    %14 = arith.mulf %12, %13 : vector<256x128xf32>
    %c0_9 = arith.constant 0 : index
    %c0_10 = arith.constant 0 : index
    %c0_11 = arith.constant 0 : index
    %15 = vector.load %arg6[%c0_9, %c0_10, %c0_11] : memref<1x256x128xf32, #tpu.memory_space<vmem>>, vector<1x256x128xf32>
    %16 = vector.shape_cast %15 : vector<1x256x128xf32> to vector<256x128xf32>
    %17 = vector.shape_cast %14 : vector<256x128xf32> to vector<1x256x128xf32>
    tpu.vector_store %arg6[%c0_9, %c0_10, %c0_11], %17 {strides = array<i32>} : memref<1x256x128xf32, #tpu.memory_space<vmem>>, vector<1x256x128xf32>,
    %18 = arith.mulf %5, %7 : vector<256x128xf32>
    %c64_i32_12 = arith.constant 64 : i32
    %19 = tpu.dynamic_rotate %5 by %c64_i32_12 dim 1 : vector<256x128xf32>, i32 -> vector<256x128xf32>
    %20 = arith.mulf %19, %8 : vector<256x128xf32>
    %21 = arith.addf %18, %20 : vector<256x128xf32>
    %c0_13 = arith.constant 0 : index
    %c0_14 = arith.constant 0 : index
    %c0_15 = arith.constant 0 : index
    %22 = vector.load %arg7[%c0_13, %c0_14, %c0_15] : memref<1x256x128xf32, #tpu.memory_space<vmem>>, vector<1x256x128xf32>
    %23 = vector.shape_cast %22 : vector<1x256x128xf32> to vector<256x128xf32>
    %24 = vector.shape_cast %21 : vector<256x128xf32> to vector<1x256x128xf32>
    tpu.vector_store %arg7[%c0_13, %c0_14, %c0_15], %24 {strides = array<i32>} : memref<1x256x128xf32, #tpu.memory_space<vmem>>, vector<1x256x128xf32>,
    %c0_16 = arith.constant 0 : index
    %c0_17 = arith.constant 0 : index
    %c0_18 = arith.constant 0 : index
    %25 = vector.load %arg8[%c0_16, %c0_17, %c0_18] : memref<1x256x128xf32, #tpu.memory_space<vmem>>, vector<1x256x128xf32>
    %26 = vector.shape_cast %25 : vector<1x256x128xf32> to vector<256x128xf32>
    %27 = vector.shape_cast %6 : vector<256x128xf32> to vector<1x256x128xf32>
    tpu.vector_store %arg8[%c0_16, %c0_17, %c0_18], %27 {strides = array<i32>} : memref<1x256x128xf32, #tpu.memory_space<vmem>>, vector<1x256x128xf32>,
    return
  }
  func.func @transform_0(%arg0: i32, %arg1: i32) -> (i32, i32, i32) {
    %c0_i32 = arith.constant 0 : i32
    %c0_i32_0 = arith.constant 0 : i32
    return %arg0, %arg1, %c0_i32 : i32, i32, i32
  }
  func.func @transform_1(%arg0: i32, %arg1: i32) -> (i32, i32) {
    %c0_i32 = arith.constant 0 : i32
    %c0_i32_0 = arith.constant 0 : i32
    %c0_i32_1 = arith.constant 0 : i32
    return %c0_i32, %c0_i32_0 : i32, i32
  }
  func.func @transform_2(%arg0: i32, %arg1: i32) -> (i32, i32) {
    %c0_i32 = arith.constant 0 : i32
    %c0_i32_0 = arith.constant 0 : i32
    return %arg1, %c0_i32 : i32, i32
  }
  func.func @transform_3(%arg0: i32, %arg1: i32) -> (i32, i32) {
    %c0_i32 = arith.constant 0 : i32
    %c0_i32_0 = arith.constant 0 : i32
    return %arg1, %c0_i32 : i32, i32
  }
  func.func @transform_4(%arg0: i32, %arg1: i32) -> (i32, i32, i32) {
    %c0_i32 = arith.constant 0 : i32
    %c0_i32_0 = arith.constant 0 : i32
    return %arg0, %arg1, %c0_i32 : i32, i32, i32
  }
  func.func @transform_5(%arg0: i32, %arg1: i32) -> (i32, i32, i32) {
    %c0_i32 = arith.constant 0 : i32
    %c0_i32_0 = arith.constant 0 : i32
    return %arg0, %arg1, %c0_i32 : i32, i32, i32
  }
  func.func @transform_6(%arg0: i32, %arg1: i32) -> (i32, i32, i32) {
    %c0_i32 = arith.constant 0 : i32
    %c0_i32_0 = arith.constant 0 : i32
    return %arg0, %arg1, %c0_i32 : i32, i32, i32
  }
}

</mosaic_0001>

<bundles_post_ra>
// kernel: tpu_custom_call.1
= control target key start
LH: loop header
LB: loop body
LE: loop exit
PB: predicated region body
PF: predicated region fallthrough
CT: control target
= control target key end

     0   :  { %s4607_s0 = inlined_call_operand.hbm [shape: f32[2,512,512], index: 0, kind: input, shape index: {}]   ;;  %s4608_s1 = inlined_call_operand.hbm [shape: f32[512,384], index: 1, kind: input, shape index: {}]   ;;  %s4609_s2 = inlined_call_operand.hbm [shape: f32[512,128], index: 2, kind: input, shape index: {}]   ;;  %s4610_s3 = inlined_call_operand.hbm [shape: f32[512,128], index: 3, kind: input, shape index: {}]   ;;  %s4611_s4 = inlined_call_operand.hbm [shape: f32[2,512,128], index: 4, kind: output, shape index: {0}]   ;;  %s4612_s5 = inlined_call_operand.hbm [shape: f32[2,512,128], index: 5, kind: output, shape index: {1}]   ;;  %s4613_s6 = inlined_call_operand.hbm [shape: f32[2,512,128], index: 6, kind: output, shape index: {2}]  }
   0x1   :  { %4715 = sst [smem:[#allocation93_spill]] %s4607_s0 }
   0x2   :  { %4716 = sst [smem:[#allocation94_spill]] %s4608_s1 }
   0x3   :  { %4717 = sst [smem:[#allocation95_spill]] %s4609_s2 }
   0x4   :  { %4718 = sst [smem:[#allocation96_spill]] %s4610_s3 }
   0x5   :  { %4719 = sst [smem:[#allocation97_spill]] %s4611_s4 }
   0x6   :  { %4720 = sst [smem:[#allocation98_spill]] %s4612_s5 }
   0x7   :  { %4721 = sst [smem:[#allocation99_spill]] %s4613_s6 }
   0x8   :  { %12 = vsyncpa [#allocation3], 0 }
   0x9   :  { %14 = vsyncpa [#allocation3 + $0x1], 0 }
   0xa   :  { %15 = vsyncpa [#allocation6], 0 }
   0xb   :  { %16 = vsyncpa [#allocation4], 0 }
   0xc   :  { %18 = vsyncpa [#allocation4 + $0x1], 0 }
   0xd   :  { %19 = vsyncpa [#allocation11], 0 }
   0xe   :  { %21 = vsyncpa [#allocation11 + $0x1], 0  ;;  %s3003_s21 = smov 0   ;;  %s3005_s22 = smov 0  }
   0xf   :  { %s3007_s23 = smov 0   ;;  %s3009_s24 = smov 0  }
  0x10   :  { %s3011_s25 = smov 0   ;;  %s3013_s26 = smov 0  }
  0x11   :  { %s3015_s27 = smov 0   ;;  %s3017_s28 = smov 0  }
  0x12   :  { %s3019_s29 = smov 0   ;;  %s3021_s30 = smov 0  }
  0x13   :  { %s3023_s7 = smov 0  }
  0x14 LB: > { %4722 = sst [smem:[#allocation18_spill]] %s2933_s27  ;;  %s36_s8 = sadd.s32 1, %s2941_s29  ;;  %s2949_s7 = sphi %s3023_s7, %s27_s7   ;;  %s2945_s30 = sphi %s3021_s30, %s4930_s30   ;;  %s2941_s29 = sphi %s3019_s29, %s4929_s29   ;;  %s2937_s28 = sphi %s3017_s28, %s4928_s28   ;;  %s2933_s27 = sphi %s3015_s27, %s4927_s27   ;;  %s2929_s26 = sphi %s3013_s26, %s4936_s26   ;;  %s2925_s25 = sphi %s3011_s25, %s4935_s25   ;;  %s2921_s24 = sphi %s3009_s24, %s4934_s24   ;;  %s2917_s23 = sphi %s3007_s23, %s4933_s23   ;;  %s2913_s22 = sphi %s3005_s22, %s4932_s22   ;;  %s2909_s21 = sphi %s3003_s21, %s4931_s21  }
  0x15   : > { %4723 = sst [smem:[#allocation19_spill]] %s2937_s28  ;;  %s39_s9 = sadd.s32 1, %s2945_s30 }
  0x16   : > { %4724 = sst [smem:[#allocation20_spill]] %s2941_s29  ;;  %p37_p0 = scmp.ge.s32.totalorder %s36_s8, 2 }
  0x17   : > { %4725 = sst [smem:[#allocation21_spill]] %s2945_s30  ;;  %s48_s10 = sadd.s32 1, %s2929_s26 }
  0x18   : > { %p55_p1 = scmp.ne.s32.totalorder %s2929_s26, %s2925_s25  ;;  %p56_p2 = scmp.eq.s32.totalorder %s2949_s7, 0 }
  0x19   : > { %s4938_s8 = smov (%p37_p0, %s36_s8), 0  ;;  %s4940_s9 = smov (!%p37_p0, %s39_s9), %s2945_s30 }
  0x1a   : > { %4726 = sst [smem:[#allocation22_spill]] %s4938_s8  ;;  %s3069_s11 = ssub.s32 %s2941_s29, %s4938_s8 }
  0x1b   : > { %p3076_p3 = por %p56_p2, %p55_p1  ;;  %p41_p4 = scmp.ge.s32.totalorder %s4940_s9, 2 }
  0x1c   : > { %p93_p5 = scmp.eq.s32.totalorder %s3069_s11, 0  ;;  %p2553_p6 = scmp.lt.s32.totalorder %s2949_s7, 4 }
  0x1d   : > { %s4942_s9 = smov (%p41_p4, %s4940_s9), 0  ;;  %s255_s13 = sand.u32 1, %s2949_s7  }
  0x1e   : > { %4728 = sst [smem:[#allocation23_spill]] %s4942_s9  ;;  %s257_s14 = sand.u32 1, %s2929_s26  }
  0x1f   : > { %s43_s15 = ssub.s32 %s2945_s30, %s4942_s9  ;;  %s2476_s17 = sshll.u32 %s257_s14, 10 }
  0x20   : > { %s45_s16 = sor.u32 %s3069_s11, %s43_s15  ;;  %s2509_s18 = sshll.u32 %s2941_s29, 7 }
  0x21   : > { %p46_p7 = scmp.eq.s32.totalorder %s45_s16, 0  ;;  %s2479_s19 = sshll.u32 %s2945_s30, 8 }
  0x22   : > { %s266_s8 = sadd.s32 %s2509_s18, %s2479_s19  ;;  %s259_s6 = scalar_lea.vmem [#allocation2], %s2476_s17 }
  0x23   : > { %s3092_s20 = scalar_select %p46_p7, %s2929_s26, %s48_s10  }
  0x24   : > { %s269_s5 = sshll.u32 %s259_s6, 4  ;;  %s2480_s4 = sshll.u32 %s266_s8, 7  ;;  %s270_s5 = int_to_ptr.vmem [resolvable:$true] %s269_s5 }
  0x25   : > { %s4729_s0 = sld [smem:[#allocation93_spill]]  ;;  %p3101_p8 = pnand %p2553_p6, %p3076_p3 }
  0x26   : > { %s3105_s14 = scalar_lea.sflag [#allocation3], %s255_s13  ;;  %s2668_s10 = scalar_lea.vmem %s270_s5, 16384 }
  0x27   : > { %p2657_p9 = pneg %p3101_p8  ;;  %p2669_p10 = scmp.ne.s32.totalorder %s270_s5, %s2668_s10 }
  0x28   : > { %s2951_s6 = smov [#allocation2]  }
  0x29   : > { %p2671_p11 = pnand %p2669_p10, %p2657_p9  ;;  %s2673_s8 = sshll.u32 %s2951_s6, 4  ;;  %s2674_s8 = int_to_ptr.vmem [resolvable:$false] %s2673_s8 }
  0x2a   : > { %s2675_s27 = scalar_lea.vmem %s2674_s8, 32768  ;;  %p2676_p13 = scmp.lt.s32.totalorder %s270_s5, %s2674_s8 }
  0x2b   : > { %s268_s1 = scalar_lea.hbm %s4729_s0, %s2480_s4  ;;  %p2672_p12 = pneg %p2671_p11 }
  0x2c   : > { %p2677_p0 = scmp.lt.s32.totalorder %s2675_s27, %s2668_s10 }
  0x2e   : > { %p2678_p4 = por %p2677_p0, %p2676_p13 }
  0x30   : > { %p2679_p3 = pnand %p2678_p4, %p2672_p12 }
  0x32   : > { %2682 = shalt.err (!%p2679_p3)
}
  0x33   : > { %s2952_s4 = smov 512   ;;  %s2953_s28 = smov 32  }
  0x34   : > { %2535 = dma.hbm_to_vmem [thread:$0]  (!%p3101_p8), %s268_s1, 16384, %s270_s5, %s3105_s14, %s2952_s4, %s2952_s4, %s2953_s28  }
  0x35   : > { %s2510_s12 = sshll.u32 %s2941_s29, 12  ;;  %s95_s13 = sadd.s32 1, %s2917_s23 }
  0x36   : > { %p102_p7 = scmp.ne.s32.totalorder %s2917_s23, %s2913_s22  ;;  %s281_s16 = sand.u32 1, %s2917_s23  }
  0x37   : > { %s3119_s15 = scalar_select %p93_p5, %s2917_s23, %s95_s13  }
  0x38   : > { %p104_p9 = por %p102_p7, %p56_p2  ;;  %s3124_s17 = sshll.u32 %s281_s16, 8 }
  0x39   : > { %s4731_s2 = sld [smem:[#allocation95_spill]]  ;;  %s283_s5 = scalar_lea.vmem [#allocation7], %s3124_s17 }
  0x3a   : > { %p3133_p10 = pnand %p2553_p6, %p104_p9  ;;  %s290_s9 = sshll.u32 %s283_s5, 4  ;;  %s291_s9 = int_to_ptr.vmem [resolvable:$true] %s290_s9 }
  0x3b   : > { %s2696_s11 = scalar_lea.vmem %s291_s9, 4096  ;;  %s2954_s6 = smov [#allocation7]  }
  0x3c   : > { %p4619_p2 = pneg %p3133_p10  ;;  %p2697_p5 = scmp.ne.s32.totalorder %s291_s9, %s2696_s11 }
  0x3d   : > { %s2701_s8 = sshll.u32 %s2954_s6, 4  ;;  %s2702_s8 = int_to_ptr.vmem [resolvable:$false] %s2701_s8 }
  0x3e   : > { %p2699_p8 = pnand %p2697_p5, %p4619_p2  ;;  %s2703_s27 = scalar_lea.vmem %s2702_s8, 8192 }
  0x3f   : > { %s289_s10 = scalar_lea.hbm %s4731_s2, %s2510_s12  ;;  %p2704_p6 = scmp.lt.s32.totalorder %s291_s9, %s2702_s8 }
  0x40   : > { %p2700_p11 = pneg %p2699_p8  ;;  %p2705_p12 = scmp.lt.s32.totalorder %s2703_s27, %s2696_s11 }
  0x42   : > { %p2706_p13 = por %p2705_p12, %p2704_p6 }
  0x44   : > { %p2707_p0 = pnand %p2706_p13, %p2700_p11 }
  0x46   : > { %2710 = shalt.err (!%p2707_p0)
}
  0x47   : > { %s4621_s4 = smov 128   ;;  %s4622_s28 = smov 8  }
  0x48   : > { %2538 = dma.hbm_to_vmem [thread:$0]  (!%p3133_p10), %s289_s10, 4096, %s291_s9, %s3105_s14, %s4621_s4, %s4621_s4, %s4622_s28  }
  0x49   : > { %s3150_s13 = sadd.s32 4294967295, %s2949_s7   ;;  %s4620_s16 = sadd.s32 4294967294, %s2949_s7  }
  0x4a   : > { %p61_p4 = scmp.ne.s32.totalorder %s2925_s25, %s2921_s24  ;;  %p4623_p3 = scmp.eq.s32.totalorder %s3150_s13, 0 }
  0x4b   : > { %p108_p7 = scmp.ne.s32.totalorder %s2913_s22, %s2909_s21  ;;  %p160_p9 = scmp.eq.s32.totalorder %s3150_s13, 3 }
  0x4c   : > { %p166_p5 = scmp.eq.s32.totalorder %s4620_s16, 3  ;;  %p3163_p8 = por %p4623_p3, %p61_p4 }
  0x4d   : > { %p3169_p11 = por %p108_p7, %p4623_p3  ;;  %p3176_p6 = por %p160_p9, %p55_p1 }
  0x4e   : > { %p3180_p12 = por %p166_p5, %p61_p4  ;;  %p2473_p13 = scmp.ge.s32.totalorder %s2949_s7, 1 }
  0x4f   : > { %p229_p0 = scmp.lt.s32.totalorder %s2949_s7, 5  ;;  %s2957_s9 = smov [#allocation5]  }
  0x50   : > { %s4736_s21 = scalar_select %p3180_p12, 1, 0 }
  0x51   : > { %p3186_p2 = pnand %p2473_p13, %p229_p0  ;;  %s241_s11 = sshll.u32 %s2957_s9, 4  ;;  %s242_s11 = int_to_ptr.vmem [resolvable:$true] %s241_s11 }
  0x52   : > { %s304_s8 = scalar_lea.vmem [#allocation8], %s3124_s17  ;;  %s4739_s3 = sld [smem:[#allocation96_spill]] }
  0x53   : > { %p2528_p7 = pneg %p3186_p2  ;;  %s311_s27 = sshll.u32 %s304_s8, 4  ;;  %s3206_s27 = int_to_ptr.vmem [resolvable:$true] %s311_s27 }
  0x54   : > { %s2722_s9 = scalar_lea.vmem %s242_s11, 24576  ;;  %p2730_p0 = scmp.lt.s32.totalorder %s242_s11, %s242_s11 }
  0x55   : > { %p3194_p1 = pnand %p2528_p7, %p4623_p3  ;;  %p2723_p9 = scmp.ne.s32.totalorder %s242_s11, %s2722_s9 }
  0x56   : > { %p2731_p7 = scmp.lt.s32.totalorder %s2722_s9, %s2722_s9 }
  0x57   : > { %p2713_p4 = pneg %p3194_p1 }
  0x58   : > { %s3204_s28 = scalar_lea.hbm %s4739_s3, %s2510_s12  ;;  %p2732_p3 = por %p2731_p7, %p2730_p0 }
  0x59   : > { %p2725_p5 = pnand %p2723_p9, %p2713_p4 }
  0x5b   : > { %p2726_p13 = pneg %p2725_p5 }
  0x5d   : > { %p2733_p12 = pnand %p2732_p3, %p2726_p13 }
  0x5f   : > { %2736 = shalt.err (!%p2733_p12)
}
  0x60   : > { %s2958_s17 = smov 384   ;;  %s2959_s12 = smov 24  }
  0x61   : > { %s4740_s8 = sld [smem:[#allocation94_spill]]  ;;  %s2750_s0 = scalar_lea.vmem %s3206_s27, 4096 }
  0x62   : > { %p2751_p4 = scmp.ne.s32.totalorder %s3206_s27, %s2750_s0  ;;  %p4741_p9 = pneg %p3133_p10 }
  0x63   : > { %s2960_s9 = smov [#allocation8]  }
  0x64   : > { %p2753_p5 = pnand %p2751_p4, %p4741_p9  ;;  %s2755_s2 = sshll.u32 %s2960_s9, 4  ;;  %s2756_s2 = int_to_ptr.vmem [resolvable:$false] %s2755_s2 }
  0x65   : > { %s2757_s3 = scalar_lea.vmem %s2756_s2, 8192  ;;  %p2758_p3 = scmp.lt.s32.totalorder %s3206_s27, %s2756_s2 }
  0x66   : > { %p2754_p0 = pneg %p2753_p5  ;;  %p2759_p12 = scmp.lt.s32.totalorder %s2757_s3, %s2750_s0 }
  0x67   : > { %2531 = dma.hbm_to_vmem [thread:$0]  (!%p3194_p1), %s4740_s8, 24576, %s242_s11, [#allocation6], %s2958_s17, %s2958_s17, %s2959_s12  }
  0x68   : > { %p2760_p13 = por %p2759_p12, %p2758_p3 }
  0x6a   : > { %p2761_p7 = pnand %p2760_p13, %p2754_p0 }
  0x6c   : > { %2764 = shalt.err (!%p2761_p7)
}
  0x6d   : > { %s4742_s6 = smov 8   ;;  %s4743_s4 = smov 128  }
  0x6e   : > { %2541 = dma.hbm_to_vmem [thread:$0]  (!%p3133_p10), %s3204_s28, 4096, %s3206_s27, %s3105_s14, %s4743_s4, %s4743_s4, %s4742_s6  }
  0x6f   : > { %323 = sbr.rel (%p3186_p2) target bundleno = 703 (0x2bf), region = 36 }
  0x74   : > { %s4711_s0 = sand.u32 1, %s3150_s13   ;;  %s3233_s2 = sand.u32 1, %s2925_s25  }
  0x75   : > { %s2488_s3 = sshll.u32 %s3233_s2, 10  ;;  %s326_s1 = scalar_lea.sflag [#allocation3], %s4711_s0 }
  0x76   : > { %s3238_s11 = scalar_lea.vmem [#allocation2], %s2488_s3 }
  0x77   : > { %2888 = dma.done.wait (%p3163_p8), %s326_s1, 16384  }
  0x78   : > { %2890 = vsyncadd (%p3163_p8), %s326_s1, 4294950912  ;;  %p4744_p10 = scmp.eq.s32.totalorder %s3150_s13, 0 }
  0x7a   : > { %2892 = dma.done.wait (%p4744_p10), [#allocation6], 24576   ;;  %p4745_p2 = pmov %p4744_p10 }
  0x7b   : > { %s340_s14 = sand.u32 1, %s2913_s22  }
  0x7c   : > { %2894 = vsyncadd (%p4745_p2), [#allocation6], 4294942720  ;;  %s3249_s28 = sshll.u32 %s340_s14, 8 }
  0x7d   : > { %s3252_s5 = scalar_lea.vmem [#allocation7], %s3249_s28 }
  0x7e   : > { %2896 = dma.done.wait (%p3169_p11), %s326_s1, 8192  }
  0x7f   : > { %2898 = vsyncadd (%p3169_p11), %s326_s1, 4294959104  ;;  %v580_v0 = vld [vmem:[#allocation5 + $0x170] sm:$0xff]  ;;  %v579_v2 = vld [vmem:[#allocation5 + $0x168] sm:$0xff]  ;;  %s2962_s18 = smov 64   ;;  %s4190_s19 = scalar_lea.vmem [#allocation8], %s3249_s28 }
  0x80   : > { %v676_v1 = vld [vmem:[#allocation5 + $0x470] sm:$0xff]  ;;  %726 = vmatprep.subr.mxu0 %v580_v0  ;;  %v675_v3 = vld [vmem:[#allocation5 + $0x468] sm:$0xff]  ;;  %v577_v4 = vld [vmem:[#allocation5 + $0x158] sm:$0xff]  ;;  %s4199_s27 = sshll.u32 %s3233_s2, 8  ;;  %s4913_s8 = sld [smem:[#allocation18_spill]] }
  0x81   : > { %983 = vmatprep.subr.mxu1 %v676_v1  ;;  %v673_v5 = vld [vmem:[#allocation5 + $0x458] sm:$0xff]  ;;  %727 = vmatpush1.msra.mxu0 %v579_v2  ;;  %v576_v6 = vld [vmem:[#allocation5 + $0x150] sm:$0xff]  ;;  %v574_v8 = vld [vmem:[#allocation5 + $0x140] sm:$0xff]  ;;  %s4218_s17 = scalar_lea.vmem [#allocation9], %s4199_s27  ;;  %s4229_s12 = scalar_lea.vmem [#allocation10], %s4199_s27 }
  0x82   : > { %984 = vmatpush1.msra.mxu1 %v675_v3  ;;  %v672_v7 = vld [vmem:[#allocation5 + $0x450] sm:$0xff]  ;;  %728 = vmatprep.subr.mxu0 %v577_v4  ;;  %v670_v9 = vld [vmem:[#allocation5 + $0x440] sm:$0xff]  ;;  %v573_v10 = vld [vmem:[#allocation5 + $0x138] sm:$0xff]  ;;  %s4247_s16 = scalar_lea.vmem [#allocation12], %s4199_s27  ;;  %s4914_s9 = sld [smem:[#allocation19_spill]] }
  0x83   : > { %985 = vmatprep.subr.mxu1 %v673_v5  ;;  %v669_v11 = vld [vmem:[#allocation5 + $0x438] sm:$0xff]  ;;  %729 = vmatpush1.msra.mxu0 %v576_v6  ;;  %v571_v12 = vld [vmem:[#allocation5 + $0x128] sm:$0xff]  ;;  %v570_v14 = vld [vmem:[#allocation5 + $0x120] sm:$0xff]  ;;  %s2246_s14 = sshll.u32 %s4229_s12, 4  ;;  %s4475_s14 = int_to_ptr.vmem [resolvable:$true] %s2246_s14 }
  0x84   : > { %986 = vmatpush1.msra.mxu1 %v672_v7  ;;  %v667_v13 = vld [vmem:[#allocation5 + $0x428] sm:$0xff]  ;;  %730 = vmatprep.subr.mxu0 %v574_v8  ;;  %v666_v15 = vld [vmem:[#allocation5 + $0x420] sm:$0xff]  ;;  %v568_v16 = vld [vmem:[#allocation5 + $0x110] sm:$0xff] }
  0x85   : > { %987 = vmatprep.subr.mxu1 %v670_v9  ;;  %731 = vmatpush1.msra.mxu0 %v573_v10  ;;  %v664_v17 = vld [vmem:[#allocation5 + $0x410] sm:$0xff]  ;;  %v567_v18 = vld [vmem:[#allocation5 + $0x108] sm:$0xff]  ;;  %v565_v20 = vld [vmem:[#allocation5 + $0xf8] sm:$0xff] }
  0x86   : > { %988 = vmatpush1.msra.mxu1 %v669_v11  ;;  %732 = vmatprep.subr.mxu0 %v571_v12  ;;  %v663_v19 = vld [vmem:[#allocation5 + $0x408] sm:$0xff]  ;;  %v661_v21 = vld [vmem:[#allocation5 + $0x3f8] sm:$0xff]  ;;  %v564_v22 = vld [vmem:[#allocation5 + $0xf0] sm:$0xff]  ;;  %s2498_s6 = sshll.u32 %s4913_s8, 5 }
  0x87   : > { %989 = vmatprep.subr.mxu1 %v667_v13  ;;  %733 = vmatpush1.msra.mxu0 %v570_v14  ;;  %v660_v23 = vld [vmem:[#allocation5 + $0x3f0] sm:$0xff]  ;;  %v562_v24 = vld [vmem:[#allocation5 + $0xe0] sm:$0xff]  ;;  %v561_v26 = vld [vmem:[#allocation5 + $0xd8] sm:$0xff] }
  0x88   : > { %990 = vmatpush1.msra.mxu1 %v666_v15  ;;  %734 = vmatprep.subr.mxu0 %v568_v16  ;;  %v658_v25 = vld [vmem:[#allocation5 + $0x3e0] sm:$0xff]  ;;  %v657_v27 = vld [vmem:[#allocation5 + $0x3d8] sm:$0xff]  ;;  %v559_v28 = vld [vmem:[#allocation5 + $0xc8] sm:$0xff]  ;;  %s2499_s4 = sshll.u32 %s4914_s9, 6 }
  0x89   : > { %991 = vmatprep.subr.mxu1 %v664_v17  ;;  %735 = vmatpush1.msra.mxu0 %v567_v18  ;;  %v655_v29 = vld [vmem:[#allocation5 + $0x3c8] sm:$0xff]  ;;  %v558_v30 = vld [vmem:[#allocation5 + $0xc0] sm:$0xff]  ;;  %v556_v32 = vld [vmem:[#allocation5 + $0xb0] sm:$0xff]  ;;  %s2225_s3 = sadd.s32 %s2499_s4, %s2498_s6  ;;  %s4920_s6 = sld [smem:[#allocation98_spill]] }
  0x8a   : > { %992 = vmatpush1.msra.mxu1 %v663_v19  ;;  %736 = vmatprep.subr.mxu0 %v565_v20  ;;  %v654_v31 = vld [vmem:[#allocation5 + $0x3c0] sm:$0xff]  ;;  %v652_v33 = vld [vmem:[#allocation5 + $0x3b0] sm:$0xff]  ;;  %v555_v34 = vld [vmem:[#allocation5 + $0xa8] sm:$0xff]  ;;  %s4452_s1 = sshll.u32 %s2225_s3, 7 }
  0x8b   : > { %993 = vmatprep.subr.mxu1 %v661_v21  ;;  %737 = vmatpush1.msra.mxu0 %v564_v22  ;;  %v651_v35 = vld [vmem:[#allocation5 + $0x3a8] sm:$0xff]  ;;  %v553_v36 = vld [vmem:[#allocation5 + $0x98] sm:$0xff]  ;;  %v552_v38 = vld [vmem:[#allocation5 + $0x90] sm:$0xff] }
  0x8c   : > { %994 = vmatpush1.msra.mxu1 %v660_v23  ;;  %738 = vmatprep.subr.mxu0 %v562_v24  ;;  %v649_v37 = vld [vmem:[#allocation5 + $0x398] sm:$0xff]  ;;  %v648_v39 = vld [vmem:[#allocation5 + $0x390] sm:$0xff]  ;;  %v550_v40 = vld [vmem:[#allocation5 + $0x80] sm:$0xff] }
  0x8d   : > { %995 = vmatprep.subr.mxu1 %v658_v25  ;;  %739 = vmatpush1.msra.mxu0 %v561_v26  ;;  %v646_v41 = vld [vmem:[#allocation5 + $0x380] sm:$0xff]  ;;  %v549_v42 = vld [vmem:[#allocation5 + $0x78] sm:$0xff]  ;;  %v547_v44 = vld [vmem:[#allocation5 + $0x68] sm:$0xff] }
  0x8e   : > { %996 = vmatpush1.msra.mxu1 %v657_v27  ;;  %740 = vmatprep.subr.mxu0 %v559_v28  ;;  %v645_v43 = vld [vmem:[#allocation5 + $0x378] sm:$0xff]  ;;  %v643_v45 = vld [vmem:[#allocation5 + $0x368] sm:$0xff]  ;;  %v546_v46 = vld [vmem:[#allocation5 + $0x60] sm:$0xff] }
  0x8f   : > { %997 = vmatprep.subr.mxu1 %v655_v29  ;;  %741 = vmatpush1.msra.mxu0 %v558_v30  ;;  %v642_v47 = vld [vmem:[#allocation5 + $0x360] sm:$0xff]  ;;  %v544_v48 = vld [vmem:[#allocation5 + $0x50] sm:$0xff]  ;;  %v543_v50 = vld [vmem:[#allocation5 + $0x48] sm:$0xff]  ;;  %s4473_s4 = scalar_lea.hbm %s4920_s6, %s4452_s1 }
  0x90   : > { %998 = vmatpush1.msra.mxu1 %v654_v31  ;;  %742 = vmatprep.subr.mxu0 %v556_v32  ;;  %v640_v49 = vld [vmem:[#allocation5 + $0x350] sm:$0xff]  ;;  %v639_v51 = vld [vmem:[#allocation5 + $0x348] sm:$0xff]  ;;  %v541_v52 = vld [vmem:[#allocation5 + $0x38] sm:$0xff] }
  0x91   : > { %999 = vmatprep.subr.mxu1 %v652_v33  ;;  %743 = vmatpush1.msra.mxu0 %v555_v34  ;;  %v637_v53 = vld [vmem:[#allocation5 + $0x338] sm:$0xff]  ;;  %v540_v54 = vld [vmem:[#allocation5 + $0x30] sm:$0xff]  ;;  %v538_v56 = vld [vmem:[#allocation5 + $0x20] sm:$0xff] }
  0x92   : > { %1000 = vmatpush1.msra.mxu1 %v651_v35  ;;  %744 = vmatprep.subr.mxu0 %v553_v36  ;;  %v636_v55 = vld [vmem:[#allocation5 + $0x330] sm:$0xff]  ;;  %v634_v57 = vld [vmem:[#allocation5 + $0x320] sm:$0xff]  ;;  %v537_v58 = vld [vmem:[#allocation5 + $0x18] sm:$0xff] }
  0x93   : > { %1001 = vmatprep.subr.mxu1 %v649_v37  ;;  %745 = vmatpush1.msra.mxu0 %v552_v38  ;;  %v633_v59 = vld [vmem:[#allocation5 + $0x318] sm:$0xff]  ;;  %v535_v60 = vld [vmem:[#allocation5 + $0x8] sm:$0xff]  ;;  %v534_v62 = vld [vmem:[#allocation5] sm:$0xff] }
  0x94   : > { %1002 = vmatpush1.msra.mxu1 %v648_v39  ;;  %746 = vmatprep.subr.mxu0 %v550_v40  ;;  %v631_v61 = vld [vmem:[#allocation5 + $0x308] sm:$0xff]  ;;  %v630_v63 = vld [vmem:[#allocation5 + $0x300] sm:$0xff]  ;;  %v628_v0 = vld [vmem:[#allocation5 + $0x2f0] sm:$0xff] }
  0x95   : > { %1003 = vmatprep.subr.mxu1 %v646_v41  ;;  %747 = vmatpush1.msra.mxu0 %v549_v42  ;;  %v724_v1 = vld [vmem:[#allocation5 + $0x5f0] sm:$0xff]  ;;  %v627_v2 = vld [vmem:[#allocation5 + $0x2e8] sm:$0xff]  ;;  %v625_v4 = vld [vmem:[#allocation5 + $0x2d8] sm:$0xff] }
  0x96   : > { %1004 = vmatpush1.msra.mxu1 %v645_v43  ;;  %748 = vmatprep.subr.mxu0 %v547_v44  ;;  %v723_v3 = vld [vmem:[#allocation5 + $0x5e8] sm:$0xff]  ;;  %v721_v5 = vld [vmem:[#allocation5 + $0x5d8] sm:$0xff]  ;;  %v624_v6 = vld [vmem:[#allocation5 + $0x2d0] sm:$0xff] }
  0x97   : > { %1005 = vmatprep.subr.mxu1 %v643_v45  ;;  %749 = vmatpush1.msra.mxu0 %v546_v46  ;;  %v720_v7 = vld [vmem:[#allocation5 + $0x5d0] sm:$0xff]  ;;  %v622_v8 = vld [vmem:[#allocation5 + $0x2c0] sm:$0xff]  ;;  %v621_v10 = vld [vmem:[#allocation5 + $0x2b8] sm:$0xff] }
  0x98   : > { %1006 = vmatpush1.msra.mxu1 %v642_v47  ;;  %750 = vmatprep.subr.mxu0 %v544_v48  ;;  %v718_v9 = vld [vmem:[#allocation5 + $0x5c0] sm:$0xff]  ;;  %v717_v11 = vld [vmem:[#allocation5 + $0x5b8] sm:$0xff]  ;;  %v619_v12 = vld [vmem:[#allocation5 + $0x2a8] sm:$0xff] }
  0x99   : > { %1007 = vmatprep.subr.mxu1 %v640_v49  ;;  %751 = vmatpush1.msra.mxu0 %v543_v50  ;;  %v715_v13 = vld [vmem:[#allocation5 + $0x5a8] sm:$0xff]  ;;  %v618_v14 = vld [vmem:[#allocation5 + $0x2a0] sm:$0xff]  ;;  %v616_v16 = vld [vmem:[#allocation5 + $0x290] sm:$0xff] }
  0x9a   : > { %1008 = vmatpush1.msra.mxu1 %v639_v51  ;;  %752 = vmatprep.subr.mxu0 %v541_v52  ;;  %v714_v15 = vld [vmem:[#allocation5 + $0x5a0] sm:$0xff]  ;;  %v712_v17 = vld [vmem:[#allocation5 + $0x590] sm:$0xff]  ;;  %v615_v18 = vld [vmem:[#allocation5 + $0x288] sm:$0xff] }
  0x9b   : > { %1009 = vmatprep.subr.mxu1 %v637_v53  ;;  %753 = vmatpush1.msra.mxu0 %v540_v54  ;;  %v711_v19 = vld [vmem:[#allocation5 + $0x588] sm:$0xff]  ;;  %v613_v20 = vld [vmem:[#allocation5 + $0x278] sm:$0xff]  ;;  %v612_v22 = vld [vmem:[#allocation5 + $0x270] sm:$0xff] }
  0x9c   : > { %1010 = vmatpush1.msra.mxu1 %v636_v55  ;;  %754 = vmatprep.subr.mxu0 %v538_v56  ;;  %v709_v21 = vld [vmem:[#allocation5 + $0x578] sm:$0xff]  ;;  %v708_v23 = vld [vmem:[#allocation5 + $0x570] sm:$0xff]  ;;  %v610_v24 = vld [vmem:[#allocation5 + $0x260] sm:$0xff] }
  0x9d   : > { %1011 = vmatprep.subr.mxu1 %v634_v57  ;;  %755 = vmatpush1.msra.mxu0 %v537_v58  ;;  %v706_v25 = vld [vmem:[#allocation5 + $0x560] sm:$0xff]  ;;  %v609_v26 = vld [vmem:[#allocation5 + $0x258] sm:$0xff]  ;;  %v607_v28 = vld [vmem:[#allocation5 + $0x248] sm:$0xff] }
  0x9e   : > { %1012 = vmatpush1.msra.mxu1 %v633_v59  ;;  %756 = vmatprep.subr.mxu0 %v535_v60  ;;  %v705_v27 = vld [vmem:[#allocation5 + $0x558] sm:$0xff]  ;;  %v703_v29 = vld [vmem:[#allocation5 + $0x548] sm:$0xff]  ;;  %v606_v30 = vld [vmem:[#allocation5 + $0x240] sm:$0xff] }
  0x9f   : > { %1013 = vmatprep.subr.mxu1 %v631_v61  ;;  %757 = vmatpush1.msra.mxu0 %v534_v62  ;;  %v702_v31 = vld [vmem:[#allocation5 + $0x540] sm:$0xff]  ;;  %v604_v32 = vld [vmem:[#allocation5 + $0x230] sm:$0xff]  ;;  %v603_v34 = vld [vmem:[#allocation5 + $0x228] sm:$0xff] }
  0xa0   : > { %1014 = vmatpush1.msra.mxu1 %v630_v63  ;;  %758 = vmatprep.subr.mxu0 %v628_v0  ;;  %v700_v33 = vld [vmem:[#allocation5 + $0x530] sm:$0xff]  ;;  %v699_v35 = vld [vmem:[#allocation5 + $0x528] sm:$0xff]  ;;  %v601_v36 = vld [vmem:[#allocation5 + $0x218] sm:$0xff] }
  0xa1   : > { %1015 = vmatprep.subr.mxu1 %v724_v1  ;;  %759 = vmatpush2.msra.mxu0 %v627_v2  ;;  %v697_v37 = vld [vmem:[#allocation5 + $0x518] sm:$0xff]  ;;  %v600_v38 = vld [vmem:[#allocation5 + $0x210] sm:$0xff]  ;;  %v598_v40 = vld [vmem:[#allocation5 + $0x200] sm:$0xff] }
  0xa2   : > { %1016 = vmatpush2.msra.mxu1 %v723_v3  ;;  %760 = vmatprep.subr.mxu0 %v625_v4  ;;  %v696_v39 = vld [vmem:[#allocation5 + $0x510] sm:$0xff]  ;;  %v694_v41 = vld [vmem:[#allocation5 + $0x500] sm:$0xff]  ;;  %v597_v42 = vld [vmem:[#allocation5 + $0x1f8] sm:$0xff] }
  0xa3   : > { %1017 = vmatprep.subr.mxu1 %v721_v5  ;;  %761 = vmatpush2.msra.mxu0 %v624_v6  ;;  %v693_v43 = vld [vmem:[#allocation5 + $0x4f8] sm:$0xff]  ;;  %v595_v44 = vld [vmem:[#allocation5 + $0x1e8] sm:$0xff]  ;;  %v594_v46 = vld [vmem:[#allocation5 + $0x1e0] sm:$0xff] }
  0xa4   : > { %1018 = vmatpush2.msra.mxu1 %v720_v7  ;;  %762 = vmatprep.subr.mxu0 %v622_v8  ;;  %v691_v45 = vld [vmem:[#allocation5 + $0x4e8] sm:$0xff]  ;;  %v690_v47 = vld [vmem:[#allocation5 + $0x4e0] sm:$0xff]  ;;  %v592_v48 = vld [vmem:[#allocation5 + $0x1d0] sm:$0xff]  ;;  %v4625_v8 = vmov 0.0  }
  0xa5   : > { %1019 = vmatprep.subr.mxu1 %v718_v9  ;;  %763 = vmatpush2.msra.mxu0 %v621_v10  ;;  %v688_v49 = vld [vmem:[#allocation5 + $0x4d0] sm:$0xff]  ;;  %v591_v50 = vld [vmem:[#allocation5 + $0x1c8] sm:$0xff]  ;;  %v589_v52 = vld [vmem:[#allocation5 + $0x1b8] sm:$0xff] }
  0xa6   : > { %1020 = vmatpush2.msra.mxu1 %v717_v11  ;;  %764 = vmatprep.subr.mxu0 %v619_v12  ;;  %v687_v51 = vld [vmem:[#allocation5 + $0x4c8] sm:$0xff]  ;;  %v685_v53 = vld [vmem:[#allocation5 + $0x4b8] sm:$0xff]  ;;  %v588_v54 = vld [vmem:[#allocation5 + $0x1b0] sm:$0xff] }
  0xa7   : > { %1021 = vmatprep.subr.mxu1 %v715_v13  ;;  %765 = vmatpush2.msra.mxu0 %v618_v14  ;;  %v684_v55 = vld [vmem:[#allocation5 + $0x4b0] sm:$0xff]  ;;  %v586_v56 = vld [vmem:[#allocation5 + $0x1a0] sm:$0xff]  ;;  %v585_v58 = vld [vmem:[#allocation5 + $0x198] sm:$0xff] }
  0xa8   : > { %1022 = vmatpush2.msra.mxu1 %v714_v15  ;;  %766 = vmatprep.subr.mxu0 %v616_v16  ;;  %v682_v57 = vld [vmem:[#allocation5 + $0x4a0] sm:$0xff]  ;;  %v681_v59 = vld [vmem:[#allocation5 + $0x498] sm:$0xff]  ;;  %v583_v60 = vld [vmem:[#allocation5 + $0x188] sm:$0xff] }
  0xa9   : > { %1023 = vmatprep.subr.mxu1 %v712_v17  ;;  %767 = vmatpush2.msra.mxu0 %v615_v18  ;;  %v679_v61 = vld [vmem:[#allocation5 + $0x488] sm:$0xff]  ;;  %v582_v62 = vld [vmem:[#allocation5 + $0x180] sm:$0xff]  ;;  %v3262_v1 = vld [vmem:[%s3238_s11 + $0x18] sm:$0xff] }
  0xaa   : > { %1024 = vmatpush2.msra.mxu1 %v711_v19  ;;  %768 = vmatprep.subr.mxu0 %v613_v20  ;;  %v3259_v63 = vld [vmem:[%s3238_s11 + $0x8] sm:$0xff]  ;;  %v678_v0 = vld [vmem:[#allocation5 + $0x480] sm:$0xff]  ;;  %v3268_v3 = vld [vmem:[%s3238_s11 + $0x10] sm:$0xff] }
  0xab   : > { %1025 = vmatprep.subr.mxu1 %v709_v21  ;;  %769 = vmatpush2.msra.mxu0 %v612_v22  ;;  %v3265_v2 = vld [vmem:[%s3238_s11] sm:$0xff]  ;;  %v581_v4 = vld [vmem:[#allocation5 + $0x178] sm:$0xff]  ;;  %v3275_v6 = vld [vmem:[%s3238_s11 + $0x28] sm:$0xff] }
  0xac   : > { %1026 = vmatpush2.msra.mxu1 %v708_v23  ;;  %770 = vmatprep.subr.mxu0 %v610_v24  ;;  %v677_v5 = vld [vmem:[#allocation5 + $0x478] sm:$0xff]  ;;  %v3283_v9 = vld [vmem:[%s3238_s11 + $0x20] sm:$0xff]  ;;  %v3286_v10 = vld [vmem:[%s3238_s11 + $0x30] sm:$0xff] }
  0xad   : > { %1027 = vmatprep.subr.mxu1 %v706_v25  ;;  %771 = vmatpush2.msra.mxu0 %v609_v26  ;;  %v3278_v7 = vld [vmem:[%s3238_s11 + $0x38] sm:$0xff]  ;;  %v578_v11 = vld [vmem:[#allocation5 + $0x160] sm:$0xff]  ;;  %v3293_v13 = vld [vmem:[%s3238_s11 + $0x48] sm:$0xff] }
  0xae   : > { %1028 = vmatpush2.msra.mxu1 %v705_v27  ;;  %772 = vmatprep.subr.mxu0 %v607_v28  ;;  %v674_v12 = vld [vmem:[#allocation5 + $0x460] sm:$0xff]  ;;  %v3296_v14 = vld [vmem:[%s3238_s11 + $0x58] sm:$0xff]  ;;  %v3304_v16 = vld [vmem:[%s3238_s11 + $0x50] sm:$0xff] }
  0xaf   : > { %1029 = vmatprep.subr.mxu1 %v703_v29  ;;  %773 = vmatpush2.msra.mxu0 %v606_v30  ;;  %v3301_v15 = vld [vmem:[%s3238_s11 + $0x40] sm:$0xff]  ;;  %v575_v17 = vld [vmem:[#allocation5 + $0x148] sm:$0xff]  ;;  %v3314_v20 = vld [vmem:[%s3238_s11 + $0x78] sm:$0xff] }
  0xb0   : > { %1030 = vmatpush2.msra.mxu1 %v702_v31  ;;  %774 = vmatprep.subr.mxu0 %v604_v32  ;;  %v671_v18 = vld [vmem:[#allocation5 + $0x448] sm:$0xff]  ;;  %v3319_v21 = vld [vmem:[%s3238_s11 + $0x60] sm:$0xff]  ;;  %v3322_v22 = vld [vmem:[%s3238_s11 + $0x70] sm:$0xff] }
  0xb1   : > { %1031 = vmatprep.subr.mxu1 %v700_v33  ;;  %775 = vmatpush2.msra.mxu0 %v603_v34  ;;  %v3311_v19 = vld [vmem:[%s3238_s11 + $0x68] sm:$0xff]  ;;  %v572_v23 = vld [vmem:[#allocation5 + $0x130] sm:$0xff]  ;;  %v3332_v26 = vld [vmem:[%s3238_s11 + $0x98] sm:$0xff] }
  0xb2   : > { %1032 = vmatpush2.msra.mxu1 %v699_v35  ;;  %776 = vmatprep.subr.mxu0 %v601_v36  ;;  %v668_v24 = vld [vmem:[#allocation5 + $0x430] sm:$0xff]  ;;  %v3329_v25 = vld [vmem:[%s3238_s11 + $0x88] sm:$0xff]  ;;  %v3337_v27 = vld [vmem:[%s3238_s11 + $0x80] sm:$0xff] }
  0xb3   : > { %1033 = vmatprep.subr.mxu1 %v697_v37  ;;  %777 = vmatpush2.msra.mxu0 %v600_v38  ;;  %v3340_v28 = vld [vmem:[%s3238_s11 + $0x90] sm:$0xff]  ;;  %v569_v29 = vld [vmem:[#allocation5 + $0x118] sm:$0xff]  ;;  %v3347_v31 = vld [vmem:[%s3238_s11 + $0xa8] sm:$0xff] }
  0xb4   : > { %1034 = vmatpush2.msra.mxu1 %v696_v39  ;;  %778 = vmatprep.subr.mxu0 %v598_v40  ;;  %v665_v30 = vld [vmem:[#allocation5 + $0x418] sm:$0xff]  ;;  %v3355_v33 = vld [vmem:[%s3238_s11 + $0xa0] sm:$0xff]  ;;  %v3358_v34 = vld [vmem:[%s3238_s11 + $0xb0] sm:$0xff] }
  0xb5   : > { %1035 = vmatprep.subr.mxu1 %v694_v41  ;;  %779 = vmatpush2.msra.mxu0 %v597_v42  ;;  %v3350_v32 = vld [vmem:[%s3238_s11 + $0xb8] sm:$0xff]  ;;  %v566_v35 = vld [vmem:[#allocation5 + $0x100] sm:$0xff]  ;;  %v3365_v37 = vld [vmem:[%s3238_s11 + $0xc8] sm:$0xff] }
  0xb6   : > { %1036 = vmatpush2.msra.mxu1 %v693_v43  ;;  %780 = vmatprep.subr.mxu0 %v595_v44  ;;  %v662_v36 = vld [vmem:[#allocation5 + $0x400] sm:$0xff]  ;;  %v3368_v38 = vld [vmem:[%s3238_s11 + $0xd8] sm:$0xff]  ;;  %v3376_v40 = vld [vmem:[%s3238_s11 + $0xd0] sm:$0xff] }
  0xb7   : > { %1037 = vmatprep.subr.mxu1 %v691_v45  ;;  %781 = vmatpush2.msra.mxu0 %v594_v46  ;;  %v3373_v39 = vld [vmem:[%s3238_s11 + $0xc0] sm:$0xff]  ;;  %v563_v41 = vld [vmem:[#allocation5 + $0xe8] sm:$0xff]  ;;  %v3386_v44 = vld [vmem:[%s3238_s11 + $0xf8] sm:$0xff] }
  0xb8   : > { %1038 = vmatpush2.msra.mxu1 %v690_v47  ;;  %782 = vmatprep.subr.mxu0 %v592_v48  ;;  %v659_v42 = vld [vmem:[#allocation5 + $0x3e8] sm:$0xff]  ;;  %v3391_v45 = vld [vmem:[%s3238_s11 + $0xe0] sm:$0xff]  ;;  %v3394_v46 = vld [vmem:[%s3238_s11 + $0xf0] sm:$0xff] }
  0xb9   : > { %1039 = vmatprep.subr.mxu1 %v688_v49  ;;  %783 = vmatpush2.msra.mxu0 %v591_v50  ;;  %v3383_v43 = vld [vmem:[%s3238_s11 + $0xe8] sm:$0xff]  ;;  %v560_v47 = vld [vmem:[#allocation5 + $0xd0] sm:$0xff]  ;;  %v3404_v50 = vld [vmem:[%s3238_s11 + $0x118] sm:$0xff] }
  0xba   : > { %1040 = vmatpush2.msra.mxu1 %v687_v51  ;;  %784 = vmatprep.subr.mxu0 %v589_v52  ;;  %v656_v48 = vld [vmem:[#allocation5 + $0x3d0] sm:$0xff]  ;;  %v3401_v49 = vld [vmem:[%s3238_s11 + $0x108] sm:$0xff]  ;;  %v3409_v51 = vld [vmem:[%s3238_s11 + $0x100] sm:$0xff] }
  0xbb   : > { %1041 = vmatprep.subr.mxu1 %v685_v53  ;;  %785 = vmatpush2.msra.mxu0 %v588_v54  ;;  %v3412_v52 = vld [vmem:[%s3238_s11 + $0x110] sm:$0xff]  ;;  %v557_v53 = vld [vmem:[#allocation5 + $0xb8] sm:$0xff] }
  0xbc   : > { %1042 = vmatpush2.msra.mxu1 %v684_v55  ;;  %786 = vmatprep.subr.mxu0 %v586_v56  ;;  %v653_v54 = vld [vmem:[#allocation5 + $0x3b8] sm:$0xff]  ;;  %v3419_v55 = vld [vmem:[%s3238_s11 + $0x128] sm:$0xff] }
  0xbd   : > { %1043 = vmatprep.subr.mxu1 %v682_v57  ;;  %787 = vmatpush2.msra.mxu0 %v585_v58  ;;  %v3422_v56 = vld [vmem:[%s3238_s11 + $0x138] sm:$0xff]  ;;  %v3427_v57 = vld [vmem:[%s3238_s11 + $0x120] sm:$0xff]  ;;  %v3430_v58 = vld [vmem:[%s3238_s11 + $0x130] sm:$0xff] }
  0xbe   : > { %1044 = vmatpush2.msra.mxu1 %v681_v59  ;;  %788 = vmatprep.subr.mxu0 %v583_v60  ;;  %v554_v59 = vld [vmem:[#allocation5 + $0xa0] sm:$0xff] }
  0xbf   : > { %1045 = vmatprep.subr.mxu1 %v679_v61  ;;  %789 = vmatpush2.msra.mxu0 %v582_v62  ;;  %v650_v60 = vld [vmem:[#allocation5 + $0x3a0] sm:$0xff]  ;;  %v3437_v61 = vld [vmem:[%s3238_s11 + $0x148] sm:$0xff]  ;;  %v3440_v62 = vld [vmem:[%s3238_s11 + $0x158] sm:$0xff] }
  0xc0   : > { %790 = vmatprep.mubr.f32.mxu0 %v3259_v63  ;;  %1046 = vmatpush2.msra.mxu1 %v678_v0  ;;  %v3445_v0 = vld [vmem:[%s3238_s11 + $0x140] sm:$0xff] }
  0xc1   : > { %1047 = vmatprep.mubr.f32.mxu1 %v3262_v1  ;;  %791 = vmatmul.mubr.f32.vlgmr.msra.gmra.mxu0 %v3265_v2 }
  0xc2   : > { %1048 = vmatmul.mubr.f32.vlgmr.msra.gmra.mxu1 %v3268_v3  ;;  %1240 = vmatprep.subr.mxu0 %v4625_v8 }
  0xc3   : > { %1465 = vmatprep.subr.mxu1 %v4625_v8  ;;  %1241 = vmatpush1.msra.mxu0 %v581_v4  ;;  %v3448_v4 = vld [vmem:[%s3238_s11 + $0x150] sm:$0xff] }
  0xc4   : > { %1466 = vmatpush1.msra.mxu1 %v677_v5  ;;  %796 = vmatprep.mubr.f32.mxu0 %v3275_v6  ;;  %v551_v5 = vld [vmem:[#allocation5 + $0x88] sm:$0xff] }
  0xc5   : > { %1053 = vmatprep.mubr.f32.mxu1 %v3278_v7  ;;  %797 = vmatmul.mubr.f32.gmra.mxu0 %v3283_v9 }
  0xc6   : > { %1054 = vmatmul.mubr.f32.gmra.mxu1 %v3286_v10  ;;  %1242 = vmatprep.subr.mxu0 %v4625_v8 }
  0xc7   : > { %1467 = vmatprep.subr.mxu1 %v4625_v8  ;;  %1243 = vmatpush1.msra.mxu0 %v578_v11  ;;  %v647_v11 = vld [vmem:[#allocation5 + $0x388] sm:$0xff] }
  0xc8   : > { %1468 = vmatpush1.msra.mxu1 %v674_v12  ;;  %802 = vmatprep.mubr.f32.mxu0 %v3293_v13  ;;  %v3455_v12 = vld [vmem:[%s3238_s11 + $0x168] sm:$0xff] }
  0xc9   : > { %1059 = vmatprep.mubr.f32.mxu1 %v3296_v14  ;;  %803 = vmatmul.mubr.f32.gmra.mxu0 %v3301_v15 }
  0xca   : > { %1060 = vmatmul.mubr.f32.gmra.mxu1 %v3304_v16  ;;  %1244 = vmatprep.subr.mxu0 %v4625_v8 }
  0xcb   : > { %1469 = vmatprep.subr.mxu1 %v4625_v8  ;;  %1245 = vmatpush1.msra.mxu0 %v575_v17  ;;  %v3458_v17 = vld [vmem:[%s3238_s11 + $0x178] sm:$0xff] }
  0xcc   : > { %1470 = vmatpush1.msra.mxu1 %v671_v18  ;;  %808 = vmatprep.mubr.f32.mxu0 %v3311_v19  ;;  %v3463_v18 = vld [vmem:[%s3238_s11 + $0x160] sm:$0xff] }
  0xcd   : > { %1065 = vmatprep.mubr.f32.mxu1 %v3314_v20  ;;  %809 = vmatmul.mubr.f32.gmra.mxu0 %v3319_v21 }
  0xce   : > { %1066 = vmatmul.mubr.f32.gmra.mxu1 %v3322_v22  ;;  %1246 = vmatprep.subr.mxu0 %v4625_v8 }
  0xcf   : > { %1471 = vmatprep.subr.mxu1 %v4625_v8  ;;  %1247 = vmatpush1.msra.mxu0 %v572_v23  ;;  %v3466_v23 = vld [vmem:[%s3238_s11 + $0x170] sm:$0xff] }
  0xd0   : > { %1472 = vmatpush1.msra.mxu1 %v668_v24  ;;  %814 = vmatprep.mubr.f32.mxu0 %v3329_v25  ;;  %v548_v24 = vld [vmem:[#allocation5 + $0x70] sm:$0xff] }
  0xd1   : > { %1071 = vmatprep.mubr.f32.mxu1 %v3332_v26  ;;  %815 = vmatmul.mubr.f32.gmra.mxu0 %v3337_v27 }
  0xd2   : > { %1072 = vmatmul.mubr.f32.gmra.mxu1 %v3340_v28  ;;  %1248 = vmatprep.subr.mxu0 %v4625_v8 }
  0xd3   : > { %1473 = vmatprep.subr.mxu1 %v4625_v8  ;;  %1249 = vmatpush1.msra.mxu0 %v569_v29  ;;  %v644_v29 = vld [vmem:[#allocation5 + $0x370] sm:$0xff] }
  0xd4   : > { %1474 = vmatpush1.msra.mxu1 %v665_v30  ;;  %820 = vmatprep.mubr.f32.mxu0 %v3347_v31  ;;  %v3473_v30 = vld [vmem:[%s3238_s11 + $0x188] sm:$0xff] }
  0xd5   : > { %1077 = vmatprep.mubr.f32.mxu1 %v3350_v32  ;;  %821 = vmatmul.mubr.f32.gmra.mxu0 %v3355_v33 }
  0xd6   : > { %1078 = vmatmul.mubr.f32.gmra.mxu1 %v3358_v34  ;;  %1250 = vmatprep.subr.mxu0 %v4625_v8 }
  0xd7   : > { %1475 = vmatprep.subr.mxu1 %v4625_v8  ;;  %1251 = vmatpush1.msra.mxu0 %v566_v35  ;;  %v3476_v35 = vld [vmem:[%s3238_s11 + $0x198] sm:$0xff] }
  0xd8   : > { %1476 = vmatpush1.msra.mxu1 %v662_v36  ;;  %826 = vmatprep.mubr.f32.mxu0 %v3365_v37  ;;  %v3481_v36 = vld [vmem:[%s3238_s11 + $0x180] sm:$0xff] }
  0xd9   : > { %1083 = vmatprep.mubr.f32.mxu1 %v3368_v38  ;;  %827 = vmatmul.mubr.f32.gmra.mxu0 %v3373_v39 }
  0xda   : > { %1084 = vmatmul.mubr.f32.gmra.mxu1 %v3376_v40  ;;  %1252 = vmatprep.subr.mxu0 %v4625_v8 }
  0xdb   : > { %1477 = vmatprep.subr.mxu1 %v4625_v8  ;;  %1253 = vmatpush1.msra.mxu0 %v563_v41  ;;  %v3484_v41 = vld [vmem:[%s3238_s11 + $0x190] sm:$0xff] }
  0xdc   : > { %1478 = vmatpush1.msra.mxu1 %v659_v42  ;;  %832 = vmatprep.mubr.f32.mxu0 %v3383_v43  ;;  %v545_v42 = vld [vmem:[#allocation5 + $0x58] sm:$0xff] }
  0xdd   : > { %1089 = vmatprep.mubr.f32.mxu1 %v3386_v44  ;;  %833 = vmatmul.mubr.f32.gmra.mxu0 %v3391_v45 }
  0xde   : > { %1090 = vmatmul.mubr.f32.gmra.mxu1 %v3394_v46  ;;  %1254 = vmatprep.subr.mxu0 %v4625_v8 }
  0xdf   : > { %1479 = vmatprep.subr.mxu1 %v4625_v8  ;;  %1255 = vmatpush1.msra.mxu0 %v560_v47  ;;  %v641_v47 = vld [vmem:[#allocation5 + $0x358] sm:$0xff] }
  0xe0   : > { %1480 = vmatpush1.msra.mxu1 %v656_v48  ;;  %838 = vmatprep.mubr.f32.mxu0 %v3401_v49  ;;  %v3491_v48 = vld [vmem:[%s3238_s11 + $0x1a8] sm:$0xff] }
  0xe1   : > { %1095 = vmatprep.mubr.f32.mxu1 %v3404_v50  ;;  %839 = vmatmul.mubr.f32.gmra.mxu0 %v3409_v51 }
  0xe2   : > { %1096 = vmatmul.mubr.f32.gmra.mxu1 %v3412_v52  ;;  %1256 = vmatprep.subr.mxu0 %v4625_v8 }
  0xe3   : > { %1481 = vmatprep.subr.mxu1 %v4625_v8  ;;  %1257 = vmatpush1.msra.mxu0 %v557_v53  ;;  %v3494_v53 = vld [vmem:[%s3238_s11 + $0x1b8] sm:$0xff] }
  0xe4   : > { %1482 = vmatpush1.msra.mxu1 %v653_v54  ;;  %844 = vmatprep.mubr.f32.mxu0 %v3419_v55  ;;  %4746 = vst [vmem:[#allocation24_spill] sm:$0xff] %v3494_v53  ;;  %v3499_v54 = vld [vmem:[%s3238_s11 + $0x1a0] sm:$0xff] }
  0xe5   : > { %1101 = vmatprep.mubr.f32.mxu1 %v3422_v56  ;;  %845 = vmatmul.mubr.f32.gmra.mxu0 %v3427_v57  ;;  %4747 = vst [vmem:[#allocation25_spill] sm:$0xff] %v3499_v54 }
  0xe6   : > { %1102 = vmatmul.mubr.f32.gmra.mxu1 %v3430_v58  ;;  %1258 = vmatprep.subr.mxu0 %v4625_v8 }
  0xe7   : > { %1483 = vmatprep.subr.mxu1 %v4625_v8  ;;  %1259 = vmatpush1.msra.mxu0 %v554_v59  ;;  %v3502_v59 = vld [vmem:[%s3238_s11 + $0x1b0] sm:$0xff] }
  0xe8   : > { %1484 = vmatpush1.msra.mxu1 %v650_v60  ;;  %850 = vmatprep.mubr.f32.mxu0 %v3437_v61  ;;  %4748 = vst [vmem:[#allocation26_spill] sm:$0xff] %v3502_v59  ;;  %v542_v60 = vld [vmem:[#allocation5 + $0x40] sm:$0xff] }
  0xe9   : > { %1107 = vmatprep.mubr.f32.mxu1 %v3440_v62  ;;  %851 = vmatmul.mubr.f32.gmra.mxu0 %v3445_v0 }
  0xea   : > { %1108 = vmatmul.mubr.f32.gmra.mxu1 %v3448_v4  ;;  %1260 = vmatprep.subr.mxu0 %v4625_v8 }
  0xeb   : > { %1485 = vmatprep.subr.mxu1 %v4625_v8  ;;  %1261 = vmatpush1.msra.mxu0 %v551_v5  ;;  %v638_v5 = vld [vmem:[#allocation5 + $0x340] sm:$0xff] }
  0xec   : > { %1486 = vmatpush1.msra.mxu1 %v647_v11  ;;  %856 = vmatprep.mubr.f32.mxu0 %v3455_v12  ;;  %v3509_v11 = vld [vmem:[%s3238_s11 + $0x1c8] sm:$0xff] }
  0xed   : > { %1113 = vmatprep.mubr.f32.mxu1 %v3458_v17  ;;  %857 = vmatmul.mubr.f32.gmra.mxu0 %v3463_v18  ;;  %4749 = vst [vmem:[#allocation27_spill] sm:$0xff] %v3509_v11 }
  0xee   : > { %1114 = vmatmul.mubr.f32.gmra.mxu1 %v3466_v23  ;;  %1262 = vmatprep.subr.mxu0 %v4625_v8 }
  0xef   : > { %1487 = vmatprep.subr.mxu1 %v4625_v8  ;;  %1263 = vmatpush1.msra.mxu0 %v548_v24  ;;  %v3512_v24 = vld [vmem:[%s3238_s11 + $0x1d8] sm:$0xff] }
  0xf0   : > { %1488 = vmatpush1.msra.mxu1 %v644_v29  ;;  %862 = vmatprep.mubr.f32.mxu0 %v3473_v30  ;;  %4750 = vst [vmem:[#allocation28_spill] sm:$0xff] %v3512_v24  ;;  %v3517_v29 = vld [vmem:[%s3238_s11 + $0x1c0] sm:$0xff] }
  0xf1   : > { %1119 = vmatprep.mubr.f32.mxu1 %v3476_v35  ;;  %863 = vmatmul.mubr.f32.gmra.mxu0 %v3481_v36  ;;  %4751 = vst [vmem:[#allocation29_spill] sm:$0xff] %v3517_v29 }
  0xf2   : > { %1120 = vmatmul.mubr.f32.gmra.mxu1 %v3484_v41  ;;  %1264 = vmatprep.subr.mxu0 %v4625_v8 }
  0xf3   : > { %1489 = vmatprep.subr.mxu1 %v4625_v8  ;;  %1265 = vmatpush1.msra.mxu0 %v545_v42  ;;  %v3520_v42 = vld [vmem:[%s3238_s11 + $0x1d0] sm:$0xff] }
  0xf4   : > { %1490 = vmatpush1.msra.mxu1 %v641_v47  ;;  %868 = vmatprep.mubr.f32.mxu0 %v3491_v48  ;;  %4752 = vst [vmem:[#allocation30_spill] sm:$0xff] %v3520_v42  ;;  %v539_v47 = vld [vmem:[#allocation5 + $0x28] sm:$0xff] }
  0xf5   : > { %1125 = vmatprep.mubr.f32.mxu1 %v3494_v53  ;;  %869 = vmatmul.mubr.f32.gmra.mxu0 %v3499_v54  ;;  %v3530_v54 = vld [vmem:[%s3238_s11 + $0x1f8] sm:$0xff]  ;;  %v4755_v53 = vmov 0.0  }
  0xf6   : > { %1126 = vmatmul.mubr.f32.gmra.mxu1 %v3502_v59  ;;  %1266 = vmatprep.subr.mxu0 %v4625_v8  ;;  %v635_v59 = vld [vmem:[#allocation5 + $0x328] sm:$0xff]  ;;  %4754 = vst [vmem:[#allocation32_spill] sm:$0xff] %v3530_v54 }
  0xf7   : > { %1491 = vmatprep.subr.mxu1 %v4625_v8  ;;  %1267 = vmatpush1.msra.mxu0 %v542_v60  ;;  %v3527_v8 = vld [vmem:[%s3238_s11 + $0x1e8] sm:$0xff]  ;;  %v3535_v60 = vld [vmem:[%s3238_s11 + $0x1e0] sm:$0xff] }
  0xf8   : > { %1492 = vmatpush1.msra.mxu1 %v638_v5  ;;  %874 = vmatprep.mubr.f32.mxu0 %v3509_v11  ;;  %4753 = vst [vmem:[#allocation31_spill] sm:$0xff] %v3527_v8  ;;  %4756 = vst [vmem:[#allocation33_spill] sm:$0xff] %v3535_v60  ;;  %v3538_v5 = vld [vmem:[%s3238_s11 + $0x1f0] sm:$0xff]  ;;  %v3548_v11 = vld [vmem:[%s3238_s11 + $0x218] sm:$0xff] }
  0xf9   : > { %1131 = vmatprep.mubr.f32.mxu1 %v3512_v24  ;;  %875 = vmatmul.mubr.f32.gmra.mxu0 %v3517_v29  ;;  %4757 = vst [vmem:[#allocation34_spill] sm:$0xff] %v3538_v5  ;;  %v632_v29 = vld [vmem:[#allocation5 + $0x310] sm:$0xff]  ;;  %v3545_v24 = vld [vmem:[%s3238_s11 + $0x208] sm:$0xff]  ;;  %4759 = vst [vmem:[#allocation36_spill] sm:$0xff] %v3548_v11 }
  0xfa   : > { %1132 = vmatmul.mubr.f32.gmra.mxu1 %v3520_v42  ;;  %1268 = vmatprep.subr.mxu0 %v4755_v53  ;;  %v536_v42 = vld [vmem:[#allocation5 + $0x10] sm:$0xff]  ;;  %4758 = vst [vmem:[#allocation35_spill] sm:$0xff] %v3545_v24 }
  0xfb   : > { %1493 = vmatprep.subr.mxu1 %v4755_v53  ;;  %1269 = vmatpush1.msra.mxu0 %v539_v47  ;;  %v3556_v47 = vld [vmem:[%s3238_s11 + $0x210] sm:$0xff] }
  0xfc   : > { %1494 = vmatpush1.msra.mxu1 %v635_v59  ;;  %880 = vmatprep.mubr.f32.mxu0 %v3527_v8  ;;  %v3553_v59 = vld [vmem:[%s3238_s11 + $0x200] sm:$0xff]  ;;  %4761 = vst [vmem:[#allocation38_spill] sm:$0xff] %v3556_v47  ;;  %v3566_v8 = vld [vmem:[%s3238_s11 + $0x238] sm:$0xff] }
  0xfd   : > { %1137 = vmatprep.mubr.f32.mxu1 %v3530_v54  ;;  %881 = vmatmul.mubr.f32.gmra.mxu0 %v3535_v60  ;;  %4760 = vst [vmem:[#allocation37_spill] sm:$0xff] %v3553_v59  ;;  %v725_v60 = vld [vmem:[#allocation5 + $0x5f8] sm:$0xff]  ;;  %v3563_v54 = vld [vmem:[%s3238_s11 + $0x228] sm:$0xff]  ;;  %4763 = vst [vmem:[#allocation40_spill] sm:$0xff] %v3566_v8 }
  0xfe   : > { %1138 = vmatmul.mubr.f32.gmra.mxu1 %v3538_v5  ;;  %1270 = vmatprep.subr.mxu0 %v4755_v53  ;;  %v629_v5 = vld [vmem:[#allocation5 + $0x2f8] sm:$0xff]  ;;  %4762 = vst [vmem:[#allocation39_spill] sm:$0xff] %v3563_v54 }
  0xff   : > { %1495 = vmatprep.subr.mxu1 %v4755_v53  ;;  %1271 = vmatpush1.msra.mxu0 %v536_v42  ;;  %v3574_v42 = vld [vmem:[%s3238_s11 + $0x230] sm:$0xff] }
 0x100   : > { %1496 = vmatpush1.msra.mxu1 %v632_v29  ;;  %886 = vmatprep.mubr.f32.mxu0 %v3545_v24  ;;  %v3571_v29 = vld [vmem:[%s3238_s11 + $0x220] sm:$0xff]  ;;  %4765 = vst [vmem:[#allocation42_spill] sm:$0xff] %v3574_v42  ;;  %v3584_v24 = vld [vmem:[%s3238_s11 + $0x258] sm:$0xff] }
 0x101   : > { %1143 = vmatprep.mubr.f32.mxu1 %v3548_v11  ;;  %887 = vmatmul.mubr.f32.gmra.mxu0 %v3553_v59  ;;  %4764 = vst [vmem:[#allocation41_spill] sm:$0xff] %v3571_v29  ;;  %v722_v59 = vld [vmem:[#allocation5 + $0x5e0] sm:$0xff]  ;;  %v3581_v11 = vld [vmem:[%s3238_s11 + $0x248] sm:$0xff]  ;;  %4767 = vst [vmem:[#allocation44_spill] sm:$0xff] %v3584_v24 }
 0x102   : > { %1144 = vmatmul.mubr.f32.gmra.mxu1 %v3556_v47  ;;  %1272 = vmatprep.subr.mxu0 %v4755_v53  ;;  %v626_v47 = vld [vmem:[#allocation5 + $0x2e0] sm:$0xff]  ;;  %4766 = vst [vmem:[#allocation43_spill] sm:$0xff] %v3581_v11 }
 0x103   : > { %1497 = vmatprep.subr.mxu1 %v4755_v53  ;;  %1273 = vmatpush2.msra.mxu0 %v629_v5  ;;  %v3592_v5 = vld [vmem:[%s3238_s11 + $0x250] sm:$0xff] }
 0x104   : > { %1498 = vmatpush2.msra.mxu1 %v725_v60  ;;  %892 = vmatprep.mubr.f32.mxu0 %v3563_v54  ;;  %v3589_v60 = vld [vmem:[%s3238_s11 + $0x240] sm:$0xff]  ;;  %4769 = vst [vmem:[#allocation46_spill] sm:$0xff] %v3592_v5  ;;  %v3602_v54 = vld [vmem:[%s3238_s11 + $0x278] sm:$0xff] }
 0x105   : > { %1149 = vmatprep.mubr.f32.mxu1 %v3566_v8  ;;  %893 = vmatmul.mubr.f32.gmra.mxu0 %v3571_v29  ;;  %4768 = vst [vmem:[#allocation45_spill] sm:$0xff] %v3589_v60  ;;  %v719_v29 = vld [vmem:[#allocation5 + $0x5c8] sm:$0xff]  ;;  %4771 = vst [vmem:[#allocation48_spill] sm:$0xff] %v3602_v54 }
 0x106   : > { %1150 = vmatmul.mubr.f32.gmra.mxu1 %v3574_v42  ;;  %1274 = vmatprep.subr.mxu0 %v4755_v53  ;;  %v623_v42 = vld [vmem:[#allocation5 + $0x2c8] sm:$0xff] }
 0x107   : > { %1499 = vmatprep.subr.mxu1 %v4755_v53  ;;  %1275 = vmatpush2.msra.mxu0 %v626_v47  ;;  %v3599_v8 = vld [vmem:[%s3238_s11 + $0x268] sm:$0xff]  ;;  %v3610_v47 = vld [vmem:[%s3238_s11 + $0x270] sm:$0xff] }
 0x108   : > { %1500 = vmatpush2.msra.mxu1 %v722_v59  ;;  %898 = vmatprep.mubr.f32.mxu0 %v3581_v11  ;;  %4770 = vst [vmem:[#allocation47_spill] sm:$0xff] %v3599_v8  ;;  %v3607_v59 = vld [vmem:[%s3238_s11 + $0x260] sm:$0xff]  ;;  %4773 = vst [vmem:[#allocation50_spill] sm:$0xff] %v3610_v47  ;;  %v3620_v11 = vld [vmem:[%s3238_s11 + $0x298] sm:$0xff] }
 0x109   : > { %1155 = vmatprep.mubr.f32.mxu1 %v3584_v24  ;;  %899 = vmatmul.mubr.f32.gmra.mxu0 %v3589_v60  ;;  %4772 = vst [vmem:[#allocation49_spill] sm:$0xff] %v3607_v59  ;;  %v716_v60 = vld [vmem:[#allocation5 + $0x5b0] sm:$0xff]  ;;  %v3617_v24 = vld [vmem:[%s3238_s11 + $0x288] sm:$0xff]  ;;  %4775 = vst [vmem:[#allocation52_spill] sm:$0xff] %v3620_v11 }
 0x10a   : > { %1156 = vmatmul.mubr.f32.gmra.mxu1 %v3592_v5  ;;  %1276 = vmatprep.subr.mxu0 %v4755_v53  ;;  %v620_v5 = vld [vmem:[#allocation5 + $0x2b0] sm:$0xff]  ;;  %4774 = vst [vmem:[#allocation51_spill] sm:$0xff] %v3617_v24 }
 0x10b   : > { %1501 = vmatprep.subr.mxu1 %v4755_v53  ;;  %1277 = vmatpush2.msra.mxu0 %v623_v42  ;;  %v3628_v42 = vld [vmem:[%s3238_s11 + $0x290] sm:$0xff] }
 0x10c   : > { %1502 = vmatpush2.msra.mxu1 %v719_v29  ;;  %904 = vmatprep.mubr.f32.mxu0 %v3599_v8  ;;  %v3625_v29 = vld [vmem:[%s3238_s11 + $0x280] sm:$0xff]  ;;  %4777 = vst [vmem:[#allocation54_spill] sm:$0xff] %v3628_v42  ;;  %v3638_v8 = vld [vmem:[%s3238_s11 + $0x2b8] sm:$0xff] }
 0x10d   : > { %1161 = vmatprep.mubr.f32.mxu1 %v3602_v54  ;;  %905 = vmatmul.mubr.f32.gmra.mxu0 %v3607_v59  ;;  %4776 = vst [vmem:[#allocation53_spill] sm:$0xff] %v3625_v29  ;;  %v713_v59 = vld [vmem:[#allocation5 + $0x598] sm:$0xff]  ;;  %v3635_v54 = vld [vmem:[%s3238_s11 + $0x2a8] sm:$0xff]  ;;  %4779 = vst [vmem:[#allocation56_spill] sm:$0xff] %v3638_v8 }
 0x10e   : > { %1162 = vmatmul.mubr.f32.gmra.mxu1 %v3610_v47  ;;  %1278 = vmatprep.subr.mxu0 %v4755_v53  ;;  %v617_v47 = vld [vmem:[#allocation5 + $0x298] sm:$0xff]  ;;  %4778 = vst [vmem:[#allocation55_spill] sm:$0xff] %v3635_v54 }
 0x10f   : > { %1503 = vmatprep.subr.mxu1 %v4755_v53  ;;  %1279 = vmatpush2.msra.mxu0 %v620_v5  ;;  %v3646_v5 = vld [vmem:[%s3238_s11 + $0x2b0] sm:$0xff] }
 0x110   : > { %1504 = vmatpush2.msra.mxu1 %v716_v60  ;;  %910 = vmatprep.mubr.f32.mxu0 %v3617_v24  ;;  %v3643_v60 = vld [vmem:[%s3238_s11 + $0x2a0] sm:$0xff]  ;;  %4781 = vst [vmem:[#allocation58_spill] sm:$0xff] %v3646_v5  ;;  %v3656_v24 = vld [vmem:[%s3238_s11 + $0x2d8] sm:$0xff] }
 0x111   : > { %1167 = vmatprep.mubr.f32.mxu1 %v3620_v11  ;;  %911 = vmatmul.mubr.f32.gmra.mxu0 %v3625_v29  ;;  %4780 = vst [vmem:[#allocation57_spill] sm:$0xff] %v3643_v60  ;;  %v710_v29 = vld [vmem:[#allocation5 + $0x580] sm:$0xff]  ;;  %v3653_v11 = vld [vmem:[%s3238_s11 + $0x2c8] sm:$0xff]  ;;  %4783 = vst [vmem:[#allocation60_spill] sm:$0xff] %v3656_v24 }
 0x112   : > { %1168 = vmatmul.mubr.f32.gmra.mxu1 %v3628_v42  ;;  %1280 = vmatprep.subr.mxu0 %v4755_v53  ;;  %v614_v42 = vld [vmem:[#allocation5 + $0x280] sm:$0xff]  ;;  %4782 = vst [vmem:[#allocation59_spill] sm:$0xff] %v3653_v11 }
 0x113   : > { %1505 = vmatprep.subr.mxu1 %v4755_v53  ;;  %1281 = vmatpush2.msra.mxu0 %v617_v47  ;;  %v3664_v47 = vld [vmem:[%s3238_s11 + $0x2d0] sm:$0xff] }
 0x114   : > { %1506 = vmatpush2.msra.mxu1 %v713_v59  ;;  %916 = vmatprep.mubr.f32.mxu0 %v3635_v54  ;;  %v3661_v59 = vld [vmem:[%s3238_s11 + $0x2c0] sm:$0xff]  ;;  %4785 = vst [vmem:[#allocation62_spill] sm:$0xff] %v3664_v47  ;;  %v3674_v54 = vld [vmem:[%s3238_s11 + $0x2f8] sm:$0xff] }
 0x115   : > { %1173 = vmatprep.mubr.f32.mxu1 %v3638_v8  ;;  %917 = vmatmul.mubr.f32.gmra.mxu0 %v3643_v60  ;;  %4784 = vst [vmem:[#allocation61_spill] sm:$0xff] %v3661_v59  ;;  %v707_v60 = vld [vmem:[#allocation5 + $0x568] sm:$0xff]  ;;  %4787 = vst [vmem:[#allocation64_spill] sm:$0xff] %v3674_v54 }
 0x116   : > { %1174 = vmatmul.mubr.f32.gmra.mxu1 %v3646_v5  ;;  %1282 = vmatprep.subr.mxu0 %v4755_v53  ;;  %v611_v5 = vld [vmem:[#allocation5 + $0x268] sm:$0xff] }
 0x117   : > { %1507 = vmatprep.subr.mxu1 %v4755_v53  ;;  %1283 = vmatpush2.msra.mxu0 %v614_v42  ;;  %v3671_v8 = vld [vmem:[%s3238_s11 + $0x2e8] sm:$0xff]  ;;  %v3682_v42 = vld [vmem:[%s3238_s11 + $0x2f0] sm:$0xff] }
 0x118   : > { %1508 = vmatpush2.msra.mxu1 %v710_v29  ;;  %922 = vmatprep.mubr.f32.mxu0 %v3653_v11  ;;  %4786 = vst [vmem:[#allocation63_spill] sm:$0xff] %v3671_v8  ;;  %v3679_v29 = vld [vmem:[%s3238_s11 + $0x2e0] sm:$0xff]  ;;  %4789 = vst [vmem:[#allocation66_spill] sm:$0xff] %v3682_v42  ;;  %v3692_v11 = vld [vmem:[%s3238_s11 + $0x318] sm:$0xff] }
 0x119   : > { %1179 = vmatprep.mubr.f32.mxu1 %v3656_v24  ;;  %923 = vmatmul.mubr.f32.gmra.mxu0 %v3661_v59  ;;  %4788 = vst [vmem:[#allocation65_spill] sm:$0xff] %v3679_v29  ;;  %v704_v59 = vld [vmem:[#allocation5 + $0x550] sm:$0xff]  ;;  %v3689_v24 = vld [vmem:[%s3238_s11 + $0x308] sm:$0xff]  ;;  %4791 = vst [vmem:[#allocation68_spill] sm:$0xff] %v3692_v11 }
 0x11a   : > { %1180 = vmatmul.mubr.f32.gmra.mxu1 %v3664_v47  ;;  %1284 = vmatprep.subr.mxu0 %v4755_v53  ;;  %v608_v47 = vld [vmem:[#allocation5 + $0x250] sm:$0xff]  ;;  %4790 = vst [vmem:[#allocation67_spill] sm:$0xff] %v3689_v24 }
 0x11b   : > { %1509 = vmatprep.subr.mxu1 %v4755_v53  ;;  %1285 = vmatpush2.msra.mxu0 %v611_v5  ;;  %v3700_v5 = vld [vmem:[%s3238_s11 + $0x310] sm:$0xff] }
 0x11c   : > { %1510 = vmatpush2.msra.mxu1 %v707_v60  ;;  %928 = vmatprep.mubr.f32.mxu0 %v3671_v8  ;;  %v3697_v60 = vld [vmem:[%s3238_s11 + $0x300] sm:$0xff]  ;;  %4793 = vst [vmem:[#allocation70_spill] sm:$0xff] %v3700_v5  ;;  %v3710_v8 = vld [vmem:[%s3238_s11 + $0x338] sm:$0xff] }
 0x11d   : > { %1185 = vmatprep.mubr.f32.mxu1 %v3674_v54  ;;  %929 = vmatmul.mubr.f32.gmra.mxu0 %v3679_v29  ;;  %4792 = vst [vmem:[#allocation69_spill] sm:$0xff] %v3697_v60  ;;  %v701_v29 = vld [vmem:[#allocation5 + $0x538] sm:$0xff]  ;;  %v3707_v54 = vld [vmem:[%s3238_s11 + $0x328] sm:$0xff]  ;;  %4795 = vst [vmem:[#allocation72_spill] sm:$0xff] %v3710_v8 }
 0x11e   : > { %1186 = vmatmul.mubr.f32.gmra.mxu1 %v3682_v42  ;;  %1286 = vmatprep.subr.mxu0 %v4755_v53  ;;  %v605_v42 = vld [vmem:[#allocation5 + $0x238] sm:$0xff]  ;;  %4794 = vst [vmem:[#allocation71_spill] sm:$0xff] %v3707_v54 }
 0x11f   : > { %1511 = vmatprep.subr.mxu1 %v4755_v53  ;;  %1287 = vmatpush2.msra.mxu0 %v608_v47  ;;  %v3718_v47 = vld [vmem:[%s3238_s11 + $0x330] sm:$0xff] }
 0x120   : > { %1512 = vmatpush2.msra.mxu1 %v704_v59  ;;  %934 = vmatprep.mubr.f32.mxu0 %v3689_v24  ;;  %v3715_v59 = vld [vmem:[%s3238_s11 + $0x320] sm:$0xff]  ;;  %4797 = vst [vmem:[#allocation74_spill] sm:$0xff] %v3718_v47  ;;  %v3728_v24 = vld [vmem:[%s3238_s11 + $0x358] sm:$0xff] }
 0x121   : > { %1191 = vmatprep.mubr.f32.mxu1 %v3692_v11  ;;  %935 = vmatmul.mubr.f32.gmra.mxu0 %v3697_v60  ;;  %4796 = vst [vmem:[#allocation73_spill] sm:$0xff] %v3715_v59  ;;  %v698_v60 = vld [vmem:[#allocation5 + $0x520] sm:$0xff]  ;;  %v3725_v11 = vld [vmem:[%s3238_s11 + $0x348] sm:$0xff]  ;;  %4799 = vst [vmem:[#allocation76_spill] sm:$0xff] %v3728_v24 }
 0x122   : > { %1192 = vmatmul.mubr.f32.gmra.mxu1 %v3700_v5  ;;  %1288 = vmatprep.subr.mxu0 %v4755_v53  ;;  %v602_v5 = vld [vmem:[#allocation5 + $0x220] sm:$0xff]  ;;  %4798 = vst [vmem:[#allocation75_spill] sm:$0xff] %v3725_v11 }
 0x123   : > { %1513 = vmatprep.subr.mxu1 %v4755_v53  ;;  %1289 = vmatpush2.msra.mxu0 %v605_v42  ;;  %v3736_v42 = vld [vmem:[%s3238_s11 + $0x350] sm:$0xff] }
 0x124   : > { %1514 = vmatpush2.msra.mxu1 %v701_v29  ;;  %940 = vmatprep.mubr.f32.mxu0 %v3707_v54  ;;  %v3733_v29 = vld [vmem:[%s3238_s11 + $0x340] sm:$0xff]  ;;  %4801 = vst [vmem:[#allocation78_spill] sm:$0xff] %v3736_v42  ;;  %v3746_v54 = vld [vmem:[%s3238_s11 + $0x378] sm:$0xff] }
 0x125   : > { %1197 = vmatprep.mubr.f32.mxu1 %v3710_v8  ;;  %941 = vmatmul.mubr.f32.gmra.mxu0 %v3715_v59  ;;  %4800 = vst [vmem:[#allocation77_spill] sm:$0xff] %v3733_v29  ;;  %v695_v59 = vld [vmem:[#allocation5 + $0x508] sm:$0xff]  ;;  %4803 = vst [vmem:[#allocation80_spill] sm:$0xff] %v3746_v54 }
 0x126   : > { %1198 = vmatmul.mubr.f32.gmra.mxu1 %v3718_v47  ;;  %1290 = vmatprep.subr.mxu0 %v4755_v53  ;;  %v599_v47 = vld [vmem:[#allocation5 + $0x208] sm:$0xff] }
 0x127   : > { %1515 = vmatprep.subr.mxu1 %v4755_v53  ;;  %1291 = vmatpush2.msra.mxu0 %v602_v5  ;;  %v3743_v8 = vld [vmem:[%s3238_s11 + $0x368] sm:$0xff]  ;;  %v3754_v5 = vld [vmem:[%s3238_s11 + $0x370] sm:$0xff] }
 0x128   : > { %1516 = vmatpush2.msra.mxu1 %v698_v60  ;;  %946 = vmatprep.mubr.f32.mxu0 %v3725_v11  ;;  %4802 = vst [vmem:[#allocation79_spill] sm:$0xff] %v3743_v8  ;;  %v3751_v60 = vld [vmem:[%s3238_s11 + $0x360] sm:$0xff]  ;;  %4805 = vst [vmem:[#allocation82_spill] sm:$0xff] %v3754_v5  ;;  %v3764_v11 = vld [vmem:[%s3238_s11 + $0x398] sm:$0xff] }
 0x129   : > { %1203 = vmatprep.mubr.f32.mxu1 %v3728_v24  ;;  %947 = vmatmul.mubr.f32.gmra.mxu0 %v3733_v29  ;;  %4804 = vst [vmem:[#allocation81_spill] sm:$0xff] %v3751_v60  ;;  %v692_v29 = vld [vmem:[#allocation5 + $0x4f0] sm:$0xff]  ;;  %v3761_v24 = vld [vmem:[%s3238_s11 + $0x388] sm:$0xff]  ;;  %4807 = vst [vmem:[#allocation84_spill] sm:$0xff] %v3764_v11 }
 0x12a   : > { %1204 = vmatmul.mubr.f32.gmra.mxu1 %v3736_v42  ;;  %1292 = vmatprep.subr.mxu0 %v4755_v53  ;;  %v596_v42 = vld [vmem:[#allocation5 + $0x1f0] sm:$0xff]  ;;  %4806 = vst [vmem:[#allocation83_spill] sm:$0xff] %v3761_v24 }
 0x12b   : > { %1517 = vmatprep.subr.mxu1 %v4755_v53  ;;  %1293 = vmatpush2.msra.mxu0 %v599_v47  ;;  %v3772_v47 = vld [vmem:[%s3238_s11 + $0x390] sm:$0xff] }
 0x12c   : > { %1518 = vmatpush2.msra.mxu1 %v695_v59  ;;  %952 = vmatprep.mubr.f32.mxu0 %v3743_v8  ;;  %v3769_v59 = vld [vmem:[%s3238_s11 + $0x380] sm:$0xff]  ;;  %4809 = vst [vmem:[#allocation86_spill] sm:$0xff] %v3772_v47  ;;  %v3782_v8 = vld [vmem:[%s3238_s11 + $0x3b8] sm:$0xff] }
 0x12d   : > { %1209 = vmatprep.mubr.f32.mxu1 %v3746_v54  ;;  %953 = vmatmul.mubr.f32.gmra.mxu0 %v3751_v60  ;;  %4808 = vst [vmem:[#allocation85_spill] sm:$0xff] %v3769_v59  ;;  %v689_v60 = vld [vmem:[#allocation5 + $0x4d8] sm:$0xff]  ;;  %v3779_v54 = vld [vmem:[%s3238_s11 + $0x3a8] sm:$0xff]  ;;  %4811 = vst [vmem:[#allocation88_spill] sm:$0xff] %v3782_v8 }
 0x12e   : > { %1210 = vmatmul.mubr.f32.gmra.mxu1 %v3754_v5  ;;  %1294 = vmatprep.subr.mxu0 %v4755_v53  ;;  %v593_v5 = vld [vmem:[#allocation5 + $0x1d8] sm:$0xff]  ;;  %4810 = vst [vmem:[#allocation87_spill] sm:$0xff] %v3779_v54 }
 0x12f   : > { %1519 = vmatprep.subr.mxu1 %v4755_v53  ;;  %1295 = vmatpush2.msra.mxu0 %v596_v42  ;;  %v3790_v42 = vld [vmem:[%s3238_s11 + $0x3b0] sm:$0xff] }
 0x130   : > { %1520 = vmatpush2.msra.mxu1 %v692_v29  ;;  %958 = vmatprep.mubr.f32.mxu0 %v3761_v24  ;;  %v3787_v29 = vld [vmem:[%s3238_s11 + $0x3a0] sm:$0xff]  ;;  %4813 = vst [vmem:[#allocation90_spill] sm:$0xff] %v3790_v42  ;;  %v3800_v24 = vld [vmem:[%s3238_s11 + $0x3d8] sm:$0xff] }
 0x131   : > { %1215 = vmatprep.mubr.f32.mxu1 %v3764_v11  ;;  %959 = vmatmul.mubr.f32.gmra.mxu0 %v3769_v59  ;;  %4812 = vst [vmem:[#allocation89_spill] sm:$0xff] %v3787_v29  ;;  %v686_v59 = vld [vmem:[#allocation5 + $0x4c0] sm:$0xff]  ;;  %v3797_v11 = vld [vmem:[%s3238_s11 + $0x3c8] sm:$0xff] }
 0x132   : > { %1216 = vmatmul.mubr.f32.gmra.mxu1 %v3772_v47  ;;  %1296 = vmatprep.subr.mxu0 %v4755_v53  ;;  %v590_v47 = vld [vmem:[#allocation5 + $0x1c0] sm:$0xff] }
 0x133   : > { %1521 = vmatprep.subr.mxu1 %v4755_v53  ;;  %1297 = vmatpush2.msra.mxu0 %v593_v5  ;;  %v3808_v5 = vld [vmem:[%s3238_s11 + $0x3d0] sm:$0xff] }
 0x134   : > { %1522 = vmatpush2.msra.mxu1 %v689_v60  ;;  %964 = vmatprep.mubr.f32.mxu0 %v3779_v54  ;;  %v3805_v60 = vld [vmem:[%s3238_s11 + $0x3c0] sm:$0xff]  ;;  %4815 = vst [vmem:[#allocation92_spill] sm:$0xff] %v3808_v5  ;;  %v3818_v54 = vld [vmem:[%s3238_s11 + $0x3f8] sm:$0xff] }
 0x135   : > { %1221 = vmatprep.mubr.f32.mxu1 %v3782_v8  ;;  %965 = vmatmul.mubr.f32.gmra.mxu0 %v3787_v29  ;;  %4814 = vst [vmem:[#allocation91_spill] sm:$0xff] %v3805_v60  ;;  %v683_v29 = vld [vmem:[#allocation5 + $0x4a8] sm:$0xff] }
 0x136   : > { %1222 = vmatmul.mubr.f32.gmra.mxu1 %v3790_v42  ;;  %1298 = vmatprep.subr.mxu0 %v4755_v53  ;;  %v587_v42 = vld [vmem:[#allocation5 + $0x1a8] sm:$0xff] }
 0x137   : > { %1523 = vmatprep.subr.mxu1 %v4755_v53  ;;  %1299 = vmatpush2.msra.mxu0 %v590_v47  ;;  %v3815_v8 = vld [vmem:[%s3238_s11 + $0x3e8] sm:$0xff]  ;;  %v3823_v47 = vld [vmem:[%s3238_s11 + $0x3e0] sm:$0xff] }
 0x138   : > { %1524 = vmatpush2.msra.mxu1 %v686_v59  ;;  %970 = vmatprep.mubr.f32.mxu0 %v3797_v11  ;;  %v3826_v59 = vld [vmem:[%s3238_s11 + $0x3f0] sm:$0xff]  ;;  %s2228_s11 = sshll.u32 %s4218_s17, 4  ;;  %s4465_s11 = int_to_ptr.vmem [resolvable:$true] %s2228_s11 }
 0x139   : > { %1227 = vmatprep.mubr.f32.mxu1 %v3800_v24  ;;  %971 = vmatmul.mubr.f32.gmra.mxu0 %v3805_v60  ;;  %v584_v60 = vld [vmem:[#allocation5 + $0x190] sm:$0xff]  ;;  %s2765_s28 = scalar_lea.vmem %s4465_s11, 4096 }
 0x13a   : > { %1228 = vmatmul.mubr.f32.gmra.mxu1 %v3808_v5  ;;  %1300 = vmatprep.subr.mxu0 %v4755_v53  ;;  %v680_v5 = vld [vmem:[#allocation5 + $0x490] sm:$0xff]  ;;  %p2766_p8 = scmp.ne.s32.totalorder %s4465_s11, %s2765_s28 }
 0x13b   : > { %1525 = vmatprep.subr.mxu1 %v4755_v53  ;;  %1301 = vmatpush2.msra.mxu0 %v587_v42  ;;  %v4846_v42 = vld [vmem:[#allocation54_spill] sm:$0xff] }
 0x13c   : > { %1526 = vmatpush2.msra.mxu1 %v683_v29  ;;  %976 = vmatprep.mubr.f32.mxu0 %v3815_v8  ;;  %v4845_v29 = vld [vmem:[#allocation53_spill] sm:$0xff]  ;;  %p2767_p11 = pnand %p2766_p8, %p3176_p6 }
 0x13d   : > { %1233 = vmatprep.mubr.f32.mxu1 %v3818_v54  ;;  %977 = vmatmul.mubr.f32.gmra.mxu0 %v3823_v47 }
 0x13e   : > { %1234 = vmatmul.mubr.f32.gmra.mxu1 %v3826_v59  ;;  %1302 = vmatprep.subr.mxu0 %v4755_v53  ;;  %p2768_p1 = pneg %p2767_p11 }
 0x13f   : > { %1527 = vmatprep.subr.mxu1 %v4755_v53  ;;  %1303 = vmatpush2.msra.mxu0 %v584_v60 }
 0x140   : > { %1528 = vmatpush2.msra.mxu1 %v680_v5  ;;  %1304 = vmatprep.mubr.f32.mxu0 %v3259_v63  ;;  %v4816_v63 = vld [vmem:[#allocation24_spill] sm:$0xff]  ;;  %v4847_v5 = vld [vmem:[#allocation55_spill] sm:$0xff] }
 0x141   : > { %1529 = vmatprep.mubr.f32.mxu1 %v3262_v1  ;;  %1305 = vmatmul.mubr.f32.vlgmr.msra.gmra.mxu0 %v3265_v2  ;;  %v4817_v1 = vld [vmem:[#allocation25_spill] sm:$0xff]  ;;  %v4818_v2 = vld [vmem:[#allocation26_spill] sm:$0xff] }
 0x142   : > { %1530 = vmatmul.mubr.f32.vlgmr.msra.gmra.mxu1 %v3268_v3  ;;  %1309 = vmatprep.mubr.f32.mxu0 %v3275_v6  ;;  %v4819_v3 = vld [vmem:[#allocation27_spill] sm:$0xff]  ;;  %v4820_v6 = vld [vmem:[#allocation28_spill] sm:$0xff] }
 0x143   : > { %1534 = vmatprep.mubr.f32.mxu1 %v3278_v7  ;;  %v4821_v7 = vld [vmem:[#allocation29_spill] sm:$0xff] }
 0x145   : > { %1310 = vmatmul.mubr.f32.gmra.mxu0 %v3283_v9  ;;  %v4822_v9 = vld [vmem:[#allocation30_spill] sm:$0xff] }
 0x146   : > { %1535 = vmatmul.mubr.f32.gmra.mxu1 %v3286_v10  ;;  %1314 = vmatprep.mubr.f32.mxu0 %v3293_v13  ;;  %v4823_v10 = vld [vmem:[#allocation31_spill] sm:$0xff]  ;;  %v4824_v13 = vld [vmem:[#allocation32_spill] sm:$0xff] }
 0x147   : > { %1539 = vmatprep.mubr.f32.mxu1 %v3296_v14  ;;  %v4825_v14 = vld [vmem:[#allocation33_spill] sm:$0xff] }
 0x149   : > { %1315 = vmatmul.mubr.f32.gmra.mxu0 %v3301_v15  ;;  %v4826_v15 = vld [vmem:[#allocation34_spill] sm:$0xff] }
 0x14a   : > { %1540 = vmatmul.mubr.f32.gmra.mxu1 %v3304_v16  ;;  %1319 = vmatprep.mubr.f32.mxu0 %v3311_v19  ;;  %v4827_v16 = vld [vmem:[#allocation35_spill] sm:$0xff]  ;;  %v4828_v19 = vld [vmem:[#allocation36_spill] sm:$0xff] }
 0x14b   : > { %1544 = vmatprep.mubr.f32.mxu1 %v3314_v20 }
 0x14d   : > { %1320 = vmatmul.mubr.f32.gmra.mxu0 %v3319_v21 }
 0x14e   : > { %1545 = vmatmul.mubr.f32.gmra.mxu1 %v3322_v22  ;;  %1324 = vmatprep.mubr.f32.mxu0 %v3329_v25  ;;  %v4829_v22 = vld [vmem:[#allocation37_spill] sm:$0xff]  ;;  %v4830_v25 = vld [vmem:[#allocation38_spill] sm:$0xff] }
 0x14f   : > { %1549 = vmatprep.mubr.f32.mxu1 %v3332_v26 }
 0x151   : > { %1325 = vmatmul.mubr.f32.gmra.mxu0 %v3337_v27  ;;  %v4831_v27 = vld [vmem:[#allocation39_spill] sm:$0xff] }
 0x152   : > { %1550 = vmatmul.mubr.f32.gmra.mxu1 %v3340_v28  ;;  %1329 = vmatprep.mubr.f32.mxu0 %v3347_v31  ;;  %v4832_v28 = vld [vmem:[#allocation40_spill] sm:$0xff] }
 0x153   : > { %1554 = vmatprep.mubr.f32.mxu1 %v3350_v32 }
 0x155   : > { %1330 = vmatmul.mubr.f32.gmra.mxu0 %v3355_v33 }
 0x156   : > { %1555 = vmatmul.mubr.f32.gmra.mxu1 %v3358_v34  ;;  %1334 = vmatprep.mubr.f32.mxu0 %v3365_v37  ;;  %v4833_v37 = vld [vmem:[#allocation41_spill] sm:$0xff] }
 0x157   : > { %1559 = vmatprep.mubr.f32.mxu1 %v3368_v38  ;;  %v4834_v38 = vld [vmem:[#allocation42_spill] sm:$0xff] }
 0x159   : > { %1335 = vmatmul.mubr.f32.gmra.mxu0 %v3373_v39 }
 0x15a   : > { %1560 = vmatmul.mubr.f32.gmra.mxu1 %v3376_v40  ;;  %1339 = vmatprep.mubr.f32.mxu0 %v3383_v43  ;;  %v4835_v40 = vld [vmem:[#allocation43_spill] sm:$0xff]  ;;  %v4836_v43 = vld [vmem:[#allocation44_spill] sm:$0xff] }
 0x15b   : > { %1564 = vmatprep.mubr.f32.mxu1 %v3386_v44 }
 0x15d   : > { %1340 = vmatmul.mubr.f32.gmra.mxu0 %v3391_v45 }
 0x15e   : > { %1565 = vmatmul.mubr.f32.gmra.mxu1 %v3394_v46  ;;  %1344 = vmatprep.mubr.f32.mxu0 %v3401_v49 }
 0x15f   : > { %1569 = vmatprep.mubr.f32.mxu1 %v3404_v50 }
 0x161   : > { %1345 = vmatmul.mubr.f32.gmra.mxu0 %v3409_v51  ;;  %v4837_v51 = vld [vmem:[#allocation45_spill] sm:$0xff] }
 0x162   : > { %1570 = vmatmul.mubr.f32.gmra.mxu1 %v3412_v52  ;;  %1349 = vmatprep.mubr.f32.mxu0 %v3419_v55  ;;  %v4838_v52 = vld [vmem:[#allocation46_spill] sm:$0xff] }
 0x163   : > { %1574 = vmatprep.mubr.f32.mxu1 %v3422_v56  ;;  %v4839_v56 = vld [vmem:[#allocation47_spill] sm:$0xff] }
 0x165   : > { %1350 = vmatmul.mubr.f32.gmra.mxu0 %v3427_v57 }
 0x166   : > { %1575 = vmatmul.mubr.f32.gmra.mxu1 %v3430_v58  ;;  %1354 = vmatprep.mubr.f32.mxu0 %v3437_v61  ;;  %v4840_v61 = vld [vmem:[#allocation48_spill] sm:$0xff] }
 0x167   : > { %1579 = vmatprep.mubr.f32.mxu1 %v3440_v62 }
 0x169   : > { %1355 = vmatmul.mubr.f32.gmra.mxu0 %v3445_v0 }
 0x16a   : > { %1580 = vmatmul.mubr.f32.gmra.mxu1 %v3448_v4  ;;  %1359 = vmatprep.mubr.f32.mxu0 %v3455_v12  ;;  %v4841_v12 = vld [vmem:[#allocation49_spill] sm:$0xff] }
 0x16b   : > { %1584 = vmatprep.mubr.f32.mxu1 %v3458_v17  ;;  %v4842_v17 = vld [vmem:[#allocation50_spill] sm:$0xff] }
 0x16d   : > { %1360 = vmatmul.mubr.f32.gmra.mxu0 %v3463_v18 }
 0x16e   : > { %1585 = vmatmul.mubr.f32.gmra.mxu1 %v3466_v23  ;;  %1364 = vmatprep.mubr.f32.mxu0 %v3473_v30  ;;  %v4843_v23 = vld [vmem:[#allocation51_spill] sm:$0xff] }
 0x16f   : > { %1589 = vmatprep.mubr.f32.mxu1 %v3476_v35 }
 0x171   : > { %1365 = vmatmul.mubr.f32.gmra.mxu0 %v3481_v36  ;;  %v4844_v36 = vld [vmem:[#allocation52_spill] sm:$0xff] }
 0x172   : > { %1590 = vmatmul.mubr.f32.gmra.mxu1 %v3484_v41  ;;  %1369 = vmatprep.mubr.f32.mxu0 %v3491_v48 }
 0x173   : > { %1594 = vmatprep.mubr.f32.mxu1 %v4816_v63 }
 0x175   : > { %1370 = vmatmul.mubr.f32.gmra.mxu0 %v4817_v1 }
 0x176   : > { %1595 = vmatmul.mubr.f32.gmra.mxu1 %v4818_v2  ;;  %1374 = vmatprep.mubr.f32.mxu0 %v4819_v3  ;;  %v4848_v2 = vld [vmem:[#allocation56_spill] sm:$0xff] }
 0x177   : > { %1599 = vmatprep.mubr.f32.mxu1 %v4820_v6 }
 0x179   : > { %1375 = vmatmul.mubr.f32.gmra.mxu0 %v4821_v7 }
 0x17a   : > { %1600 = vmatmul.mubr.f32.gmra.mxu1 %v4822_v9  ;;  %1379 = vmatprep.mubr.f32.mxu0 %v4823_v10  ;;  %v4849_v9 = vld [vmem:[#allocation57_spill] sm:$0xff]  ;;  %v4850_v10 = vld [vmem:[#allocation58_spill] sm:$0xff] }
 0x17b   : > { %1604 = vmatprep.mubr.f32.mxu1 %v4824_v13 }
 0x17d   : > { %1380 = vmatmul.mubr.f32.gmra.mxu0 %v4825_v14  ;;  %v4851_v14 = vld [vmem:[#allocation59_spill] sm:$0xff] }
 0x17e   : > { %1605 = vmatmul.mubr.f32.gmra.mxu1 %v4826_v15  ;;  %1384 = vmatprep.mubr.f32.mxu0 %v4827_v16 }
 0x17f   : > { %1609 = vmatprep.mubr.f32.mxu1 %v4828_v19  ;;  %v4852_v19 = vld [vmem:[#allocation60_spill] sm:$0xff] }
 0x181   : > { %v792_v20 = vpop.f32.mrf.mxu0  ;;  %1385 = vmatmul.mubr.f32.gmra.mxu0 %v4829_v22 }
 0x182   : > { %v1049_v21 = vpop.f32.mrf.mxu1  ;;  %1610 = vmatmul.mubr.f32.gmra.mxu1 %v4830_v25  ;;  %1389 = vmatprep.mubr.f32.mxu0 %v4831_v27  ;;  %v4853_v25 = vld [vmem:[#allocation61_spill] sm:$0xff]  ;;  %v4854_v27 = vld [vmem:[#allocation62_spill] sm:$0xff] }
 0x183   : > { %v3902_v26 = vadd.f32 %v1049_v21, %v792_v20  ;;  %1614 = vmatprep.mubr.f32.mxu1 %v4832_v28  ;;  %v794_v31 = vpop.f32.mrf.mxu0 }
 0x184   : > { %v1051_v32 = vpop.f32.mrf.mxu1 }
 0x185   : > { %1786 = vrot.lane.b32.xlu0 %v3902_v26, %s2962_s18  ;;  %v798_v33 = vpop.f32.mrf.mxu0  ;;  %1390 = vmatmul.mubr.f32.gmra.mxu0 %v4833_v37  ;;  %v3910_v39 = vadd.f32 %v1051_v32, %v794_v31  ;;  %v4855_v31 = vld [vmem:[#allocation63_spill] sm:$0xff] }
 0x186   : > { %v1055_v34 = vpop.f32.mrf.mxu1  ;;  %1615 = vmatmul.mubr.f32.gmra.mxu1 %v4834_v38  ;;  %1394 = vmatprep.mubr.f32.mxu0 %v4835_v40 }
 0x187   : > { %1619 = vmatprep.mubr.f32.mxu1 %v4836_v43  ;;  %v800_v44 = vpop.f32.mrf.mxu0  ;;  %v3920_v55 = vadd.f32 %v1055_v34, %v798_v33  ;;  %v4856_v34 = vld [vmem:[#allocation64_spill] sm:$0xff]  ;;  %v4857_v43 = vld [vmem:[#allocation65_spill] sm:$0xff] }
 0x188   : > { %v1057_v45 = vpop.f32.mrf.mxu1 }
 0x189   : > { %2010 = vrot.lane.b32.xlu0 %v3910_v39, %s2962_s18  ;;  %v3916_v46 = vadd.f32 %v1057_v45, %v800_v44  ;;  %v804_v49 = vpop.f32.mrf.mxu0  ;;  %1395 = vmatmul.mubr.f32.gmra.mxu0 %v4837_v51  ;;  %v4858_v44 = vld [vmem:[#allocation66_spill] sm:$0xff] }
 0x18a   : > { %v1061_v50 = vpop.f32.mrf.mxu1  ;;  %1620 = vmatmul.mubr.f32.gmra.mxu1 %v4838_v52  ;;  %1399 = vmatprep.mubr.f32.mxu0 %v4839_v56  ;;  %v4860_v52 = vld [vmem:[#allocation68_spill] sm:$0xff] }
 0x18b   : > { %2012 = vrot.lane.b32.xlu1 %v3916_v46, %s2962_s18  ;;  %v806_v57 = vpop.f32.mrf.mxu0  ;;  %1624 = vmatprep.mubr.f32.mxu1 %v4840_v61  ;;  %v3926_v62 = vadd.f32 %v1061_v50, %v804_v49  ;;  %v4859_v49 = vld [vmem:[#allocation67_spill] sm:$0xff]  ;;  %v4861_v61 = vld [vmem:[#allocation69_spill] sm:$0xff] }
 0x18c   : > { %v1063_v58 = vpop.f32.mrf.mxu1 }
 0x18d   : > { %1788 = vrot.lane.b32.xlu0 %v3920_v55, %s2962_s18  ;;  %v810_v0 = vpop.f32.mrf.mxu0  ;;  %1400 = vmatmul.mubr.f32.gmra.mxu0 %v4841_v12  ;;  %v3932_v18 = vadd.f32 %v1063_v58, %v806_v57  ;;  %v4863_v12 = vld [vmem:[#allocation71_spill] sm:$0xff] }
 0x18e   : > { %v1067_v4 = vpop.f32.mrf.mxu1  ;;  %1625 = vmatmul.mubr.f32.gmra.mxu1 %v4842_v17  ;;  %1404 = vmatprep.mubr.f32.mxu0 %v4843_v23 }
 0x18f   : > { %1790 = vrot.lane.b32.xlu1 %v3926_v62, %s2962_s18  ;;  %v812_v30 = vpop.f32.mrf.mxu0  ;;  %1629 = vmatprep.mubr.f32.mxu1 %v4844_v36  ;;  %v3938_v41 = vadd.f32 %v1067_v4, %v810_v0  ;;  %v4862_v0 = vld [vmem:[#allocation70_spill] sm:$0xff] }
 0x190   : > { %v1069_v35 = vpop.f32.mrf.mxu1 }
 0x191   : > { %2014 = vrot.lane.b32.xlu0 %v3932_v18, %s2962_s18  ;;  %v816_v48 = vpop.f32.mrf.mxu0  ;;  %1405 = vmatmul.mubr.f32.gmra.mxu0 %v4845_v29  ;;  %v3950_v3 = vadd.f32 %v1069_v35, %v812_v30  ;;  %v4864_v30 = vld [vmem:[#allocation72_spill] sm:$0xff]  ;;  %v4866_v29 = vld [vmem:[#allocation74_spill] sm:$0xff] }
 0x192   : > { %v1073_v53 = vpop.f32.mrf.mxu1  ;;  %1630 = vmatmul.mubr.f32.gmra.mxu1 %v4846_v42  ;;  %1409 = vmatprep.mubr.f32.mxu0 %v4847_v5  ;;  %v4867_v5 = vld [vmem:[#allocation75_spill] sm:$0xff] }
 0x193   : > { %v3944_v60 = vadd.f32 %v1073_v53, %v816_v48  ;;  %1792 = vrot.lane.b32.xlu1 %v3938_v41, %s2962_s18  ;;  %v818_v63 = vpop.f32.mrf.mxu0  ;;  %1634 = vmatprep.mubr.f32.mxu1 %v4848_v2  ;;  %v4865_v53 = vld [vmem:[#allocation73_spill] sm:$0xff]  ;;  %v4868_v2 = vld [vmem:[#allocation76_spill] sm:$0xff] }
 0x194   : > { %v1075_v1 = vpop.f32.mrf.mxu1 }
 0x195   : > { %1794 = vrot.lane.b32.xlu0 %v3944_v60, %s2962_s18  ;;  %v822_v6 = vpop.f32.mrf.mxu0  ;;  %1410 = vmatmul.mubr.f32.gmra.mxu0 %v4849_v9  ;;  %v3956_v13 = vadd.f32 %v1075_v1, %v818_v63 }
 0x196   : > { %v1079_v7 = vpop.f32.mrf.mxu1  ;;  %1635 = vmatmul.mubr.f32.gmra.mxu1 %v4850_v10  ;;  %1414 = vmatprep.mubr.f32.mxu0 %v4851_v14  ;;  %v4869_v10 = vld [vmem:[#allocation77_spill] sm:$0xff]  ;;  %v4870_v14 = vld [vmem:[#allocation78_spill] sm:$0xff] }
 0x197   : > { %2016 = vrot.lane.b32.xlu1 %v3950_v3, %s2962_s18  ;;  %v824_v15 = vpop.f32.mrf.mxu0  ;;  %1639 = vmatprep.mubr.f32.mxu1 %v4852_v19  ;;  %v3962_v20 = vadd.f32 %v1079_v7, %v822_v6 }
 0x198   : > { %v1081_v16 = vpop.f32.mrf.mxu1 }
 0x199   : > { %2018 = vrot.lane.b32.xlu0 %v3956_v13, %s2962_s18  ;;  %v828_v21 = vpop.f32.mrf.mxu0  ;;  %1415 = vmatmul.mubr.f32.gmra.mxu0 %v4853_v25  ;;  %v3974_v37 = vadd.f32 %v1081_v16, %v824_v15  ;;  %v4871_v16 = vld [vmem:[#allocation79_spill] sm:$0xff] }
 0x19a   : > { %v1085_v22 = vpop.f32.mrf.mxu1  ;;  %1640 = vmatmul.mubr.f32.gmra.mxu1 %v4854_v27  ;;  %1419 = vmatprep.mubr.f32.mxu0 %v4855_v31 }
 0x19b   : > { %v3968_v28 = vadd.f32 %v1085_v22, %v828_v21  ;;  %1796 = vrot.lane.b32.xlu1 %v3962_v20, %s2962_s18  ;;  %v830_v32 = vpop.f32.mrf.mxu0  ;;  %1644 = vmatprep.mubr.f32.mxu1 %v4856_v34  ;;  %v4872_v22 = vld [vmem:[#allocation80_spill] sm:$0xff] }
 0x19c   : > { %v1087_v33 = vpop.f32.mrf.mxu1 }
 0x19d   : > { %1798 = vrot.lane.b32.xlu0 %v3968_v28, %s2962_s18  ;;  %v834_v38 = vpop.f32.mrf.mxu0  ;;  %1420 = vmatmul.mubr.f32.gmra.mxu0 %v4857_v43  ;;  %v3980_v45 = vadd.f32 %v1087_v33, %v830_v32  ;;  %v4873_v32 = vld [vmem:[#allocation81_spill] sm:$0xff]  ;;  %v4874_v33 = vld [vmem:[#allocation82_spill] sm:$0xff] }
 0x19e   : > { %v1091_v40 = vpop.f32.mrf.mxu1  ;;  %1645 = vmatmul.mubr.f32.gmra.mxu1 %v4858_v44  ;;  %1424 = vmatprep.mubr.f32.mxu0 %v4859_v49  ;;  %v4876_v44 = vld [vmem:[#allocation84_spill] sm:$0xff] }
 0x19f   : > { %2020 = vrot.lane.b32.xlu1 %v3974_v37, %s2962_s18  ;;  %v836_v50 = vpop.f32.mrf.mxu0  ;;  %1649 = vmatprep.mubr.f32.mxu1 %v4860_v52  ;;  %v3986_v56 = vadd.f32 %v1091_v40, %v834_v38  ;;  %v4875_v38 = vld [vmem:[#allocation83_spill] sm:$0xff]  ;;  %v4877_v52 = vld [vmem:[#allocation85_spill] sm:$0xff] }
 0x1a0   : > { %v1093_v51 = vpop.f32.mrf.mxu1 }
 0x1a1   : > { %2022 = vrot.lane.b32.xlu0 %v3980_v45, %s2962_s18  ;;  %v840_v57 = vpop.f32.mrf.mxu0  ;;  %1425 = vmatmul.mubr.f32.gmra.mxu0 %v4861_v61  ;;  %v3998_v35 = vadd.f32 %v1093_v51, %v836_v50  ;;  %v4879_v61 = vld [vmem:[#allocation87_spill] sm:$0xff] }
 0x1a2   : > { %v1097_v58 = vpop.f32.mrf.mxu1  ;;  %1650 = vmatmul.mubr.f32.gmra.mxu1 %v4862_v0  ;;  %1429 = vmatprep.mubr.f32.mxu0 %v4863_v12 }
 0x1a3   : > { %v3992_v4 = vadd.f32 %v1097_v58, %v840_v57  ;;  %1800 = vrot.lane.b32.xlu1 %v3986_v56, %s2962_s18  ;;  %v842_v17 = vpop.f32.mrf.mxu0  ;;  %1654 = vmatprep.mubr.f32.mxu1 %v4864_v30  ;;  %v4878_v57 = vld [vmem:[#allocation86_spill] sm:$0xff] }
 0x1a4   : > { %v1099_v23 = vpop.f32.mrf.mxu1 }
 0x1a5   : > { %1802 = vrot.lane.b32.xlu0 %v3992_v4, %s2962_s18  ;;  %v846_v36 = vpop.f32.mrf.mxu0  ;;  %1430 = vmatmul.mubr.f32.gmra.mxu0 %v4865_v53  ;;  %v4004_v42 = vadd.f32 %v1099_v23, %v842_v17  ;;  %v4880_v17 = vld [vmem:[#allocation88_spill] sm:$0xff]  ;;  %v4882_v53 = vld [vmem:[#allocation90_spill] sm:$0xff] }
 0x1a6   : > { %v1103_v48 = vpop.f32.mrf.mxu1  ;;  %1655 = vmatmul.mubr.f32.gmra.mxu1 %v4866_v29  ;;  %1434 = vmatprep.mubr.f32.mxu0 %v4867_v5 }
 0x1a7   : > { %2024 = vrot.lane.b32.xlu1 %v3998_v35, %s2962_s18  ;;  %v848_v63 = vpop.f32.mrf.mxu0  ;;  %1659 = vmatprep.mubr.f32.mxu1 %v4868_v2  ;;  %v4010_v6 = vadd.f32 %v1103_v48, %v846_v36  ;;  %v4881_v48 = vld [vmem:[#allocation89_spill] sm:$0xff] }
 0x1a8   : > { %v1105_v1 = vpop.f32.mrf.mxu1 }
 0x1a9   : > { %2026 = vrot.lane.b32.xlu0 %v4004_v42, %s2962_s18  ;;  %v852_v7 = vpop.f32.mrf.mxu0  ;;  %1435 = vmatmul.mubr.f32.gmra.mxu0 %v4869_v10  ;;  %v4022_v25 = vadd.f32 %v1105_v1, %v848_v63  ;;  %v4884_v10 = vld [vmem:[#allocation92_spill] sm:$0xff] }
 0x1aa   : > { %v1109_v9 = vpop.f32.mrf.mxu1  ;;  %1660 = vmatmul.mubr.f32.gmra.mxu1 %v4870_v14  ;;  %1439 = vmatprep.mubr.f32.mxu0 %v4871_v16 }
 0x1ab   : > { %v4016_v15 = vadd.f32 %v1109_v9, %v852_v7  ;;  %1804 = vrot.lane.b32.xlu1 %v4010_v6, %s2962_s18  ;;  %v854_v19 = vpop.f32.mrf.mxu0  ;;  %1664 = vmatprep.mubr.f32.mxu1 %v4872_v22  ;;  %v4883_v9 = vld [vmem:[#allocation91_spill] sm:$0xff] }
 0x1ac   : > { %v1111_v21 = vpop.f32.mrf.mxu1 }
 0x1ad   : > { %1806 = vrot.lane.b32.xlu0 %v4016_v15, %s2962_s18  ;;  %v858_v27 = vpop.f32.mrf.mxu0  ;;  %1440 = vmatmul.mubr.f32.gmra.mxu0 %v4873_v32  ;;  %v4028_v34 = vadd.f32 %v1111_v21, %v854_v19 }
 0x1ae   : > { %v1115_v31 = vpop.f32.mrf.mxu1  ;;  %1665 = vmatmul.mubr.f32.gmra.mxu1 %v4874_v33  ;;  %1444 = vmatprep.mubr.f32.mxu0 %v4875_v38 }
 0x1af   : > { %2028 = vrot.lane.b32.xlu1 %v4022_v25, %s2962_s18  ;;  %v860_v40 = vpop.f32.mrf.mxu0  ;;  %1669 = vmatprep.mubr.f32.mxu1 %v4876_v44  ;;  %v4034_v49 = vadd.f32 %v1115_v31, %v858_v27 }
 0x1b0   : > { %v1117_v43 = vpop.f32.mrf.mxu1 }
 0x1b1   : > { %2030 = vrot.lane.b32.xlu0 %v4028_v34, %s2962_s18  ;;  %v864_v50 = vpop.f32.mrf.mxu0  ;;  %1445 = vmatmul.mubr.f32.gmra.mxu0 %v4877_v52  ;;  %v4046_v23 = vadd.f32 %v1117_v43, %v860_v40 }
 0x1b2   : > { %v1121_v51 = vpop.f32.mrf.mxu1  ;;  %1670 = vmatmul.mubr.f32.gmra.mxu1 %v4878_v57  ;;  %1449 = vmatprep.mubr.f32.mxu0 %v4879_v61 }
 0x1b3   : > { %v4040_v58 = vadd.f32 %v1121_v51, %v864_v50  ;;  %1808 = vrot.lane.b32.xlu1 %v4034_v49, %s2962_s18  ;;  %v866_v0 = vpop.f32.mrf.mxu0  ;;  %1674 = vmatprep.mubr.f32.mxu1 %v4880_v17 }
 0x1b4   : > { %v1123_v12 = vpop.f32.mrf.mxu1 }
 0x1b5   : > { %1810 = vrot.lane.b32.xlu0 %v4040_v58, %s2962_s18  ;;  %v870_v30 = vpop.f32.mrf.mxu0  ;;  %1450 = vmatmul.mubr.f32.gmra.mxu0 %v4881_v48  ;;  %v4052_v29 = vadd.f32 %v1123_v12, %v866_v0 }
 0x1b6   : > { %v1127_v36 = vpop.f32.mrf.mxu1  ;;  %1675 = vmatmul.mubr.f32.gmra.mxu1 %v4882_v53  ;;  %1454 = vmatprep.mubr.f32.mxu0 %v3797_v11 }
 0x1b7   : > { %2032 = vrot.lane.b32.xlu1 %v4046_v23, %s2962_s18  ;;  %v872_v5 = vpop.f32.mrf.mxu0  ;;  %1679 = vmatprep.mubr.f32.mxu1 %v3800_v24  ;;  %v4058_v1 = vadd.f32 %v1127_v36, %v870_v30 }
 0x1b8   : > { %v1129_v63 = vpop.f32.mrf.mxu1 }
 0x1b9   : > { %2034 = vrot.lane.b32.xlu0 %v4052_v29, %s2962_s18  ;;  %v876_v2 = vpop.f32.mrf.mxu0  ;;  %1455 = vmatmul.mubr.f32.gmra.mxu0 %v4883_v9  ;;  %v4070_v16 = vadd.f32 %v1129_v63, %v872_v5 }
 0x1ba   : > { %v1133_v7 = vpop.f32.mrf.mxu1  ;;  %1680 = vmatmul.mubr.f32.gmra.mxu1 %v4884_v10  ;;  %1459 = vmatprep.mubr.f32.mxu0 %v3815_v8 }
 0x1bb   : > { %v4064_v14 = vadd.f32 %v1133_v7, %v876_v2  ;;  %1812 = vrot.lane.b32.xlu1 %v4058_v1, %s2962_s18  ;;  %v878_v11 = vpop.f32.mrf.mxu0  ;;  %1684 = vmatprep.mubr.f32.mxu1 %v3818_v54 }
 0x1bc   : > { %v1135_v24 = vpop.f32.mrf.mxu1 }
 0x1bd   : > { %1814 = vrot.lane.b32.xlu0 %v4064_v14, %s2962_s18  ;;  %v882_v19 = vpop.f32.mrf.mxu0  ;;  %1460 = vmatmul.mubr.f32.gmra.mxu0 %v3823_v47  ;;  %v4076_v22 = vadd.f32 %v1135_v24, %v878_v11 }
 0x1be   : > { %v1139_v21 = vpop.f32.mrf.mxu1  ;;  %1685 = vmatmul.mubr.f32.gmra.mxu1 %v3826_v59 }
 0x1bf   : > { %2036 = vrot.lane.b32.xlu1 %v4070_v16, %s2962_s18  ;;  %v884_v8 = vpop.f32.mrf.mxu0  ;;  %v4080_v31 = vadd.f32 %v1139_v21, %v882_v19 }
 0x1c0   : > { %v1141_v27 = vpop.f32.mrf.mxu1 }
 0x1c1   : > { %2038 = vrot.lane.b32.xlu0 %v4076_v22, %s2962_s18  ;;  %v888_v54 = vpop.f32.mrf.mxu0  ;;  %v4088_v38 = vadd.f32 %v1141_v27, %v884_v8 }
 0x1c2   : > { %v1145_v32 = vpop.f32.mrf.mxu1 }
 0x1c3   : > { %v4084_v33 = vadd.f32 %v1145_v32, %v888_v54  ;;  %1816 = vrot.lane.b32.xlu1 %v4080_v31, %s2962_s18  ;;  %v890_v47 = vpop.f32.mrf.mxu0 }
 0x1c4   : > { %v1147_v59 = vpop.f32.mrf.mxu1 }
 0x1c5   : > { %1818 = vrot.lane.b32.xlu0 %v4084_v33, %s2962_s18  ;;  %v894_v40 = vpop.f32.mrf.mxu0  ;;  %v4092_v44 = vadd.f32 %v1147_v59, %v890_v47 }
 0x1c6   : > { %v1151_v43 = vpop.f32.mrf.mxu1 }
 0x1c7   : > { %2040 = vrot.lane.b32.xlu1 %v4088_v38, %s2962_s18  ;;  %v896_v50 = vpop.f32.mrf.mxu0  ;;  %v4096_v52 = vadd.f32 %v1151_v43, %v894_v40 }
 0x1c8   : > { %v1153_v51 = vpop.f32.mrf.mxu1 }
 0x1c9   : > { %2042 = vrot.lane.b32.xlu0 %v4092_v44, %s2962_s18  ;;  %v900_v57 = vpop.f32.mrf.mxu0  ;;  %v4104_v30 = vadd.f32 %v1153_v51, %v896_v50 }
 0x1ca   : > { %v1157_v61 = vpop.f32.mrf.mxu1 }
 0x1cb   : > { %v4100_v0 = vadd.f32 %v1157_v61, %v900_v57  ;;  %1820 = vrot.lane.b32.xlu1 %v4096_v52, %s2962_s18  ;;  %v902_v12 = vpop.f32.mrf.mxu0 }
 0x1cc   : > { %v1159_v17 = vpop.f32.mrf.mxu1 }
 0x1cd   : > { %1822 = vrot.lane.b32.xlu0 %v4100_v0, %s2962_s18  ;;  %v906_v36 = vpop.f32.mrf.mxu0  ;;  %v4108_v53 = vadd.f32 %v1159_v17, %v902_v12 }
 0x1ce   : > { %v1163_v48 = vpop.f32.mrf.mxu1 }
 0x1cf   : > { %2044 = vrot.lane.b32.xlu1 %v4104_v30, %s2962_s18  ;;  %v908_v5 = vpop.f32.mrf.mxu0  ;;  %v4112_v2 = vadd.f32 %v1163_v48, %v906_v36 }
 0x1d0   : > { %v1165_v63 = vpop.f32.mrf.mxu1 }
 0x1d1   : > { %2046 = vrot.lane.b32.xlu0 %v4108_v53, %s2962_s18  ;;  %v912_v7 = vpop.f32.mrf.mxu0  ;;  %v4120_v19 = vadd.f32 %v1165_v63, %v908_v5 }
 0x1d2   : > { %v1169_v9 = vpop.f32.mrf.mxu1 }
 0x1d3   : > { %v4116_v10 = vadd.f32 %v1169_v9, %v912_v7  ;;  %1824 = vrot.lane.b32.xlu1 %v4112_v2, %s2962_s18  ;;  %v914_v11 = vpop.f32.mrf.mxu0 }
 0x1d4   : > { %v1171_v24 = vpop.f32.mrf.mxu1 }
 0x1d5   : > { %1826 = vrot.lane.b32.xlu0 %v4116_v10, %s2962_s18  ;;  %v918_v21 = vpop.f32.mrf.mxu0  ;;  %v4124_v27 = vadd.f32 %v1171_v24, %v914_v11 }
 0x1d6   : > { %v1175_v8 = vpop.f32.mrf.mxu1 }
 0x1d7   : > { %2048 = vrot.lane.b32.xlu1 %v4120_v19, %s2962_s18  ;;  %v920_v54 = vpop.f32.mrf.mxu0  ;;  %v4128_v47 = vadd.f32 %v1175_v8, %v918_v21 }
 0x1d8   : > { %v1177_v32 = vpop.f32.mrf.mxu1 }
 0x1d9   : > { %2050 = vrot.lane.b32.xlu0 %v4124_v27, %s2962_s18  ;;  %v924_v59 = vpop.f32.mrf.mxu0  ;;  %v4136_v57 = vadd.f32 %v1177_v32, %v920_v54 }
 0x1da   : > { %v1181_v40 = vpop.f32.mrf.mxu1 }
 0x1db   : > { %v4132_v43 = vadd.f32 %v1181_v40, %v924_v59  ;;  %1828 = vrot.lane.b32.xlu1 %v4128_v47, %s2962_s18  ;;  %v926_v50 = vpop.f32.mrf.mxu0 }
 0x1dc   : > { %v1183_v51 = vpop.f32.mrf.mxu1 }
 0x1dd   : > { %1830 = vrot.lane.b32.xlu0 %v4132_v43, %s2962_s18  ;;  %v930_v61 = vpop.f32.mrf.mxu0  ;;  %v4140_v17 = vadd.f32 %v1183_v51, %v926_v50 }
 0x1de   : > { %v1187_v12 = vpop.f32.mrf.mxu1 }
 0x1df   : > { %2052 = vrot.lane.b32.xlu1 %v4136_v57, %s2962_s18  ;;  %v932_v36 = vpop.f32.mrf.mxu0  ;;  %v4144_v5 = vadd.f32 %v1187_v12, %v930_v61 }
 0x1e0   : > { %v1189_v48 = vpop.f32.mrf.mxu1 }
 0x1e1   : > { %4885 = vst [vmem:[#allocation24_spill] sm:$0xff] %v4144_v5  ;;  %2054 = vrot.lane.b32.xlu0 %v4140_v17, %s2962_s18  ;;  %v936_v63 = vpop.f32.mrf.mxu0  ;;  %v4152_v21 = vadd.f32 %v1189_v48, %v932_v36 }
 0x1e2   : > { %v1193_v7 = vpop.f32.mrf.mxu1 }
 0x1e3   : > { %v4148_v9 = vadd.f32 %v1193_v7, %v936_v63  ;;  %1832 = vrot.lane.b32.xlu1 %v4144_v5, %s2962_s18  ;;  %v938_v11 = vpop.f32.mrf.mxu0  ;;  %4887 = vst [vmem:[#allocation26_spill] sm:$0xff] %v4152_v21 }
 0x1e4   : > { %v1195_v24 = vpop.f32.mrf.mxu1 }
 0x1e5   : > { %4886 = vst [vmem:[#allocation25_spill] sm:$0xff] %v4148_v9  ;;  %1834 = vrot.lane.b32.xlu0 %v4148_v9, %s2962_s18  ;;  %v942_v8 = vpop.f32.mrf.mxu0  ;;  %v4156_v32 = vadd.f32 %v1195_v24, %v938_v11 }
 0x1e6   : > { %v1199_v54 = vpop.f32.mrf.mxu1 }
 0x1e7   : > { %4888 = vst [vmem:[#allocation27_spill] sm:$0xff] %v4156_v32  ;;  %2056 = vrot.lane.b32.xlu1 %v4152_v21, %s2962_s18  ;;  %v944_v59 = vpop.f32.mrf.mxu0  ;;  %v4160_v50 = vadd.f32 %v1199_v54, %v942_v8 }
 0x1e8   : > { %v1201_v40 = vpop.f32.mrf.mxu1 }
 0x1e9   : > { %4889 = vst [vmem:[#allocation28_spill] sm:$0xff] %v4160_v50  ;;  %2058 = vrot.lane.b32.xlu0 %v4156_v32, %s2962_s18  ;;  %v948_v51 = vpop.f32.mrf.mxu0  ;;  %v4168_v63 = vadd.f32 %v1201_v40, %v944_v59 }
 0x1ea   : > { %v1205_v61 = vpop.f32.mrf.mxu1 }
 0x1eb   : > { %v4164_v12 = vadd.f32 %v1205_v61, %v948_v51  ;;  %1836 = vrot.lane.b32.xlu1 %v4160_v50, %s2962_s18  ;;  %v950_v36 = vpop.f32.mrf.mxu0  ;;  %4891 = vst [vmem:[#allocation30_spill] sm:$0xff] %v4168_v63 }
 0x1ec   : > { %v1207_v48 = vpop.f32.mrf.mxu1 }
 0x1ed   : > { %4890 = vst [vmem:[#allocation29_spill] sm:$0xff] %v4164_v12  ;;  %1838 = vrot.lane.b32.xlu0 %v4164_v12, %s2962_s18  ;;  %v954_v7 = vpop.f32.mrf.mxu0  ;;  %v4172_v24 = vadd.f32 %v1207_v48, %v950_v36  ;;  %v1690_v12 = vld [vmem:[%s3252_s5] sm:$0xff] }
 0x1ee   : > { %v1211_v11 = vpop.f32.mrf.mxu1 }
 0x1ef   : > { %4892 = vst [vmem:[#allocation31_spill] sm:$0xff] %v4172_v24  ;;  %2060 = vrot.lane.b32.xlu1 %v4168_v63, %s2962_s18  ;;  %v956_v8 = vpop.f32.mrf.mxu0  ;;  %v4176_v51 = vadd.f32 %v1211_v11, %v954_v7  ;;  %v1722_v7 = vld [vmem:[%s4190_s19] sm:$0xff] }
 0x1f0   : > { %v1213_v54 = vpop.f32.mrf.mxu1 }
 0x1f1   : > { %4893 = vst [vmem:[#allocation32_spill] sm:$0xff] %v4176_v51  ;;  %2062 = vrot.lane.b32.xlu0 %v4172_v24, %s2962_s18  ;;  %v960_v59 = vpop.f32.mrf.mxu0  ;;  %v4185_v50 = vadd.f32 %v1213_v54, %v956_v8 }
 0x1f2   : > { %v1217_v40 = vpop.f32.mrf.mxu1 }
 0x1f3   : > { %v4180_v61 = vadd.f32 %v1217_v40, %v960_v59  ;;  %1840 = vrot.lane.b32.xlu1 %v4176_v51, %s2962_s18  ;;  %v962_v36 = vpop.f32.mrf.mxu0  ;;  %4895 = vst [vmem:[#allocation34_spill] sm:$0xff] %v4185_v50  ;;  %v1754_v40 = vmul.f32 %v1690_v12, %v3902_v26  ;;  %v1723_v26 = vld [vmem:[%s4190_s19 + $0x8] sm:$0xff] }
 0x1f4   : > { %v1219_v48 = vpop.f32.mrf.mxu1 }
 0x1f5   : > { %4894 = vst [vmem:[#allocation33_spill] sm:$0xff] %v4180_v61  ;;  %1842 = vrot.lane.b32.xlu0 %v4180_v61, %s2962_s18  ;;  %v966_v11 = vpop.f32.mrf.mxu0  ;;  %v4193_v63 = vadd.f32 %v1219_v48, %v962_v36 }
 0x1f6   : > { %v1223_v24 = vpop.f32.mrf.mxu1 }
 0x1f7   : > { %4896 = vst [vmem:[#allocation35_spill] sm:$0xff] %v4193_v63  ;;  %v1787_v59 = vpop.permute.xlu0 %1786  ;;  %2064 = vrot.lane.b32.xlu1 %v4185_v50, %s2962_s18  ;;  %v968_v54 = vpop.f32.mrf.mxu0  ;;  %v4201_v51 = vadd.f32 %v1223_v24, %v966_v11 }
 0x1f8   : > { %v1850_v8 = vmul.f32 %v1787_v59, %v1722_v7  ;;  %v1225_v61 = vpop.f32.mrf.mxu1  ;;  %v1978_v59 = vmul.f32 %v1690_v12, %v3910_v39 }
 0x1f9   : > { %2066 = vrot.lane.b32.xlu0 %v4193_v63, %s2962_s18  ;;  %v972_v48 = vpop.f32.mrf.mxu0  ;;  %v1691_v63 = vld [vmem:[%s3252_s5 + $0x8] sm:$0xff] }
 0x1fa   : > { %v1882_v36 = vadd.f32 %v1850_v8, %v1754_v40  ;;  %v1229_v32 = vpop.f32.mrf.mxu1  ;;  %v4212_v40 = vadd.f32 %v1225_v61, %v968_v54  ;;  %v1724_v54 = vld [vmem:[%s4190_s19 + $0x10] sm:$0xff] }
 0x1fb   : > { %v4205_v21 = vadd.f32 %v1229_v32, %v972_v48  ;;  %v2011_v50 = vpop.permute.xlu0 %2010  ;;  %1844 = vrot.lane.b32.xlu1 %v4201_v51, %s2962_s18  ;;  %v974_v11 = vpop.f32.mrf.mxu0  ;;  %v1979_v32 = vmul.f32 %v1691_v63, %v3916_v46 }
 0x1fc   : > { %v1914_v9 = vmul.f32 0.044194173, %v1882_v36  ;;  %v2074_v24 = vmul.f32 %v2011_v50, %v1722_v7  ;;  %v1231_v5 = vpop.f32.mrf.mxu1  ;;  %4898 = vst [vmem:[#allocation37_spill] sm:$0xff] %v4212_v40  ;;  %v1692_v36 = vld [vmem:[%s3252_s5 + $0x10] sm:$0xff] }
 0x1fd   : > { %4897 = vst [vmem:[#allocation36_spill] sm:$0xff] %v4205_v21  ;;  %v2013_v8 = vpop.permute.xlu1 %2012  ;;  %1846 = vrot.lane.b32.xlu0 %v4205_v21, %s2962_s18  ;;  %v978_v50 = vpop.f32.mrf.mxu0  ;;  %v4222_v48 = vadd.f32 %v1231_v5, %v974_v11  ;;  %v1755_v21 = vmul.f32 %v1691_v63, %v3920_v55 }
 0x1fe   : > { %1946 = vst [vmem:[%s4218_s17] sm:$0xff] %v1914_v9  ;;  %v2106_v39 = vadd.f32 %v2074_v24, %v1978_v59  ;;  %v2075_v12 = vmul.f32 %v2013_v8, %v1723_v26  ;;  %v1235_v7 = vpop.f32.mrf.mxu1  ;;  %v1756_v8 = vmul.f32 %v1692_v36, %v3926_v62 }
 0x1ff   : > { %4899 = vst [vmem:[#allocation38_spill] sm:$0xff] %v4222_v48  ;;  %v1789_v61 = vpop.permute.xlu0 %1788  ;;  %2068 = vrot.lane.b32.xlu1 %v4212_v40, %s2962_s18  ;;  %v980_v59 = vpop.f32.mrf.mxu0  ;;  %v4232_v5 = vadd.f32 %v1235_v7, %v978_v50  ;;  %v1725_v50 = vld [vmem:[%s4190_s19 + $0x18] sm:$0xff]  ;;  %v1980_v7 = vmul.f32 %v1692_v36, %v3932_v18 }
 0x200   : > { %2138 = vst [vmem:[%s4229_s12] sm:$0xff] %v2106_v39  ;;  %v2107_v46 = vadd.f32 %v2075_v12, %v1979_v32  ;;  %v1851_v9 = vmul.f32 %v1789_v61, %v1723_v26  ;;  %v1237_v24 = vpop.f32.mrf.mxu1  ;;  %v1693_v32 = vld [vmem:[%s3252_s5 + $0x18] sm:$0xff] }
 0x201   : > { %4900 = vst [vmem:[#allocation39_spill] sm:$0xff] %v4232_v5  ;;  %v1791_v11 = vpop.permute.xlu1 %1790  ;;  %2070 = vrot.lane.b32.xlu0 %v4222_v48, %s2962_s18  ;;  %v1306_v40 = vpop.f32.mrf.mxu0 }
 0x202   : > { %2139 = vst [vmem:[%s4229_s12 + $0x8] sm:$0xff] %v2107_v46  ;;  %v1883_v55 = vadd.f32 %v1851_v9, %v1755_v21  ;;  %v1852_v63 = vmul.f32 %v1791_v11, %v1724_v54  ;;  %v1531_v39 = vpop.f32.mrf.mxu1  ;;  %v1694_v9 = vld [vmem:[%s3252_s5 + $0x20] sm:$0xff]  ;;  %v4244_v11 = vadd.f32 %v1237_v24, %v980_v59 }
 0x203   : > { %v1532_v26 = vadd.f32 %v1531_v39, %v1306_v40  ;;  %v2015_v12 = vpop.permute.xlu0 %2014  ;;  %1848 = vrot.lane.b32.xlu1 %v4232_v5, %s2962_s18  ;;  %v1308_v48 = vpop.f32.mrf.mxu0  ;;  %v1726_v39 = vld [vmem:[%s4190_s19 + $0x20] sm:$0xff]  ;;  %v1757_v5 = vmul.f32 %v1693_v32, %v3938_v41  ;;  %v1758_v24 = vmul.f32 %v1694_v9, %v3944_v60 }
 0x204   : > { %v1915_v61 = vmul.f32 0.044194173, %v1883_v55  ;;  %v1884_v62 = vadd.f32 %v1852_v63, %v1756_v8  ;;  %v2076_v46 = vmul.f32 %v2015_v12, %v1724_v54  ;;  %v1533_v21 = vpop.f32.mrf.mxu1 }
 0x205   : > { %2170 = vst [vmem:[%s4247_s16] sm:$0xff] %v1532_v26  ;;  %v1793_v40 = vpop.permute.xlu1 %1792  ;;  %v1311_v48 = vpop.f32.mrf.mxu0 }
 0x206   : > { %1947 = vst [vmem:[%s4218_s17 + $0x8] sm:$0xff] %v1915_v61  ;;  %v1916_v18 = vmul.f32 0.044194173, %v1884_v62  ;;  %v2108_v36 = vadd.f32 %v2076_v46, %v1980_v7  ;;  %v1853_v54 = vmul.f32 %v1793_v40, %v1725_v50  ;;  %v1536_v8 = vpop.f32.mrf.mxu1  ;;  %v1981_v61 = vmul.f32 %v1693_v32, %v3950_v3 }
 0x207   : > { %v1537_v55 = vadd.f32 %v1536_v8, %v1311_v48  ;;  %v1795_v59 = vpop.permute.xlu0 %1794  ;;  %2072 = vrot.lane.b32.xlu1 %v4244_v11, %s2962_s18  ;;  %v1313_v26 = vpop.f32.mrf.mxu0  ;;  %v1982_v48 = vmul.f32 %v1694_v9, %v3956_v13  ;;  %s4919_s18 = sld [smem:[#allocation97_spill]] }
 0x208   : > { %1948 = vst [vmem:[%s4218_s17 + $0x10] sm:$0xff] %v1916_v18  ;;  %2140 = vst [vmem:[%s4229_s12 + $0x10] sm:$0xff] %v2108_v36  ;;  %v1885_v63 = vadd.f32 %v1853_v54, %v1757_v5  ;;  %v1854_v41 = vmul.f32 %v1795_v59, %v1726_v39  ;;  %v1538_v12 = vpop.f32.mrf.mxu1  ;;  %v1695_v18 = vld [vmem:[%s3252_s5 + $0x28] sm:$0xff] }
 0x209   : > { %2171 = vst [vmem:[%s4247_s16 + $0x8] sm:$0xff] %v1537_v55  ;;  %v2017_v7 = vpop.permute.xlu1 %2016  ;;  %v1316_v40 = vpop.f32.mrf.mxu0  ;;  %v1727_v54 = vld [vmem:[%s4190_s19 + $0x28] sm:$0xff] }
 0x20a   : > { %v1917_v62 = vmul.f32 0.044194173, %v1885_v63  ;;  %v1886_v46 = vadd.f32 %v1854_v41, %v1758_v24  ;;  %v2077_v21 = vmul.f32 %v2017_v7, %v1725_v50  ;;  %v1541_v60 = vpop.f32.mrf.mxu1  ;;  %v1696_v24 = vld [vmem:[%s3252_s5 + $0x30] sm:$0xff]  ;;  %v1759_v41 = vmul.f32 %v1695_v18, %v3962_v20 }
 0x20b   : > { %v1542_v36 = vadd.f32 %v1541_v60, %v1316_v40  ;;  %v2019_v5 = vpop.permute.xlu0 %2018  ;;  %v1318_v32 = vpop.f32.mrf.mxu0  ;;  %v1728_v63 = vld [vmem:[%s4190_s19 + $0x30] sm:$0xff]  ;;  %v1983_v60 = vmul.f32 %v1695_v18, %v3974_v37 }
 0x20c   : > { %1949 = vst [vmem:[%s4218_s17 + $0x18] sm:$0xff] %v1917_v62  ;;  %v1918_v8 = vmul.f32 0.044194173, %v1886_v46  ;;  %v2109_v55 = vadd.f32 %v2077_v21, %v1981_v61  ;;  %v2078_v3 = vmul.f32 %v2019_v5, %v1726_v39  ;;  %v1543_v59 = vpop.f32.mrf.mxu1  ;;  %v1760_v39 = vmul.f32 %v1696_v24, %v3968_v28  ;;  %v1697_v28 = vld [vmem:[%s3252_s5 + $0x38] sm:$0xff] }
 0x20d   : > { %2172 = vst [vmem:[%s4247_s16 + $0x10] sm:$0xff] %v1542_v36  ;;  %v1797_v50 = vpop.permute.xlu1 %1796  ;;  %v1321_v7 = vpop.f32.mrf.mxu0  ;;  %v1729_v59 = vld [vmem:[%s4190_s19 + $0x38] sm:$0xff] }
 0x20e   : > { %1950 = vst [vmem:[%s4218_s17 + $0x20] sm:$0xff] %v1918_v8  ;;  %2141 = vst [vmem:[%s4229_s12 + $0x18] sm:$0xff] %v2109_v55  ;;  %v2110_v26 = vadd.f32 %v2078_v3, %v1982_v48  ;;  %v1855_v12 = vmul.f32 %v1797_v50, %v1727_v54  ;;  %v1546_v13 = vpop.f32.mrf.mxu1  ;;  %v1984_v50 = vmul.f32 %v1696_v24, %v3980_v45 }
 0x20f   : > { %v1547_v9 = vadd.f32 %v1546_v13, %v1321_v7  ;;  %v1799_v61 = vpop.permute.xlu0 %1798  ;;  %v1323_v21 = vpop.f32.mrf.mxu0  ;;  %v1698_v7 = vld [vmem:[%s3252_s5 + $0x40] sm:$0xff] }
 0x210   : > { %2142 = vst [vmem:[%s4229_s12 + $0x20] sm:$0xff] %v2110_v26  ;;  %v1887_v62 = vadd.f32 %v1855_v12, %v1759_v41  ;;  %v1856_v46 = vmul.f32 %v1799_v61, %v1728_v63  ;;  %v1548_v40 = vpop.f32.mrf.mxu1  ;;  %v1730_v13 = vld [vmem:[%s4190_s19 + $0x40] sm:$0xff] }
 0x211   : > { %2173 = vst [vmem:[%s4247_s16 + $0x18] sm:$0xff] %v1547_v9  ;;  %v2021_v20 = vpop.permute.xlu1 %2020  ;;  %v1326_v8 = vpop.f32.mrf.mxu0  ;;  %v1761_v9 = vmul.f32 %v1697_v28, %v3986_v56 }
 0x212   : > { %v1919_v36 = vmul.f32 0.044194173, %v1887_v62  ;;  %v1888_v5 = vadd.f32 %v1856_v46, %v1760_v39  ;;  %v2079_v48 = vmul.f32 %v2021_v20, %v1727_v54  ;;  %v1551_v55 = vpop.f32.mrf.mxu1 }
 0x213   : > { %v1552_v3 = vadd.f32 %v1551_v55, %v1326_v8  ;;  %v2023_v32 = vpop.permute.xlu0 %2022  ;;  %v1328_v18 = vpop.f32.mrf.mxu0 }
 0x214   : > { %1951 = vst [vmem:[%s4218_s17 + $0x28] sm:$0xff] %v1919_v36  ;;  %v1920_v41 = vmul.f32 0.044194173, %v1888_v5  ;;  %v2111_v26 = vadd.f32 %v2079_v48, %v1983_v60  ;;  %v2080_v37 = vmul.f32 %v2023_v32, %v1728_v63  ;;  %v1553_v12 = vpop.f32.mrf.mxu1  ;;  %v1762_v63 = vmul.f32 %v1698_v7, %v3992_v4  ;;  %v1699_v4 = vld [vmem:[%s3252_s5 + $0x48] sm:$0xff] }
 0x215   : > { %2174 = vst [vmem:[%s4247_s16 + $0x20] sm:$0xff] %v1552_v3  ;;  %v1801_v54 = vpop.permute.xlu1 %1800  ;;  %v1331_v62 = vpop.f32.mrf.mxu0  ;;  %v1985_v36 = vmul.f32 %v1697_v28, %v3998_v35 }
 0x216   : > { %1952 = vst [vmem:[%s4218_s17 + $0x30] sm:$0xff] %v1920_v41  ;;  %2143 = vst [vmem:[%s4229_s12 + $0x28] sm:$0xff] %v2111_v26  ;;  %v2112_v61 = vadd.f32 %v2080_v37, %v1984_v50  ;;  %v1857_v39 = vmul.f32 %v1801_v54, %v1729_v59  ;;  %v1556_v45 = vpop.f32.mrf.mxu1  ;;  %v1731_v41 = vld [vmem:[%s4190_s19 + $0x48] sm:$0xff]  ;;  %v1986_v26 = vmul.f32 %v1698_v7, %v4004_v42  ;;  %v1700_v54 = vld [vmem:[%s3252_s5 + $0x50] sm:$0xff] }
 0x217   : > { %v1557_v24 = vadd.f32 %v1556_v45, %v1331_v62  ;;  %v1803_v46 = vpop.permute.xlu0 %1802  ;;  %v1333_v20 = vpop.f32.mrf.mxu0 }
 0x218   : > { %2144 = vst [vmem:[%s4229_s12 + $0x30] sm:$0xff] %v2112_v61  ;;  %v1889_v21 = vadd.f32 %v1857_v39, %v1761_v9  ;;  %v1858_v40 = vmul.f32 %v1803_v46, %v1730_v13  ;;  %v1558_v60 = vpop.f32.mrf.mxu1  ;;  %v1732_v9 = vld [vmem:[%s4190_s19 + $0x50] sm:$0xff]  ;;  %v1763_v61 = vmul.f32 %v1699_v4, %v4010_v6  ;;  %v1987_v20 = vmul.f32 %v1699_v4, %v4022_v25 }
 0x219   : > { %2175 = vst [vmem:[%s4247_s16 + $0x28] sm:$0xff] %v1557_v24  ;;  %v2025_v56 = vpop.permute.xlu1 %2024  ;;  %v1336_v55 = vpop.f32.mrf.mxu0 }
 0x21a   : > { %v1921_v5 = vmul.f32 0.044194173, %v1889_v21  ;;  %v1890_v48 = vadd.f32 %v1858_v40, %v1762_v63  ;;  %v2081_v8 = vmul.f32 %v2025_v56, %v1729_v59  ;;  %v1561_v3 = vpop.f32.mrf.mxu1 }
 0x21b   : > { %v1562_v32 = vadd.f32 %v1561_v3, %v1336_v55  ;;  %v2027_v50 = vpop.permute.xlu0 %2026  ;;  %v1338_v28 = vpop.f32.mrf.mxu0  ;;  %v1733_v3 = vld [vmem:[%s4190_s19 + $0x58] sm:$0xff] }
 0x21c   : > { %1953 = vst [vmem:[%s4218_s17 + $0x38] sm:$0xff] %v1921_v5  ;;  %v1922_v37 = vmul.f32 0.044194173, %v1890_v48  ;;  %v2113_v18 = vadd.f32 %v2081_v8, %v1985_v36  ;;  %v2082_v35 = vmul.f32 %v2027_v50, %v1730_v13  ;;  %v1563_v12 = vpop.f32.mrf.mxu1  ;;  %v1764_v13 = vmul.f32 %v1700_v54, %v4016_v15  ;;  %v1701_v15 = vld [vmem:[%s3252_s5 + $0x58] sm:$0xff] }
 0x21d   : > { %2176 = vst [vmem:[%s4247_s16 + $0x30] sm:$0xff] %v1562_v32  ;;  %v1805_v59 = vpop.permute.xlu1 %1804  ;;  %v1341_v45 = vpop.f32.mrf.mxu0  ;;  %v1988_v32 = vmul.f32 %v1700_v54, %v4028_v34  ;;  %v1765_v28 = vmul.f32 %v1701_v15, %v4034_v49 }
 0x21e   : > { %1954 = vst [vmem:[%s4218_s17 + $0x40] sm:$0xff] %v1922_v37  ;;  %2145 = vst [vmem:[%s4229_s12 + $0x38] sm:$0xff] %v2113_v18  ;;  %v2114_v39 = vadd.f32 %v2082_v35, %v1986_v26  ;;  %v1859_v62 = vmul.f32 %v1805_v59, %v1731_v41  ;;  %v1566_v42 = vpop.f32.mrf.mxu1  ;;  %v1702_v18 = vld [vmem:[%s3252_s5 + $0x60] sm:$0xff] }
 0x21f   : > { %v1567_v7 = vadd.f32 %v1566_v42, %v1341_v45  ;;  %v1807_v24 = vpop.permute.xlu0 %1806  ;;  %v1343_v21 = vpop.f32.mrf.mxu0  ;;  %v1734_v35 = vld [vmem:[%s4190_s19 + $0x60] sm:$0xff] }
 0x220   : > { %2146 = vst [vmem:[%s4229_s12 + $0x40] sm:$0xff] %v2114_v39  ;;  %v1891_v46 = vadd.f32 %v1859_v62, %v1763_v61  ;;  %v1860_v63 = vmul.f32 %v1807_v24, %v1732_v9  ;;  %v1568_v40 = vpop.f32.mrf.mxu1  ;;  %v1989_v24 = vmul.f32 %v1701_v15, %v4046_v23 }
 0x221   : > { %2177 = vst [vmem:[%s4247_s16 + $0x38] sm:$0xff] %v1567_v7  ;;  %v2029_v6 = vpop.permute.xlu1 %2028  ;;  %v1346_v5 = vpop.f32.mrf.mxu0 }
 0x222   : > { %v1923_v60 = vmul.f32 0.044194173, %v1891_v46  ;;  %v1892_v56 = vadd.f32 %v1860_v63, %v1764_v13  ;;  %v2083_v36 = vmul.f32 %v2029_v6, %v1731_v41  ;;  %v1571_v48 = vpop.f32.mrf.mxu1 }
 0x223   : > { %v1572_v8 = vadd.f32 %v1571_v48, %v1346_v5  ;;  %v2031_v55 = vpop.permute.xlu0 %2030  ;;  %v1348_v4 = vpop.f32.mrf.mxu0 }
 0x224   : > { %1955 = vst [vmem:[%s4218_s17 + $0x48] sm:$0xff] %v1923_v60  ;;  %v1924_v50 = vmul.f32 0.044194173, %v1892_v56  ;;  %v2115_v26 = vadd.f32 %v2083_v36, %v1987_v20  ;;  %v2084_v25 = vmul.f32 %v2031_v55, %v1732_v9  ;;  %v1573_v37 = vpop.f32.mrf.mxu1  ;;  %v1766_v9 = vmul.f32 %v1702_v18, %v4040_v58  ;;  %v1703_v58 = vld [vmem:[%s3252_s5 + $0x68] sm:$0xff] }
 0x225   : > { %2178 = vst [vmem:[%s4247_s16 + $0x40] sm:$0xff] %v1572_v8  ;;  %v1809_v41 = vpop.permute.xlu1 %1808  ;;  %v1351_v61 = vpop.f32.mrf.mxu0  ;;  %v1735_v60 = vld [vmem:[%s4190_s19 + $0x68] sm:$0xff]  ;;  %v1990_v56 = vmul.f32 %v1702_v18, %v4052_v29  ;;  %v1704_v8 = vld [vmem:[%s3252_s5 + $0x70] sm:$0xff] }
 0x226   : > { %1956 = vst [vmem:[%s4218_s17 + $0x50] sm:$0xff] %v1924_v50  ;;  %2147 = vst [vmem:[%s4229_s12 + $0x48] sm:$0xff] %v2115_v26  ;;  %v2116_v12 = vadd.f32 %v2084_v25, %v1988_v32  ;;  %v1861_v59 = vmul.f32 %v1809_v41, %v1733_v3  ;;  %v1576_v34 = vpop.f32.mrf.mxu1  ;;  %v1767_v32 = vmul.f32 %v1703_v58, %v4058_v1 }
 0x227   : > { %v1577_v54 = vadd.f32 %v1576_v34, %v1351_v61  ;;  %v1811_v39 = vpop.permute.xlu0 %1810  ;;  %v1353_v42 = vpop.f32.mrf.mxu0  ;;  %v1768_v18 = vmul.f32 %v1704_v8, %v4064_v14  ;;  %v1705_v14 = vld [vmem:[%s3252_s5 + $0x78] sm:$0xff] }
 0x228   : > { %2148 = vst [vmem:[%s4229_s12 + $0x50] sm:$0xff] %v2116_v12  ;;  %v1893_v62 = vadd.f32 %v1861_v59, %v1765_v28  ;;  %v1862_v45 = vmul.f32 %v1811_v39, %v1734_v35  ;;  %v1578_v7 = vpop.f32.mrf.mxu1  ;;  %v1991_v59 = vmul.f32 %v1703_v58, %v4070_v16  ;;  %v1737_v42 = vld [vmem:[%s4190_s19 + $0x78] sm:$0xff]  ;;  %v1769_v58 = vmul.f32 %v1705_v14, %v4080_v31 }
 0x229   : > { %2179 = vst [vmem:[%s4247_s16 + $0x48] sm:$0xff] %v1577_v54  ;;  %v2033_v49 = vpop.permute.xlu1 %2032  ;;  %v1356_v21 = vpop.f32.mrf.mxu0  ;;  %v1992_v7 = vmul.f32 %v1704_v8, %v4076_v22 }
 0x22a   : > { %v1925_v13 = vmul.f32 0.044194173, %v1893_v62  ;;  %v1894_v46 = vadd.f32 %v1862_v45, %v1766_v9  ;;  %v2085_v63 = vmul.f32 %v2033_v49, %v1733_v3  ;;  %v1581_v40 = vpop.f32.mrf.mxu1  ;;  %v1736_v3 = vld [vmem:[%s4190_s19 + $0x70] sm:$0xff] }
 0x22b   : > { %v1582_v6 = vadd.f32 %v1581_v40, %v1356_v21  ;;  %v2035_v20 = vpop.permute.xlu0 %2034  ;;  %v1358_v48 = vpop.f32.mrf.mxu0  ;;  %v1738_v40 = vld [vmem:[%s4190_s19 + $0x80] sm:$0xff] }
 0x22c   : > { %1957 = vst [vmem:[%s4218_s17 + $0x58] sm:$0xff] %v1925_v13  ;;  %v1926_v36 = vmul.f32 0.044194173, %v1894_v46  ;;  %v2117_v5 = vadd.f32 %v2085_v63, %v1989_v24  ;;  %v2086_v23 = vmul.f32 %v2035_v20, %v1734_v35  ;;  %v1583_v15 = vpop.f32.mrf.mxu1  ;;  %v1706_v63 = vld [vmem:[%s3252_s5 + $0x80] sm:$0xff] }
 0x22d   : > { %2180 = vst [vmem:[%s4247_s16 + $0x50] sm:$0xff] %v1582_v6  ;;  %v1813_v55 = vpop.permute.xlu1 %1812  ;;  %v1361_v25 = vpop.f32.mrf.mxu0 }
 0x22e   : > { %1958 = vst [vmem:[%s4218_s17 + $0x60] sm:$0xff] %v1926_v36  ;;  %2149 = vst [vmem:[%s4229_s12 + $0x58] sm:$0xff] %v2117_v5  ;;  %v2118_v50 = vadd.f32 %v2086_v23, %v1990_v56  ;;  %v1863_v26 = vmul.f32 %v1813_v55, %v1735_v60  ;;  %v1586_v29 = vpop.f32.mrf.mxu1  ;;  %v1770_v5 = vmul.f32 %v1706_v63, %v4084_v33  ;;  %v1707_v33 = vld [vmem:[%s3252_s5 + $0x88] sm:$0xff] }
 0x22f   : > { %v1587_v4 = vadd.f32 %v1586_v29, %v1361_v25  ;;  %v1815_v37 = vpop.permute.xlu0 %1814  ;;  %v1363_v28 = vpop.f32.mrf.mxu0  ;;  %v1993_v55 = vmul.f32 %v1705_v14, %v4088_v38 }
 0x230   : > { %2150 = vst [vmem:[%s4229_s12 + $0x60] sm:$0xff] %v2118_v50  ;;  %v1895_v41 = vadd.f32 %v1863_v26, %v1767_v32  ;;  %v1864_v35 = vmul.f32 %v1815_v37, %v1736_v3  ;;  %v1588_v12 = vpop.f32.mrf.mxu1  ;;  %v1739_v37 = vld [vmem:[%s4190_s19 + $0x88] sm:$0xff] }
 0x231   : > { %2181 = vst [vmem:[%s4247_s16 + $0x58] sm:$0xff] %v1587_v4  ;;  %v2037_v1 = vpop.permute.xlu1 %2036  ;;  %v1366_v39 = vpop.f32.mrf.mxu0 }
 0x232   : > { %v1927_v61 = vmul.f32 0.044194173, %v1895_v41  ;;  %v1896_v34 = vadd.f32 %v1864_v35, %v1768_v18  ;;  %v2087_v54 = vmul.f32 %v2037_v1, %v1735_v60  ;;  %v1591_v9 = vpop.f32.mrf.mxu1  ;;  %v1994_v18 = vmul.f32 %v1706_v63, %v4092_v44  ;;  %v1708_v1 = vld [vmem:[%s3252_s5 + $0x90] sm:$0xff] }
 0x233   : > { %v1592_v62 = vadd.f32 %v1591_v9, %v1366_v39  ;;  %v2039_v45 = vpop.permute.xlu0 %2038  ;;  %v1368_v13 = vpop.f32.mrf.mxu0 }
 0x234   : > { %1959 = vst [vmem:[%s4218_s17 + $0x68] sm:$0xff] %v1927_v61  ;;  %v1928_v49 = vmul.f32 0.044194173, %v1896_v34  ;;  %v2119_v24 = vadd.f32 %v2087_v54, %v1991_v59  ;;  %v2088_v16 = vmul.f32 %v2039_v45, %v1736_v3  ;;  %v1593_v46 = vpop.f32.mrf.mxu1  ;;  %v1740_v61 = vld [vmem:[%s4190_s19 + $0x90] sm:$0xff]  ;;  %v1771_v34 = vmul.f32 %v1707_v33, %v4096_v52 }
 0x235   : > { %2182 = vst [vmem:[%s4247_s16 + $0x60] sm:$0xff] %v1592_v62  ;;  %v1817_v21 = vpop.permute.xlu1 %1816  ;;  %v1371_v60 = vpop.f32.mrf.mxu0  ;;  %v1772_v45 = vmul.f32 %v1708_v1, %v4100_v0  ;;  %v1709_v0 = vld [vmem:[%s3252_s5 + $0x98] sm:$0xff] }
 0x236   : > { %1960 = vst [vmem:[%s4218_s17 + $0x70] sm:$0xff] %v1928_v49  ;;  %2151 = vst [vmem:[%s4229_s12 + $0x68] sm:$0xff] %v2119_v24  ;;  %v2120_v6 = vadd.f32 %v2088_v16, %v1992_v7  ;;  %v1865_v20 = vmul.f32 %v1817_v21, %v1737_v42  ;;  %v1596_v22 = vpop.f32.mrf.mxu1  ;;  %v1995_v16 = vmul.f32 %v1707_v33, %v4104_v30 }
 0x237   : > { %v1597_v56 = vadd.f32 %v1596_v22, %v1371_v60  ;;  %v1819_v36 = vpop.permute.xlu0 %1818  ;;  %v1373_v15 = vpop.f32.mrf.mxu0  ;;  %v1996_v60 = vmul.f32 %v1708_v1, %v4108_v53 }
 0x238   : > { %2152 = vst [vmem:[%s4229_s12 + $0x70] sm:$0xff] %v2120_v6  ;;  %v1897_v23 = vadd.f32 %v1865_v20, %v1769_v58  ;;  %v1866_v48 = vmul.f32 %v1819_v36, %v1738_v40  ;;  %v1598_v8 = vpop.f32.mrf.mxu1  ;;  %v1741_v20 = vld [vmem:[%s4190_s19 + $0x98] sm:$0xff]  ;;  %v1742_v15 = vld [vmem:[%s4190_s19 + $0xa0] sm:$0xff] }
 0x239   : > { %2183 = vst [vmem:[%s4247_s16 + $0x68] sm:$0xff] %v1597_v56  ;;  %v2041_v31 = vpop.permute.xlu1 %2040  ;;  %v1376_v26 = vpop.f32.mrf.mxu0  ;;  %v1773_v8 = vmul.f32 %v1709_v0, %v4112_v2 }
 0x23a   : > { %v1929_v3 = vmul.f32 0.044194173, %v1897_v23  ;;  %v1898_v32 = vadd.f32 %v1866_v48, %v1770_v5  ;;  %v2089_v50 = vmul.f32 %v2041_v31, %v1737_v42  ;;  %v1601_v25 = vpop.f32.mrf.mxu1  ;;  %v1710_v23 = vld [vmem:[%s3252_s5 + $0xa0] sm:$0xff] }
 0x23b   : > { %v1602_v29 = vadd.f32 %v1601_v25, %v1376_v26  ;;  %v2043_v4 = vpop.permute.xlu0 %2042  ;;  %v1378_v28 = vpop.f32.mrf.mxu0  ;;  %v1774_v26 = vmul.f32 %v1710_v23, %v4116_v10  ;;  %v1711_v10 = vld [vmem:[%s3252_s5 + $0xa8] sm:$0xff] }
 0x23c   : > { %1961 = vst [vmem:[%s4218_s17 + $0x78] sm:$0xff] %v1929_v3  ;;  %v1930_v41 = vmul.f32 0.044194173, %v1898_v32  ;;  %v2121_v35 = vadd.f32 %v2089_v50, %v1993_v55  ;;  %v2090_v38 = vmul.f32 %v2043_v4, %v1738_v40  ;;  %v1603_v12 = vpop.f32.mrf.mxu1 }
 0x23d   : > { %2184 = vst [vmem:[%s4247_s16 + $0x70] sm:$0xff] %v1602_v29  ;;  %v1821_v59 = vpop.permute.xlu1 %1820  ;;  %v1381_v9 = vpop.f32.mrf.mxu0 }
 0x23e   : > { %1962 = vst [vmem:[%s4218_s17 + $0x80] sm:$0xff] %v1930_v41  ;;  %2153 = vst [vmem:[%s4229_s12 + $0x78] sm:$0xff] %v2121_v35  ;;  %v2122_v54 = vadd.f32 %v2090_v38, %v1994_v18  ;;  %v1867_v39 = vmul.f32 %v1821_v59, %v1739_v37  ;;  %v1606_v44 = vpop.f32.mrf.mxu1  ;;  %v1743_v59 = vld [vmem:[%s4190_s19 + $0xa8] sm:$0xff] }
 0x23f   : > { %v1607_v14 = vadd.f32 %v1606_v44, %v1381_v9  ;;  %v1823_v62 = vpop.permute.xlu0 %1822  ;;  %v1383_v49 = vpop.f32.mrf.mxu0  ;;  %v1712_v44 = vld [vmem:[%s3252_s5 + $0xb0] sm:$0xff] }
 0x240   : > { %2154 = vst [vmem:[%s4229_s12 + $0x80] sm:$0xff] %v2122_v54  ;;  %v1899_v42 = vadd.f32 %v1867_v39, %v1771_v34  ;;  %v1868_v7 = vmul.f32 %v1823_v62, %v1740_v61  ;;  %v1608_v24 = vpop.f32.mrf.mxu1  ;;  %v1744_v62 = vld [vmem:[%s4190_s19 + $0xb0] sm:$0xff] }
 0x241   : > { %2185 = vst [vmem:[%s4247_s16 + $0x78] sm:$0xff] %v1607_v14  ;;  %v2045_v52 = vpop.permute.xlu1 %2044  ;;  %v1386_v21 = vpop.f32.mrf.mxu0 }
 0x242   : > { %v1931_v13 = vmul.f32 0.044194173, %v1899_v42  ;;  %v1900_v46 = vadd.f32 %v1868_v7, %v1772_v45  ;;  %v2091_v63 = vmul.f32 %v2045_v52, %v1739_v37  ;;  %v1611_v40 = vpop.f32.mrf.mxu1  ;;  %v1997_v37 = vmul.f32 %v1709_v0, %v4120_v19 }
 0x243   : > { %v1612_v58 = vadd.f32 %v1611_v40, %v1386_v21  ;;  %v2047_v6 = vpop.permute.xlu0 %2046  ;;  %v1388_v36 = vpop.f32.mrf.mxu0  ;;  %v1775_v45 = vmul.f32 %v1711_v10, %v4128_v47  ;;  %v1999_v40 = vmul.f32 %v1711_v10, %v4136_v57 }
 0x244   : > { %1963 = vst [vmem:[%s4218_s17 + $0x88] sm:$0xff] %v1931_v13  ;;  %v1932_v22 = vmul.f32 0.044194173, %v1900_v46  ;;  %v2123_v56 = vadd.f32 %v2091_v63, %v1995_v16  ;;  %v2092_v30 = vmul.f32 %v2047_v6, %v1740_v61  ;;  %v1613_v5 = vpop.f32.mrf.mxu1  ;;  %v1998_v61 = vmul.f32 %v1710_v23, %v4124_v27 }
 0x245   : > { %2186 = vst [vmem:[%s4247_s16 + $0x80] sm:$0xff] %v1612_v58  ;;  %v1825_v48 = vpop.permute.xlu1 %1824  ;;  %v1391_v3 = vpop.f32.mrf.mxu0  ;;  %v1776_v16 = vmul.f32 %v1712_v44, %v4132_v43  ;;  %v1713_v43 = vld [vmem:[%s3252_s5 + $0xb8] sm:$0xff]  ;;  %v2000_v36 = vmul.f32 %v1712_v44, %v4140_v17 }
 0x246   : > { %1964 = vst [vmem:[%s4218_s17 + $0x90] sm:$0xff] %v1932_v22  ;;  %2155 = vst [vmem:[%s4229_s12 + $0x88] sm:$0xff] %v2123_v56  ;;  %v2124_v31 = vadd.f32 %v2092_v30, %v1996_v60  ;;  %v1869_v55 = vmul.f32 %v1825_v48, %v1741_v20  ;;  %v1616_v53 = vpop.f32.mrf.mxu1  ;;  %v1745_v30 = vld [vmem:[%s4190_s19 + $0xb8] sm:$0xff] }
 0x247   : > { %v1617_v32 = vadd.f32 %v1616_v53, %v1391_v3  ;;  %v1827_v50 = vpop.permute.xlu0 %1826  ;;  %v1393_v29 = vpop.f32.mrf.mxu0  ;;  %v4901_v3 = vld [vmem:[#allocation24_spill] sm:$0xff] }
 0x248   : > { %2156 = vst [vmem:[%s4229_s12 + $0x90] sm:$0xff] %v2124_v31  ;;  %v1901_v25 = vadd.f32 %v1869_v55, %v1773_v8  ;;  %v1870_v33 = vmul.f32 %v1827_v50, %v1742_v15  ;;  %v1618_v4 = vpop.f32.mrf.mxu1  ;;  %v1714_v8 = vld [vmem:[%s3252_s5 + $0xc0] sm:$0xff]  ;;  %v1777_v53 = vmul.f32 %v1713_v43, %v4901_v3  ;;  %v4902_v29 = vld [vmem:[#allocation25_spill] sm:$0xff]  ;;  %v4908_v3 = vld [vmem:[#allocation31_spill] sm:$0xff] }
 0x249   : > { %2187 = vst [vmem:[%s4247_s16 + $0x88] sm:$0xff] %v1617_v32  ;;  %v2049_v2 = vpop.permute.xlu1 %2048  ;;  %v1396_v38 = vpop.f32.mrf.mxu0  ;;  %v1746_v55 = vld [vmem:[%s4190_s19 + $0xc0] sm:$0xff]  ;;  %v1778_v4 = vmul.f32 %v1714_v8, %v4902_v29 }
 0x24a   : > { %v1933_v18 = vmul.f32 0.044194173, %v1901_v25  ;;  %v1902_v41 = vadd.f32 %v1870_v33, %v1774_v26  ;;  %v2093_v35 = vmul.f32 %v2049_v2, %v1741_v20  ;;  %v1621_v28 = vpop.f32.mrf.mxu1 }
 0x24b   : > { %v1622_v12 = vadd.f32 %v1621_v28, %v1396_v38  ;;  %v2051_v1 = vpop.permute.xlu0 %2050  ;;  %v1398_v39 = vpop.f32.mrf.mxu0  ;;  %v4903_v38 = vld [vmem:[#allocation26_spill] sm:$0xff] }
 0x24c   : > { %1965 = vst [vmem:[%s4218_s17 + $0x98] sm:$0xff] %v1933_v18  ;;  %v1934_v34 = vmul.f32 0.044194173, %v1902_v41  ;;  %v2125_v54 = vadd.f32 %v2093_v35, %v1997_v37  ;;  %v2094_v19 = vmul.f32 %v2051_v1, %v1742_v15  ;;  %v1623_v9 = vpop.f32.mrf.mxu1  ;;  %v2001_v28 = vmul.f32 %v1713_v43, %v4903_v38  ;;  %v1747_v39 = vld [vmem:[%s4190_s19 + $0xc8] sm:$0xff] }
 0x24d   : > { %2188 = vst [vmem:[%s4247_s16 + $0x90] sm:$0xff] %v1622_v12  ;;  %v1829_v14 = vpop.permute.xlu1 %1828  ;;  %v1401_v49 = vpop.f32.mrf.mxu0  ;;  %v4904_v9 = vld [vmem:[#allocation27_spill] sm:$0xff] }
 0x24e   : > { %1966 = vst [vmem:[%s4218_s17 + $0xa0] sm:$0xff] %v1934_v34  ;;  %2157 = vst [vmem:[%s4229_s12 + $0x98] sm:$0xff] %v2125_v54  ;;  %v2126_v42 = vadd.f32 %v2094_v19, %v1998_v61  ;;  %v1871_v7 = vmul.f32 %v1829_v14, %v1743_v59  ;;  %v1626_v27 = vpop.f32.mrf.mxu1  ;;  %v1715_v34 = vld [vmem:[%s3252_s5 + $0xc8] sm:$0xff]  ;;  %v2002_v44 = vmul.f32 %v1714_v8, %v4904_v9 }
 0x24f   : > { %v1627_v24 = vadd.f32 %v1626_v27, %v1401_v49  ;;  %v1831_v52 = vpop.permute.xlu0 %1830  ;;  %v1403_v63 = vpop.f32.mrf.mxu0  ;;  %v1716_v49 = vld [vmem:[%s3252_s5 + $0xd0] sm:$0xff] }
 0x250   : > { %2158 = vst [vmem:[%s4229_s12 + $0xa0] sm:$0xff] %v2126_v42  ;;  %v1903_v13 = vadd.f32 %v1871_v7, %v1775_v45  ;;  %v1872_v46 = vmul.f32 %v1831_v52, %v1744_v62  ;;  %v1628_v21 = vpop.f32.mrf.mxu1  ;;  %v4905_v52 = vld [vmem:[#allocation28_spill] sm:$0xff] }
 0x251   : > { %2189 = vst [vmem:[%s4247_s16 + $0x98] sm:$0xff] %v1627_v24  ;;  %v2053_v47 = vpop.permute.xlu1 %2052  ;;  %v1406_v20 = vpop.f32.mrf.mxu0  ;;  %v1748_v24 = vld [vmem:[%s4190_s19 + $0xd0] sm:$0xff] }
 0x252   : > { %v1935_v0 = vmul.f32 0.044194173, %v1903_v13  ;;  %v1904_v58 = vadd.f32 %v1872_v46, %v1776_v16  ;;  %v2095_v6 = vmul.f32 %v2053_v47, %v1743_v59  ;;  %v1631_v60 = vpop.f32.mrf.mxu1  ;;  %v1779_v16 = vmul.f32 %v1715_v34, %v4905_v52  ;;  %v4912_v52 = vld [vmem:[#allocation35_spill] sm:$0xff] }
 0x253   : > { %v1632_v22 = vadd.f32 %v1631_v60, %v1406_v20  ;;  %v2055_v56 = vpop.permute.xlu0 %2054  ;;  %v1408_v48 = vpop.f32.mrf.mxu0 }
 0x254   : > { %1967 = vst [vmem:[%s4218_s17 + $0xa8] sm:$0xff] %v1935_v0  ;;  %v1936_v5 = vmul.f32 0.044194173, %v1904_v58  ;;  %v2127_v23 = vadd.f32 %v2095_v6, %v1999_v40  ;;  %v2096_v57 = vmul.f32 %v2055_v56, %v1744_v62  ;;  %v1633_v15 = vpop.f32.mrf.mxu1  ;;  %v4906_v0 = vld [vmem:[#allocation29_spill] sm:$0xff]  ;;  %v4907_v56 = vld [vmem:[#allocation30_spill] sm:$0xff] }
 0x255   : > { %2190 = vst [vmem:[%s4247_s16 + $0xa0] sm:$0xff] %v1632_v22  ;;  %v1833_v31 = vpop.permute.xlu1 %1832  ;;  %v1411_v26 = vpop.f32.mrf.mxu0  ;;  %v1780_v58 = vmul.f32 %v1716_v49, %v4906_v0  ;;  %v1717_v15 = vld [vmem:[%s3252_s5 + $0xd8] sm:$0xff] }
 0x256   : > { %1968 = vst [vmem:[%s4218_s17 + $0xb0] sm:$0xff] %v1936_v5  ;;  %2159 = vst [vmem:[%s4229_s12 + $0xa8] sm:$0xff] %v2127_v23  ;;  %v2128_v32 = vadd.f32 %v2096_v57, %v2000_v36  ;;  %v1873_v50 = vmul.f32 %v1833_v31, %v1745_v30  ;;  %v1636_v17 = vpop.f32.mrf.mxu1 }
 0x257   : > { %v1637_v25 = vadd.f32 %v1636_v17, %v1411_v26  ;;  %v1835_v33 = vpop.permute.xlu0 %1834  ;;  %v1413_v18 = vpop.f32.mrf.mxu0 }
 0x258   : > { %2160 = vst [vmem:[%s4229_s12 + $0xb0] sm:$0xff] %v2128_v32  ;;  %v1905_v2 = vadd.f32 %v1873_v50, %v1777_v53  ;;  %v1874_v37 = vmul.f32 %v1835_v33, %v1746_v55  ;;  %v1638_v41 = vpop.f32.mrf.mxu1  ;;  %v2004_v53 = vmul.f32 %v1716_v49, %v4908_v3  ;;  %v1718_v33 = vld [vmem:[%s3252_s5 + $0xe0] sm:$0xff] }
 0x259   : > { %2191 = vst [vmem:[%s4247_s16 + $0xa8] sm:$0xff] %v1637_v25  ;;  %v2057_v35 = vpop.permute.xlu1 %2056  ;;  %v1416_v59 = vpop.f32.mrf.mxu0 }
 0x25a   : > { %v1937_v10 = vmul.f32 0.044194173, %v1905_v2  ;;  %v1906_v12 = vadd.f32 %v1874_v37, %v1778_v4  ;;  %v2097_v1 = vmul.f32 %v2057_v35, %v1745_v30  ;;  %v1641_v61 = vpop.f32.mrf.mxu1  ;;  %v2003_v30 = vmul.f32 %v1715_v34, %v4907_v56  ;;  %v1750_v4 = vld [vmem:[%s4190_s19 + $0xe0] sm:$0xff] }
 0x25b   : > { %v1642_v54 = vadd.f32 %v1641_v61, %v1416_v59  ;;  %v2059_v19 = vpop.permute.xlu0 %2058  ;;  %v1418_v42 = vpop.f32.mrf.mxu0  ;;  %v4909_v2 = vld [vmem:[#allocation32_spill] sm:$0xff] }
 0x25c   : > { %1969 = vst [vmem:[%s4218_s17 + $0xb8] sm:$0xff] %v1937_v10  ;;  %v1938_v14 = vmul.f32 0.044194173, %v1906_v12  ;;  %v2129_v62 = vadd.f32 %v2097_v1, %v2001_v28  ;;  %v2098_v45 = vmul.f32 %v2059_v19, %v1746_v55  ;;  %v1643_v7 = vpop.f32.mrf.mxu1  ;;  %v1749_v55 = vld [vmem:[%s4190_s19 + $0xd8] sm:$0xff]  ;;  %v1781_v37 = vmul.f32 %v1717_v15, %v4909_v2  ;;  %v4910_v12 = vld [vmem:[#allocation33_spill] sm:$0xff] }
 0x25d   : > { %2192 = vst [vmem:[%s4247_s16 + $0xb0] sm:$0xff] %v1642_v54  ;;  %v1837_v27 = vpop.permute.xlu1 %1836  ;;  %v1421_v63 = vpop.f32.mrf.mxu0  ;;  %v1782_v1 = vmul.f32 %v1718_v33, %v4910_v12  ;;  %v1719_v7 = vld [vmem:[%s3252_s5 + $0xe8] sm:$0xff] }
 0x25e   : > { %1970 = vst [vmem:[%s4218_s17 + $0xc0] sm:$0xff] %v1938_v14  ;;  %2161 = vst [vmem:[%s4229_s12 + $0xb8] sm:$0xff] %v2129_v62  ;;  %v2130_v13 = vadd.f32 %v2098_v45, %v2002_v44  ;;  %v1875_v46 = vmul.f32 %v1837_v27, %v1747_v39  ;;  %v1646_v21 = vpop.f32.mrf.mxu1 }
 0x25f   : > { %v1647_v47 = vadd.f32 %v1646_v21, %v1421_v63  ;;  %v1839_v40 = vpop.permute.xlu0 %1838  ;;  %v1423_v60 = vpop.f32.mrf.mxu0 }
 0x260   : > { %2162 = vst [vmem:[%s4229_s12 + $0xc0] sm:$0xff] %v2130_v13  ;;  %v1907_v6 = vadd.f32 %v1875_v46, %v1779_v16  ;;  %v1876_v20 = vmul.f32 %v1839_v40, %v1748_v24  ;;  %v1648_v43 = vpop.f32.mrf.mxu1  ;;  %v2006_v16 = vmul.f32 %v1718_v33, %v4912_v52  ;;  %v1720_v40 = vld [vmem:[%s3252_s5 + $0xf0] sm:$0xff]  ;;  %v1753_v33 = vld [vmem:[%s4190_s19 + $0xf8] sm:$0xff] }
 0x261   : > { %2193 = vst [vmem:[%s4247_s16 + $0xb8] sm:$0xff] %v1647_v47  ;;  %v2061_v22 = vpop.permute.xlu1 %2060  ;;  %v1426_v57 = vpop.f32.mrf.mxu0 }
 0x262   : > { %v1939_v36 = vmul.f32 0.044194173, %v1907_v6  ;;  %v1908_v5 = vadd.f32 %v1876_v20, %v1780_v58  ;;  %v2099_v23 = vmul.f32 %v2061_v22, %v1747_v39  ;;  %v1651_v48 = vpop.f32.mrf.mxu1  ;;  %v4911_v39 = vld [vmem:[#allocation34_spill] sm:$0xff]  ;;  %v1783_v6 = vmul.f32 %v1719_v7, %v4201_v51 }
 0x263   : > { %v1652_v8 = vadd.f32 %v1651_v48, %v1426_v57  ;;  %v2063_v31 = vpop.permute.xlu0 %2062  ;;  %v1428_v17 = vpop.f32.mrf.mxu0  ;;  %v2005_v9 = vmul.f32 %v1717_v15, %v4911_v39  ;;  %v1752_v58 = vld [vmem:[%s4190_s19 + $0xf0] sm:$0xff] }
 0x264   : > { %1971 = vst [vmem:[%s4218_s17 + $0xc8] sm:$0xff] %v1939_v36  ;;  %v1940_v32 = vmul.f32 0.044194173, %v1908_v5  ;;  %v2131_v50 = vadd.f32 %v2099_v23, %v2003_v30  ;;  %v2100_v26 = vmul.f32 %v2063_v31, %v1748_v24  ;;  %v1653_v25 = vpop.f32.mrf.mxu1  ;;  %v1751_v24 = vld [vmem:[%s4190_s19 + $0xe8] sm:$0xff]  ;;  %v4915_v36 = vld [vmem:[#allocation36_spill] sm:$0xff]  ;;  %s4463_s19 = scalar_lea.hbm %s4919_s18, %s4452_s1 }
 0x265   : > { %2194 = vst [vmem:[%s4247_s16 + $0xc0] sm:$0xff] %v1652_v8  ;;  %v1841_v29 = vpop.permute.xlu1 %1840  ;;  %v1431_v35 = vpop.f32.mrf.mxu0  ;;  %v1784_v5 = vmul.f32 %v1720_v40, %v4915_v36  ;;  %v4916_v8 = vld [vmem:[#allocation37_spill] sm:$0xff] }
 0x266   : > { %1972 = vst [vmem:[%s4218_s17 + $0xd0] sm:$0xff] %v1940_v32  ;;  %2163 = vst [vmem:[%s4229_s12 + $0xc8] sm:$0xff] %v2131_v50  ;;  %v2132_v18 = vadd.f32 %v2100_v26, %v2004_v53  ;;  %v1877_v41 = vmul.f32 %v1841_v29, %v1749_v55  ;;  %v1656_v38 = vpop.f32.mrf.mxu1  ;;  %v2007_v31 = vmul.f32 %v1719_v7, %v4916_v8  ;;  %v1721_v26 = vld [vmem:[%s3252_s5 + $0xf8] sm:$0xff]  ;;  %v4917_v29 = vld [vmem:[#allocation38_spill] sm:$0xff]  ;;  %s2963_s5 = smov [#allocation9]  }
 0x267   : > { %v1657_v28 = vadd.f32 %v1656_v38, %v1431_v35  ;;  %v1843_v10 = vpop.permute.xlu0 %1842  ;;  %v1433_v34 = vpop.f32.mrf.mxu0 }
 0x268   : > { %2164 = vst [vmem:[%s4229_s12 + $0xd0] sm:$0xff] %v2132_v18  ;;  %v1909_v59 = vadd.f32 %v1877_v41, %v1781_v37  ;;  %v1878_v61 = vmul.f32 %v1843_v10, %v1750_v4  ;;  %v1658_v54 = vpop.f32.mrf.mxu1 }
 0x269   : > { %2195 = vst [vmem:[%s4247_s16 + $0xc8] sm:$0xff] %v1657_v28  ;;  %v2065_v19 = vpop.permute.xlu1 %2064  ;;  %v1436_v45 = vpop.f32.mrf.mxu0  ;;  %v4918_v28 = vld [vmem:[#allocation39_spill] sm:$0xff] }
 0x26a   : > { %v1941_v44 = vmul.f32 0.044194173, %v1909_v59  ;;  %v1910_v14 = vadd.f32 %v1878_v61, %v1782_v1  ;;  %v2101_v62 = vmul.f32 %v2065_v19, %v1749_v55  ;;  %v1661_v42 = vpop.f32.mrf.mxu1  ;;  %v1785_v10 = vmul.f32 %v1721_v26, %v4918_v28 }
 0x26b   : > { %v1662_v49 = vadd.f32 %v1661_v42, %v1436_v45  ;;  %v2067_v27 = vpop.permute.xlu0 %2066  ;;  %v1438_v21 = vpop.f32.mrf.mxu0 }
 0x26c   : > { %1973 = vst [vmem:[%s4218_s17 + $0xd8] sm:$0xff] %v1941_v44  ;;  %v1942_v13 = vmul.f32 0.044194173, %v1910_v14  ;;  %v2133_v46 = vadd.f32 %v2101_v62, %v2005_v9  ;;  %v2102_v63 = vmul.f32 %v2067_v27, %v1750_v4  ;;  %v1663_v47 = vpop.f32.mrf.mxu1  ;;  %v2008_v4 = vmul.f32 %v1720_v40, %v4917_v29 }
 0x26d   : > { %2196 = vst [vmem:[%s4247_s16 + $0xd0] sm:$0xff] %v1662_v49  ;;  %v1845_v0 = vpop.permute.xlu1 %1844  ;;  %v1441_v43 = vpop.f32.mrf.mxu0  ;;  %v2009_v44 = vmul.f32 %v1721_v26, %v4244_v11 }
 0x26e   : > { %1974 = vst [vmem:[%s4218_s17 + $0xe0] sm:$0xff] %v1942_v13  ;;  %2165 = vst [vmem:[%s4229_s12 + $0xd8] sm:$0xff] %v2133_v46  ;;  %v2134_v20 = vadd.f32 %v2102_v63, %v2006_v16  ;;  %v1879_v60 = vmul.f32 %v1845_v0, %v1751_v24  ;;  %v1666_v22 = vpop.f32.mrf.mxu1 }
 0x26f   : > { %v1667_v56 = vadd.f32 %v1666_v22, %v1441_v43  ;;  %v1847_v30 = vpop.permute.xlu0 %1846  ;;  %v1443_v48 = vpop.f32.mrf.mxu0 }
 0x270   : > { %2166 = vst [vmem:[%s4229_s12 + $0xe0] sm:$0xff] %v2134_v20  ;;  %v1911_v23 = vadd.f32 %v1879_v60, %v1783_v6  ;;  %v1880_v57 = vmul.f32 %v1847_v30, %v1752_v58  ;;  %v1668_v15 = vpop.f32.mrf.mxu1 }
 0x271   : > { %2197 = vst [vmem:[%s4247_s16 + $0xd8] sm:$0xff] %v1667_v56  ;;  %v2069_v51 = vpop.permute.xlu1 %2068  ;;  %v1446_v32 = vpop.f32.mrf.mxu0 }
 0x272   : > { %v1943_v55 = vmul.f32 0.044194173, %v1911_v23  ;;  %v1912_v3 = vadd.f32 %v1880_v57, %v1784_v5  ;;  %v2103_v53 = vmul.f32 %v2069_v51, %v1751_v24  ;;  %v1671_v50 = vpop.f32.mrf.mxu1 }
 0x273   : > { %v1672_v17 = vadd.f32 %v1671_v50, %v1446_v32  ;;  %v2071_v25 = vpop.permute.xlu0 %2070  ;;  %v1448_v41 = vpop.f32.mrf.mxu0 }
 0x274   : > { %1975 = vst [vmem:[%s4218_s17 + $0xe8] sm:$0xff] %v1943_v55  ;;  %v1944_v2 = vmul.f32 0.044194173, %v1912_v3  ;;  %v2135_v37 = vadd.f32 %v2103_v53, %v2007_v31  ;;  %v2104_v18 = vmul.f32 %v2071_v25, %v1752_v58  ;;  %v1673_v35 = vpop.f32.mrf.mxu1 }
 0x275   : > { %2198 = vst [vmem:[%s4247_s16 + $0xe0] sm:$0xff] %v1672_v17  ;;  %v1849_v38 = vpop.permute.xlu1 %1848  ;;  %v1451_v59 = vpop.f32.mrf.mxu0 }
 0x276   : > { %1976 = vst [vmem:[%s4218_s17 + $0xf0] sm:$0xff] %v1944_v2  ;;  %2167 = vst [vmem:[%s4229_s12 + $0xe8] sm:$0xff] %v2135_v37  ;;  %v2136_v12 = vadd.f32 %v2104_v18, %v2008_v4  ;;  %v1881_v1 = vmul.f32 %v1849_v38, %v1753_v33  ;;  %v1676_v61 = vpop.f32.mrf.mxu1 }
 0x277   : > { %v1677_v34 = vadd.f32 %v1676_v61, %v1451_v59  ;;  %v1453_v19 = vpop.f32.mrf.mxu0 }
 0x278   : > { %2168 = vst [vmem:[%s4229_s12 + $0xf0] sm:$0xff] %v2136_v12  ;;  %v1913_v54 = vadd.f32 %v1881_v1, %v1785_v10  ;;  %v1678_v39 = vpop.f32.mrf.mxu1 }
 0x279   : > { %2199 = vst [vmem:[%s4247_s16 + $0xe8] sm:$0xff] %v1677_v34  ;;  %v2073_v9 = vpop.permute.xlu1 %2072  ;;  %v1456_v45 = vpop.f32.mrf.mxu0 }
 0x27a   : > { %v1945_v14 = vmul.f32 0.044194173, %v1913_v54  ;;  %v2105_v62 = vmul.f32 %v2073_v9, %v1753_v33  ;;  %v1681_v42 = vpop.f32.mrf.mxu1 }
 0x27b   : > { %v1682_v7 = vadd.f32 %v1681_v42, %v1456_v45  ;;  %v1458_v49 = vpop.f32.mrf.mxu0 }
 0x27c   : > { %1977 = vst [vmem:[%s4218_s17 + $0xf8] sm:$0xff] %v1945_v14  ;;  %v2137_v11 = vadd.f32 %v2105_v62, %v2009_v44  ;;  %v1683_v27 = vpop.f32.mrf.mxu1  ;;  %s2769_s17 = sshll.u32 %s2963_s5, 4  ;;  %s2770_s17 = int_to_ptr.vmem [resolvable:$false] %s2769_s17 }
 0x27d   : > { %2200 = vst [vmem:[%s4247_s16 + $0xf0] sm:$0xff] %v1682_v7  ;;  %s2771_s0 = scalar_lea.vmem %s2770_s17, 8192  ;;  %p2772_p4 = scmp.lt.s32.totalorder %s4465_s11, %s2770_s17 }
 0x27e   : > { %p2773_p9 = scmp.lt.s32.totalorder %s2771_s0, %s2765_s28 }
 0x280   : > { %p2774_p5 = por %p2773_p9, %p2772_p4 }
 0x282   : > { %p2775_p0 = pnand %p2774_p5, %p2768_p1 }
 0x284   : > { %2778 = shalt.err (!%p2775_p0)
}
 0x285   : > { %s2779_s8 = scalar_lea.hbm %s4463_s19, 4096  ;;  %s2783_s5 = scalar_lea.hbm %s4919_s18, 16384 }
 0x286   : > { %p2780_p3 = scmp.ne.s32.totalorder %s4463_s19, %s2779_s8  ;;  %p2784_p7 = scmp.lt.s32.totalorder %s4463_s19, %s4919_s18 }
 0x287   : > { %p2785_p10 = scmp.lt.s32.totalorder %s2783_s5, %s2779_s8 }
 0x288   : > { %p2781_p12 = pnand %p2780_p3, %p3176_p6 }
 0x289   : > { %p2786_p2 = por %p2785_p10, %p2784_p7 }
 0x28a   : > { %p2782_p13 = pneg %p2781_p12 }
 0x28c   : > { %p2787_p8 = pnand %p2786_p2, %p2782_p13 }
 0x28e   : > { %2790 = shalt.err (!%p2787_p8)
}
 0x28f   : > { %s2964_s0 = smov 128   ;;  %s2965_s27 = smov 8   ;;  %2169 = vst [vmem:[%s4229_s12 + $0xf8] sm:$0xff] %v2137_v11  ;;  %v1461_v24 = vpop.f32.mrf.mxu0  ;;  %v1686_v52 = vpop.f32.mrf.mxu1 }
 0x290   : > { %s4921_s30 = scalar_lea.sflag [#allocation4], %s3233_s2  ;;  %s4922_s17 = sld [smem:[#allocation99_spill]]  ;;  %v1687_v16 = vadd.f32 %v1686_v52, %v1461_v24 }
 0x291   : > { %2522 = dma.vmem_to_hbm [thread:$0]  (%p3176_p6), %s4465_s11, 4096, %s4463_s19, %s4921_s30, %s2964_s0, %s2964_s0, %s2965_s27  }
 0x292   : > { %s4923_s9 = sshll.u32 %s4247_s16, 4  ;;  %s4924_s5 = sand.u32 1, %s3150_s13   ;;  %s4513_s9 = int_to_ptr.vmem [resolvable:$true] %s4923_s9 }
 0x293   : > { %s4517_s18 = scalar_lea.sflag [#allocation11], %s4924_s5  ;;  %s2791_s29 = scalar_lea.vmem %s4475_s14, 4096 }
 0x294   : > { %p2792_p11 = scmp.ne.s32.totalorder %s4475_s14, %s2791_s29  ;;  %s2966_s2 = smov [#allocation10]  }
 0x295   : > { %s2795_s12 = sshll.u32 %s2966_s2, 4  ;;  %s2796_s12 = int_to_ptr.vmem [resolvable:$false] %s2795_s12 }
 0x296   : > { %s4509_s8 = scalar_lea.hbm %s4922_s17, %s4452_s1  ;;  %p2793_p1 = pnand %p2792_p11, %p3176_p6 }
 0x297   : > { %s2797_s11 = scalar_lea.vmem %s2796_s12, 8192  ;;  %p2798_p9 = scmp.lt.s32.totalorder %s4475_s14, %s2796_s12 }
 0x298   : > { %p2794_p4 = pneg %p2793_p1  ;;  %p2799_p5 = scmp.lt.s32.totalorder %s2797_s11, %s2791_s29 }
 0x29a   : > { %p2800_p0 = por %p2799_p5, %p2798_p9 }
 0x29c   : > { %p2801_p3 = pnand %p2800_p0, %p2794_p4 }
 0x29e   : > { %2804 = shalt.err (!%p2801_p3)
}
 0x29f   : > { %s2805_s13 = scalar_lea.hbm %s4473_s4, 4096  ;;  %s2809_s30 = scalar_lea.hbm %s4920_s6, 16384 }
 0x2a0   : > { %p2806_p12 = scmp.ne.s32.totalorder %s4473_s4, %s2805_s13  ;;  %p2810_p10 = scmp.lt.s32.totalorder %s4473_s4, %s4920_s6 }
 0x2a1   : > { %p2811_p2 = scmp.lt.s32.totalorder %s2809_s30, %s2805_s13 }
 0x2a2   : > { %p2807_p13 = pnand %p2806_p12, %p3176_p6 }
 0x2a3   : > { %p2812_p8 = por %p2811_p2, %p2810_p10 }
 0x2a4   : > { %p2808_p7 = pneg %p2807_p13 }
 0x2a6   : > { %p2813_p11 = pnand %p2812_p8, %p2808_p7 }
 0x2a8   : > { %2816 = shalt.err (!%p2813_p11)
}
 0x2a9   : > { %2523 = dma.vmem_to_hbm [thread:$0]  (%p3176_p6), %s4475_s14, 4096, %s4473_s4, %s4517_s18, %s2964_s0, %s2964_s0, %s2965_s27   ;;  %v1463_v13 = vpop.f32.mrf.mxu0  ;;  %v1688_v46 = vpop.f32.mrf.mxu1 }
 0x2aa   : > { %2201 = vst [vmem:[%s4247_s16 + $0xf8] sm:$0xff] %v1687_v16  ;;  %s2817_s29 = scalar_lea.vmem %s4513_s9, 4096  ;;  %s2967_s5 = smov [#allocation12]  }
 0x2ab   : > { %p2818_p1 = scmp.ne.s32.totalorder %s4513_s9, %s2817_s29  ;;  %s2821_s2 = sshll.u32 %s2967_s5, 4  ;;  %s2822_s2 = int_to_ptr.vmem [resolvable:$false] %s2821_s2 }
 0x2ac   : > { %s2823_s12 = scalar_lea.vmem %s2822_s2, 8192  ;;  %p2824_p5 = scmp.lt.s32.totalorder %s4513_s9, %s2822_s2 }
 0x2ad   : > { %p2819_p4 = pnand %p2818_p1, %p3176_p6  ;;  %p2825_p0 = scmp.lt.s32.totalorder %s2823_s12, %s2817_s29 }
 0x2af   : > { %p2820_p9 = pneg %p2819_p4  ;;  %p2826_p3 = por %p2825_p0, %p2824_p5 }
 0x2b1   : > { %p2827_p12 = pnand %p2826_p3, %p2820_p9 }
 0x2b3   : > { %2830 = shalt.err (!%p2827_p12)
}
 0x2b4   : > { %s2831_s14 = scalar_lea.hbm %s4509_s8, 4096  ;;  %s2835_s11 = scalar_lea.hbm %s4922_s17, 16384 }
 0x2b5   : > { %p2832_p13 = scmp.ne.s32.totalorder %s4509_s8, %s2831_s14  ;;  %p2836_p2 = scmp.lt.s32.totalorder %s4509_s8, %s4922_s17 }
 0x2b6   : > { %p2837_p8 = scmp.lt.s32.totalorder %s2835_s11, %s2831_s14 }
 0x2b7   : > { %p2833_p7 = pnand %p2832_p13, %p3176_p6 }
 0x2b8   : > { %p2838_p11 = por %p2837_p8, %p2836_p2 }
 0x2b9   : > { %p2834_p10 = pneg %p2833_p7 }
 0x2bb   : > { %p2839_p1 = pnand %p2838_p11, %p2834_p10 }
 0x2bd   : > { %2842 = shalt.err (!%p2839_p1)
}
 0x2be   : > { %2524 = dma.vmem_to_hbm [thread:$0]  (%p3176_p6), %s4513_s9, 4096, %s4509_s8, %s4517_s18, %s2964_s0, %s2964_s0, %s2965_s27  }
 0x2bf PF: > { %p2555_p4 = scmp.ge.s32.totalorder %s2949_s7, 2  ;;  %s2279_s19 = sand.u32 1, %s2921_s24  }
 0x2c0   : > { %p4925_p9 = scmp.ne.s32.totalorder %s4736_s21, 0  ;;  %s2280_s30 = scalar_lea.sflag [#allocation4], %s2279_s19 }
 0x2c2   : > { %p2543_p5 = pnand %p2555_p4, %p4925_p9 }
 0x2c4   : > { %p2544_p0 = pneg %p2543_p5 }
 0x2c6   : > { %2900 = dma.done.wait (%p2544_p0), %s2280_s30, 4096  }
 0x2c7   : > { %2902 = vsyncadd (%p2544_p0), %s2280_s30, 4294963200  ;;  %s4926_s10 = sadd.s32 4294967294, %s2949_s7  }
 0x2c8   : > { %s2288_s3 = sand.u32 1, %s4926_s10  }
 0x2c9   : > { %s2289_s28 = scalar_lea.sflag [#allocation11], %s2288_s3 }
 0x2ca   : > { %2904 = dma.done.wait (%p2544_p0), %s2289_s28, 8192  }
 0x2cb   : > { %2906 = vsyncadd (%p2544_p0), %s2289_s28, 4294959104  ;;  %s27_s7 = sadd.s32 1, %s2949_s7   ;;  %s4927_s27 = sld [smem:[#allocation20_spill]] }
 0x2cc   : > { %p24_p6 = scmp.ge.s32.totalorder %s27_s7, 6   ;;  %s4928_s28 = sld [smem:[#allocation21_spill]] }
 0x2cd   : > { %s4929_s29 = sld [smem:[#allocation22_spill]]  ;;  %s4931_s21 = smov %s2913_s22 }
 0x2ce   : > { %s4930_s30 = sld [smem:[#allocation23_spill]]  ;;  %s4932_s22 = smov %s2917_s23 }
 0x2cf   : > { %s4933_s23 = smov %s3119_s15  ;;  %s4934_s24 = smov %s2925_s25 }
 0x2d0   : > { %s4935_s25 = smov %s2929_s26  ;;  %s4936_s26 = smov %s3092_s20 }
 0x2d1   :  { %26 = sbr.rel (!%p24_p6) target bundleno = 20 (0x14), region = 139 }
 0x2d6   :  { %2303 = vsyncpa [#allocation3], 1 }
 0x2d7   :  { %2305 = vsyncpa [#allocation3 + $0x1], 1 }
 0x2d8   :  { %2306 = vsyncpa [#allocation6], 1 }
 0x2d9   :  { %2307 = vsyncpa [#allocation4], 1 }
 0x2da   :  { %2309 = vsyncpa [#allocation4 + $0x1], 1 }
 0x2db   :  { %2310 = vsyncpa [#allocation11], 1 }
 0x2dc   :  { %2312 = vsyncpa [#allocation11 + $0x1], 1 }

</bundles_post_ra>
